<compile_context>
chip_gen: v6e
topology: v6e:2x2x1
jax: 0.10.0
libtpu: 0.0.40
codegen_flags: <defaults>
</compile_context>

<pallas_src>
import functools

import jax
import jax.numpy as jnp
from jax.experimental import pallas as pl
from jax.experimental.pallas import tpu as pltpu


def _elu(x):
    return jnp.where(x > 0, x, jnp.exp(x) - 1.0)


def fused_gat_kernel(x_ref, bias_ref,
                     wt0_ref, wt1_ref, wt2p_ref, attn01_ref,
                     out_ref, acc_ref, *,
                     heads, out_feats, negative_slope, softmax_dtype):
    """Whole 3-layer GAT forward on a dense-adjacency graph, VMEM-resident.

    x_ref      : (N, Din)       input node features
    bias_ref   : (N, N) bf16    additive edge-softmax mask, 0 on edges / -1e30 off
    wt0/1_ref  : (Din, H*D)     fc weights, pre-transposed (x @ wt == fc(x))
    wt2p_ref   : (H*D, 3)       final-head fc weight with attn_l/attn_r folded in:
                                columns = [w, w*attn_l, w*attn_r]
    attn01_ref : (H*D, 4H)      [AL0_bd | AR0_bd | AL1_bd | AR1_bd] block-diag attn
    out_ref    : (N, 128)       lane-dense output; logits replicated across lanes
    acc_ref    : (N, H*D) f32   scratch slab for per-head aggregation results
    """
    bf16 = jnp.bfloat16
    f32 = jnp.float32
    H, D = heads, out_feats

    # Additive mask bias, loaded once (bf16 in VMEM -> f32 for the adds).
    bias = bias_ref[...].astype(f32)                                    # (N, N)
    attn01 = attn01_ref[...].astype(bf16)                               # (H*D, 4H)

    def edge_softmax(e):
        # e: (N, N) f32, already LeakyReLU'd and mask-biased.  Off-edge entries
        # underflow exp() to exactly 0 (self-loops guarantee a finite row max).
        e = e - jnp.max(e, axis=1, keepdims=True)
        p = jnp.exp(e.astype(softmax_dtype))          # bf16 EUP on v6e/v7x
        denom = jnp.sum(p.astype(f32), axis=1, keepdims=True)
        inv = pl.reciprocal(denom, approx=True)
        return (p * inv.astype(softmax_dtype)).astype(bf16)

    def gat_layer(h_in, wt_ref, alr_b, num_elu):
        # fc: (N, Din) @ (Din, H*D) — bf16 MXU operands, f32 accumulation.
        feat = jnp.dot(h_in.astype(bf16), wt_ref[...].astype(bf16),
                       preferred_element_type=f32)                      # (N, H*D)
        feat_b = feat.astype(bf16)
        # Fused attention scores: one (N, 2H) matmul against [AL_bd | AR_bd].
        scores = jnp.dot(feat_b, alr_b, preferred_element_type=f32)     # (N, 2H)
        el_t = scores[:, :H].T                       # (H, N): one transpose/layer
        for h in range(H):                           # static unroll, H is small
            er_h = scores[:, H + h:H + h + 1]                           # (N, 1)
            el_row = el_t[h:h + 1, :]                                   # (1, N)
            # e[dst, src] = LeakyReLU(el[src] + er[dst]) + mask bias.
            e = er_h + el_row                                           # (N, N)
            e = jnp.where(e > 0, e, negative_slope * e)
            e = e + bias
            a = edge_softmax(e)                                         # (N, N) bf16
            # message passing: rst[dst] = sum_src a[dst, src] * feat[src]
            out_h = jnp.dot(a, feat_b[:, h * D:(h + 1) * D],
                            preferred_element_type=f32)                 # (N, D)
            acc_ref[:, h * D:(h + 1) * D] = out_h
        out = acc_ref[...]                                              # (N, H*D)
        for _ in range(num_elu):
            out = _elu(out)
        return out

    # layer 0: no internal activation, outer flatten + elu      -> 1 elu
    h = gat_layer(x_ref[...].astype(f32), wt0_ref, attn01[:, :2 * H], num_elu=1)
    # layer 1: internal elu + outer flatten + elu               -> 2 elus
    h = gat_layer(h, wt1_ref, attn01[:, 2 * H:], num_elu=2)

    # final head: H = 1, D = 1, no activation; logits.mean(1) is identity.
    # attn scalars are folded into wt2p -> feat2/el2/er2 from ONE matmul.
    packed2 = jnp.dot(h.astype(bf16), wt2p_ref[...].astype(bf16),
                      preferred_element_type=f32)                       # (N, 3)
    feat2 = packed2[:, 0:1]
    el2 = packed2[:, 1:2]
    er2 = packed2[:, 2:3]
    e2 = er2 + el2.T                                                    # (N, N)
    e2 = jnp.where(e2 > 0, e2, negative_slope * e2)
    e2 = e2 + bias
    a2 = edge_softmax(e2)
    logits = jnp.dot(a2, feat2.astype(bf16),
                     preferred_element_type=f32)                        # (N, 1)

    # Lane-dense store: replicate the 1-wide logits across 128 lanes so the
    # epilogue is an unmasked full-width vst; wrapper keeps column 0.
    out_ref[...] = jnp.broadcast_to(logits, out_ref.shape)


def _block_diag_attn(a):
    """(H, D) attention vector -> (H*D, H) block-diagonal matrix.

    Lets the per-head score reductions become a single MXU matmul:
        (feat @ bd)[n, h] == sum_d feat[n, h*D + d] * a[h, d]
    """
    H, D = a.shape
    eye = jnp.eye(H, dtype=a.dtype)
    return (a[:, :, None] * eye[:, None, :]).reshape(H * D, H)


def gat_forward(x, adj, params):
    """Mirrors GAT.forward: two GATConv+flatten+elu layers, then a 1-head head."""
    (wt0, al0, ar0), (wt1, al1, ar1), (wt2, al2, ar2) = params
    H, D = al0.shape
    N = x.shape[0]

    # Additive mask bias computed once in the wrapper, shipped as bf16.
    # NOTE: requires every dst row to have >= 1 edge (self-loops) so the
    # masked-softmax underflow trick is well defined.
    bias = jnp.where(adj > 0.0, 0.0, -1e30).astype(jnp.bfloat16)        # (N, N)

    # Fused score operands: [AL_bd | AR_bd] per layer, both layers in one array.
    alr0 = jnp.concatenate([_block_diag_attn(al0), _block_diag_attn(ar0)], axis=1)
    alr1 = jnp.concatenate([_block_diag_attn(al1), _block_diag_attn(ar1)], axis=1)
    attn01 = jnp.concatenate([alr0, alr1], axis=1)                      # (H*D, 4H)

    # Fold the final 1-head attn scalars into its fc weight: [w, w*al, w*ar].
    wt2p = jnp.concatenate([wt2, wt2 * al2[0, 0], wt2 * ar2[0, 0]], axis=1)

    # bf16 elementwise-softmax (exp) only where the VPU/EUP support it (v6e/v7x);
    # stay in f32 on v5e and older.
    kind = jax.devices()[0].device_kind.lower()
    use_bf16_softmax = not any(v in kind for v in ("v2", "v3", "v4", "v5"))
    softmax_dtype = jnp.bfloat16 if use_bf16_softmax else jnp.float32

    # Scoped-VMEM limit sized to actual residents (+headroom) so the gridless
    # design does not hit the 16/32 MiB defaults as N grows.
    n2 = N * N
    resident_bytes = (
        n2 * 2                          # bf16 bias
        + 3 * n2 * 4                    # e / p / a working tiles (f32 worst case)
        + N * 128 * 4                   # lane-dense output
        + 3 * N * (H * D) * 4           # feat / scratch slab / activations
        + (x.size + wt0.size + wt1.size + wt2p.size + attn01.size) * 4
    )
    vmem_limit = int(min(max(resident_bytes * 2, 8 << 20), 100 << 20))

    kern = functools.partial(fused_gat_kernel, heads=H, out_feats=D,
                             negative_slope=0.2, softmax_dtype=softmax_dtype)
    vmem = pl.BlockSpec(memory_space=pltpu.MemorySpace.VMEM)
    out_pad = pl.pallas_call(
        kern,
        out_shape=jax.ShapeDtypeStruct((N, 128), jnp.float32),
        in_specs=[vmem] * 6,
        out_specs=vmem,
        scratch_shapes=[pltpu.VMEM((N, H * D), jnp.float32)],
        compiler_params=pltpu.CompilerParams(vmem_limit_bytes=vmem_limit),
    )(x, bias, wt0, wt1, wt2p, attn01)
    # Final layer has a single head: logits.mean(1) == identity. Drop padding.
    return out_pad[:, :1]


def _xavier_normal(key, shape, fan_in, fan_out, gain):
    std = gain * (2.0 / (fan_in + fan_out)) ** 0.5
    return std * jax.random.normal(key, shape, dtype=jnp.float32)


def init_gat_params(key, unifeat, embedding_dim, heads):
    """Deterministic xavier-normal (gain=sqrt(2)) init matching reset_parameters shapes."""
    gain = 2.0 ** 0.5
    layer_dims = [
        (unifeat, embedding_dim, heads),                 # GATConv(unifeat, emb, 8)
        (embedding_dim * heads, embedding_dim, heads),   # GATConv(emb*8, emb, 8)
        (embedding_dim * heads, 1, 1),                   # GATConv(emb*8, 1, 1)
    ]
    params = []
    for (din, dout, h) in layer_dims:
        key, kw, kl, kr = jax.random.split(key, 4)
        # nn.Linear(din, dout*h).weight has shape (dout*h, din); store transpose.
        w = _xavier_normal(kw, (dout * h, din), fan_in=din, fan_out=dout * h, gain=gain)
        wt = jnp.transpose(w)                                  # (din, h*dout)
        # attn params have torch shape (1, h, dout) -> fan_in = h*dout, fan_out = dout
        al = _xavier_normal(kl, (h, dout), fan_in=h * dout, fan_out=dout, gain=gain)
        ar = _xavier_normal(kr, (h, dout), fan_in=h * dout, fan_out=dout, gain=gain)
        params.append((wt, al, ar))
    return params


if __name__ == "__main__":
    # Small synthetic problem consistent with the module:
    #   N nodes, args.unifeat input features, args.embedding_dim per head, 8 heads.
    N = 32
    UNIFEAT = 16
    EMBEDDING_DIM = 8
    HEADS = 8

    key = jax.random.PRNGKey(0)
    k_feat, k_adj, k_par = jax.random.split(key, 3)

    # node features (N, unifeat)
    x = jax.random.normal(k_feat, (N, UNIFEAT), dtype=jnp.float32)

    # deterministic random graph as a dense adjacency mask (dst, src), with
    # self-loops so every node has at least one incoming edge (edge_softmax is
    # well defined and masked exp() underflows cleanly).
    rand_adj = (jax.random.uniform(k_adj, (N, N)) < 0.3)
    adj = jnp.logical_or(rand_adj, jnp.eye(N, dtype=bool)).astype(jnp.float32)
    # Masked-softmax requires every dst node to have >= 1 incoming edge.
    assert bool(jnp.all(jnp.sum(adj, axis=1) > 0))

    params = init_gat_params(k_par, UNIFEAT, EMBEDDING_DIM, HEADS)

    forward = jax.jit(gat_forward)
    logits = forward(x, adj, params)
    logits = jax.block_until_ready(logits)

    assert logits.shape == (N, 1)
    assert bool(jnp.all(jnp.isfinite(logits)))
    print("KERNEL_OK")
</pallas_src>

<mosaic_0001>
module attributes {stable_mosaic.version = 11 : i64} {
  func.func @fused_gat_kernel(%arg0: memref<32x16xf32, #tpu.memory_space<vmem>>, %arg1: memref<32x32xbf16, #tpu.memory_space<vmem>>, %arg2: memref<16x64xf32, #tpu.memory_space<vmem>>, %arg3: memref<64x64xf32, #tpu.memory_space<vmem>>, %arg4: memref<64x3xf32, #tpu.memory_space<vmem>>, %arg5: memref<64x32xf32, #tpu.memory_space<vmem>>, %arg6: memref<32x128xf32, #tpu.memory_space<vmem>>, %arg7: memref<32x64xf32, #tpu.memory_space<vmem>>) attributes {dimension_semantics = [], scalar_prefetch = 0 : i64, scratch_operands = 1 : i64, tpu.core_type = #tpu.core_type<tc>} {
    %c0 = arith.constant 0 : index
    %c0_0 = arith.constant 0 : index
    %0 = vector.load %arg1[%c0, %c0_0] : memref<32x32xbf16, #tpu.memory_space<vmem>>, vector<32x32xbf16>
    %1 = arith.extf %0 : vector<32x32xbf16> to vector<32x32xf32>
    %c0_1 = arith.constant 0 : index
    %c0_2 = arith.constant 0 : index
    %2 = vector.load %arg5[%c0_1, %c0_2] : memref<64x32xf32, #tpu.memory_space<vmem>>, vector<64x32xf32>
    %3 = arith.truncf %2 : vector<64x32xf32> to vector<64x32xbf16>
    %c0_3 = arith.constant 0 : index
    %c0_4 = arith.constant 0 : index
    %4 = vector.load %arg0[%c0_3, %c0_4] : memref<32x16xf32, #tpu.memory_space<vmem>>, vector<32x16xf32>
    %5 = vector.extract_strided_slice %3 {offsets = [0, 0], sizes = [64, 16], strides = [1, 1]} : vector<64x32xbf16> to vector<64x16xbf16>
    %6 = arith.truncf %4 : vector<32x16xf32> to vector<32x16xbf16>
    %c0_5 = arith.constant 0 : index
    %c0_6 = arith.constant 0 : index
    %7 = vector.load %arg2[%c0_5, %c0_6] : memref<16x64xf32, #tpu.memory_space<vmem>>, vector<16x64xf32>
    %8 = arith.truncf %7 : vector<16x64xf32> to vector<16x64xbf16>
    %cst = arith.constant dense<0.000000e+00> : vector<32x64xf32>
    %9 = tpu.matmul %6, %8, %cst {dimension_numbers = #tpu.dot_dimension_numbers<[1], [0], [0], [1], [0, 0, 1, 1], [], []>} : vector<32x16xbf16>, vector<16x64xbf16>, vector<32x64xf32> -> vector<32x64xf32>
    %10 = arith.truncf %9 : vector<32x64xf32> to vector<32x64xbf16>
    %cst_7 = arith.constant dense<0.000000e+00> : vector<32x16xf32>
    %11 = tpu.matmul %10, %5, %cst_7 {dimension_numbers = #tpu.dot_dimension_numbers<[1], [0], [0], [1], [0, 0, 1, 1], [], []>} : vector<32x64xbf16>, vector<64x16xbf16>, vector<32x16xf32> -> vector<32x16xf32>
    %12 = vector.extract_strided_slice %11 {offsets = [0, 0], sizes = [32, 8], strides = [1, 1]} : vector<32x16xf32> to vector<32x8xf32>
    %13 = tpu.transpose %12, [1, 0] : vector<32x8xf32> -> vector<8x32xf32>
    %14 = vector.extract_strided_slice %11 {offsets = [0, 8], sizes = [32, 1], strides = [1, 1]} : vector<32x16xf32> to vector<32x1xf32>
    %15 = vector.extract_strided_slice %13 {offsets = [0, 0], sizes = [1, 32], strides = [1, 1]} : vector<8x32xf32> to vector<1x32xf32>
    %16 = vector.broadcast %14 : vector<32x1xf32> to vector<32x32xf32>
    %17 = vector.broadcast %15 : vector<1x32xf32> to vector<32x32xf32>
    %18 = arith.addf %16, %17 : vector<32x32xf32>
    %cst_8 = arith.constant 0.000000e+00 : f32
    %19 = vector.broadcast %cst_8 : f32 to vector<32x32xf32>
    %20 = arith.cmpf ogt, %18, %19 : vector<32x32xf32>
    %cst_9 = arith.constant 2.000000e-01 : f32
    %21 = vector.broadcast %cst_9 : f32 to vector<32x32xf32>
    %22 = arith.mulf %21, %18 : vector<32x32xf32>
    %23 = arith.select %20, %18, %22 : vector<32x32xi1>, vector<32x32xf32>
    %24 = arith.addf %23, %1 : vector<32x32xf32>
    %cst_10 = arith.constant dense<0xFF800000> : vector<32xf32>
    %25 = vector.multi_reduction <maximumf>, %24, %cst_10 [1] : vector<32x32xf32> to vector<32xf32>
    %26 = vector.shape_cast %25 : vector<32xf32> to vector<32x1xf32>
    %27 = vector.broadcast %26 : vector<32x1xf32> to vector<32x32xf32>
    %28 = arith.subf %24, %27 : vector<32x32xf32>
    %29 = arith.truncf %28 : vector<32x32xf32> to vector<32x32xbf16>
    %30 = math.exp %29 : vector<32x32xbf16>
    %31 = arith.extf %30 : vector<32x32xbf16> to vector<32x32xf32>
    %cst_11 = arith.constant dense<0.000000e+00> : vector<32xf32>
    %32 = vector.multi_reduction <add>, %31, %cst_11 [1] : vector<32x32xf32> to vector<32xf32>
    %33 = vector.shape_cast %32 : vector<32xf32> to vector<32x1xf32>
    %34 = tpu.reciprocal %33 {approx = true} : vector<32x1xf32> -> vector<32x1xf32>
    %35 = arith.truncf %34 : vector<32x1xf32> to vector<32x1xbf16>
    %36 = vector.broadcast %35 : vector<32x1xbf16> to vector<32x32xbf16>
    %37 = arith.mulf %30, %36 : vector<32x32xbf16>
    %38 = vector.extract_strided_slice %10 {offsets = [0, 0], sizes = [32, 8], strides = [1, 1]} : vector<32x64xbf16> to vector<32x8xbf16>
    %cst_12 = arith.constant dense<0.000000e+00> : vector<32x8xf32>
    %39 = tpu.matmul %37, %38, %cst_12 {dimension_numbers = #tpu.dot_dimension_numbers<[1], [0], [0], [1], [0, 0, 1, 1], [], []>} : vector<32x32xbf16>, vector<32x8xbf16>, vector<32x8xf32> -> vector<32x8xf32>
    %c0_13 = arith.constant 0 : index
    %c0_14 = arith.constant 0 : index
    %40 = vector.load %arg7[%c0_13, %c0_14] : memref<32x64xf32, #tpu.memory_space<vmem>>, vector<32x8xf32>
    tpu.vector_store %arg7[%c0_13, %c0_14], %39 {strides = array<i32>} : memref<32x64xf32, #tpu.memory_space<vmem>>, vector<32x8xf32>,
    %41 = vector.extract_strided_slice %11 {offsets = [0, 9], sizes = [32, 1], strides = [1, 1]} : vector<32x16xf32> to vector<32x1xf32>
    %42 = vector.extract_strided_slice %13 {offsets = [1, 0], sizes = [1, 32], strides = [1, 1]} : vector<8x32xf32> to vector<1x32xf32>
    %43 = vector.broadcast %41 : vector<32x1xf32> to vector<32x32xf32>
    %44 = vector.broadcast %42 : vector<1x32xf32> to vector<32x32xf32>
    %45 = arith.addf %43, %44 : vector<32x32xf32>
    %cst_15 = arith.constant 0.000000e+00 : f32
    %46 = vector.broadcast %cst_15 : f32 to vector<32x32xf32>
    %47 = arith.cmpf ogt, %45, %46 : vector<32x32xf32>
    %cst_16 = arith.constant 2.000000e-01 : f32
    %48 = vector.broadcast %cst_16 : f32 to vector<32x32xf32>
    %49 = arith.mulf %48, %45 : vector<32x32xf32>
    %50 = arith.select %47, %45, %49 : vector<32x32xi1>, vector<32x32xf32>
    %51 = arith.addf %50, %1 : vector<32x32xf32>
    %cst_17 = arith.constant dense<0xFF800000> : vector<32xf32>
    %52 = vector.multi_reduction <maximumf>, %51, %cst_17 [1] : vector<32x32xf32> to vector<32xf32>
    %53 = vector.shape_cast %52 : vector<32xf32> to vector<32x1xf32>
    %54 = vector.broadcast %53 : vector<32x1xf32> to vector<32x32xf32>
    %55 = arith.subf %51, %54 : vector<32x32xf32>
    %56 = arith.truncf %55 : vector<32x32xf32> to vector<32x32xbf16>
    %57 = math.exp %56 : vector<32x32xbf16>
    %58 = arith.extf %57 : vector<32x32xbf16> to vector<32x32xf32>
    %cst_18 = arith.constant dense<0.000000e+00> : vector<32xf32>
    %59 = vector.multi_reduction <add>, %58, %cst_18 [1] : vector<32x32xf32> to vector<32xf32>
    %60 = vector.shape_cast %59 : vector<32xf32> to vector<32x1xf32>
    %61 = tpu.reciprocal %60 {approx = true} : vector<32x1xf32> -> vector<32x1xf32>
    %62 = arith.truncf %61 : vector<32x1xf32> to vector<32x1xbf16>
    %63 = vector.broadcast %62 : vector<32x1xbf16> to vector<32x32xbf16>
    %64 = arith.mulf %57, %63 : vector<32x32xbf16>
    %65 = vector.extract_strided_slice %10 {offsets = [0, 8], sizes = [32, 8], strides = [1, 1]} : vector<32x64xbf16> to vector<32x8xbf16>
    %cst_19 = arith.constant dense<0.000000e+00> : vector<32x8xf32>
    %66 = tpu.matmul %64, %65, %cst_19 {dimension_numbers = #tpu.dot_dimension_numbers<[1], [0], [0], [1], [0, 0, 1, 1], [], []>} : vector<32x32xbf16>, vector<32x8xbf16>, vector<32x8xf32> -> vector<32x8xf32>
    %c0_20 = arith.constant 0 : index
    %c8 = arith.constant 8 : index
    %67 = vector.load %arg7[%c0_20, %c8] : memref<32x64xf32, #tpu.memory_space<vmem>>, vector<32x8xf32>
    tpu.vector_store %arg7[%c0_20, %c8], %66 {strides = array<i32>} : memref<32x64xf32, #tpu.memory_space<vmem>>, vector<32x8xf32>,
    %68 = vector.extract_strided_slice %11 {offsets = [0, 10], sizes = [32, 1], strides = [1, 1]} : vector<32x16xf32> to vector<32x1xf32>
    %69 = vector.extract_strided_slice %13 {offsets = [2, 0], sizes = [1, 32], strides = [1, 1]} : vector<8x32xf32> to vector<1x32xf32>
    %70 = vector.broadcast %68 : vector<32x1xf32> to vector<32x32xf32>
    %71 = vector.broadcast %69 : vector<1x32xf32> to vector<32x32xf32>
    %72 = arith.addf %70, %71 : vector<32x32xf32>
    %cst_21 = arith.constant 0.000000e+00 : f32
    %73 = vector.broadcast %cst_21 : f32 to vector<32x32xf32>
    %74 = arith.cmpf ogt, %72, %73 : vector<32x32xf32>
    %cst_22 = arith.constant 2.000000e-01 : f32
    %75 = vector.broadcast %cst_22 : f32 to vector<32x32xf32>
    %76 = arith.mulf %75, %72 : vector<32x32xf32>
    %77 = arith.select %74, %72, %76 : vector<32x32xi1>, vector<32x32xf32>
    %78 = arith.addf %77, %1 : vector<32x32xf32>
    %cst_23 = arith.constant dense<0xFF800000> : vector<32xf32>
    %79 = vector.multi_reduction <maximumf>, %78, %cst_23 [1] : vector<32x32xf32> to vector<32xf32>
    %80 = vector.shape_cast %79 : vector<32xf32> to vector<32x1xf32>
    %81 = vector.broadcast %80 : vector<32x1xf32> to vector<32x32xf32>
    %82 = arith.subf %78, %81 : vector<32x32xf32>
    %83 = arith.truncf %82 : vector<32x32xf32> to vector<32x32xbf16>
    %84 = math.exp %83 : vector<32x32xbf16>
    %85 = arith.extf %84 : vector<32x32xbf16> to vector<32x32xf32>
    %cst_24 = arith.constant dense<0.000000e+00> : vector<32xf32>
    %86 = vector.multi_reduction <add>, %85, %cst_24 [1] : vector<32x32xf32> to vector<32xf32>
    %87 = vector.shape_cast %86 : vector<32xf32> to vector<32x1xf32>
    %88 = tpu.reciprocal %87 {approx = true} : vector<32x1xf32> -> vector<32x1xf32>
    %89 = arith.truncf %88 : vector<32x1xf32> to vector<32x1xbf16>
    %90 = vector.broadcast %89 : vector<32x1xbf16> to vector<32x32xbf16>
    %91 = arith.mulf %84, %90 : vector<32x32xbf16>
    %92 = vector.extract_strided_slice %10 {offsets = [0, 16], sizes = [32, 8], strides = [1, 1]} : vector<32x64xbf16> to vector<32x8xbf16>
    %cst_25 = arith.constant dense<0.000000e+00> : vector<32x8xf32>
    %93 = tpu.matmul %91, %92, %cst_25 {dimension_numbers = #tpu.dot_dimension_numbers<[1], [0], [0], [1], [0, 0, 1, 1], [], []>} : vector<32x32xbf16>, vector<32x8xbf16>, vector<32x8xf32> -> vector<32x8xf32>
    %c0_26 = arith.constant 0 : index
    %c16 = arith.constant 16 : index
    %94 = vector.load %arg7[%c0_26, %c16] : memref<32x64xf32, #tpu.memory_space<vmem>>, vector<32x8xf32>
    tpu.vector_store %arg7[%c0_26, %c16], %93 {strides = array<i32>} : memref<32x64xf32, #tpu.memory_space<vmem>>, vector<32x8xf32>,
    %95 = vector.extract_strided_slice %11 {offsets = [0, 11], sizes = [32, 1], strides = [1, 1]} : vector<32x16xf32> to vector<32x1xf32>
    %96 = vector.extract_strided_slice %13 {offsets = [3, 0], sizes = [1, 32], strides = [1, 1]} : vector<8x32xf32> to vector<1x32xf32>
    %97 = vector.broadcast %95 : vector<32x1xf32> to vector<32x32xf32>
    %98 = vector.broadcast %96 : vector<1x32xf32> to vector<32x32xf32>
    %99 = arith.addf %97, %98 : vector<32x32xf32>
    %cst_27 = arith.constant 0.000000e+00 : f32
    %100 = vector.broadcast %cst_27 : f32 to vector<32x32xf32>
    %101 = arith.cmpf ogt, %99, %100 : vector<32x32xf32>
    %cst_28 = arith.constant 2.000000e-01 : f32
    %102 = vector.broadcast %cst_28 : f32 to vector<32x32xf32>
    %103 = arith.mulf %102, %99 : vector<32x32xf32>
    %104 = arith.select %101, %99, %103 : vector<32x32xi1>, vector<32x32xf32>
    %105 = arith.addf %104, %1 : vector<32x32xf32>
    %cst_29 = arith.constant dense<0xFF800000> : vector<32xf32>
    %106 = vector.multi_reduction <maximumf>, %105, %cst_29 [1] : vector<32x32xf32> to vector<32xf32>
    %107 = vector.shape_cast %106 : vector<32xf32> to vector<32x1xf32>
    %108 = vector.broadcast %107 : vector<32x1xf32> to vector<32x32xf32>
    %109 = arith.subf %105, %108 : vector<32x32xf32>
    %110 = arith.truncf %109 : vector<32x32xf32> to vector<32x32xbf16>
    %111 = math.exp %110 : vector<32x32xbf16>
    %112 = arith.extf %111 : vector<32x32xbf16> to vector<32x32xf32>
    %cst_30 = arith.constant dense<0.000000e+00> : vector<32xf32>
    %113 = vector.multi_reduction <add>, %112, %cst_30 [1] : vector<32x32xf32> to vector<32xf32>
    %114 = vector.shape_cast %113 : vector<32xf32> to vector<32x1xf32>
    %115 = tpu.reciprocal %114 {approx = true} : vector<32x1xf32> -> vector<32x1xf32>
    %116 = arith.truncf %115 : vector<32x1xf32> to vector<32x1xbf16>
    %117 = vector.broadcast %116 : vector<32x1xbf16> to vector<32x32xbf16>
    %118 = arith.mulf %111, %117 : vector<32x32xbf16>
    %119 = vector.extract_strided_slice %10 {offsets = [0, 24], sizes = [32, 8], strides = [1, 1]} : vector<32x64xbf16> to vector<32x8xbf16>
    %cst_31 = arith.constant dense<0.000000e+00> : vector<32x8xf32>
    %120 = tpu.matmul %118, %119, %cst_31 {dimension_numbers = #tpu.dot_dimension_numbers<[1], [0], [0], [1], [0, 0, 1, 1], [], []>} : vector<32x32xbf16>, vector<32x8xbf16>, vector<32x8xf32> -> vector<32x8xf32>
    %c0_32 = arith.constant 0 : index
    %c24 = arith.constant 24 : index
    %121 = vector.load %arg7[%c0_32, %c24] : memref<32x64xf32, #tpu.memory_space<vmem>>, vector<32x8xf32>
    tpu.vector_store %arg7[%c0_32, %c24], %120 {strides = array<i32>} : memref<32x64xf32, #tpu.memory_space<vmem>>, vector<32x8xf32>,
    %122 = vector.extract_strided_slice %11 {offsets = [0, 12], sizes = [32, 1], strides = [1, 1]} : vector<32x16xf32> to vector<32x1xf32>
    %123 = vector.extract_strided_slice %13 {offsets = [4, 0], sizes = [1, 32], strides = [1, 1]} : vector<8x32xf32> to vector<1x32xf32>
    %124 = vector.broadcast %122 : vector<32x1xf32> to vector<32x32xf32>
    %125 = vector.broadcast %123 : vector<1x32xf32> to vector<32x32xf32>
    %126 = arith.addf %124, %125 : vector<32x32xf32>
    %cst_33 = arith.constant 0.000000e+00 : f32
    %127 = vector.broadcast %cst_33 : f32 to vector<32x32xf32>
    %128 = arith.cmpf ogt, %126, %127 : vector<32x32xf32>
    %cst_34 = arith.constant 2.000000e-01 : f32
    %129 = vector.broadcast %cst_34 : f32 to vector<32x32xf32>
    %130 = arith.mulf %129, %126 : vector<32x32xf32>
    %131 = arith.select %128, %126, %130 : vector<32x32xi1>, vector<32x32xf32>
    %132 = arith.addf %131, %1 : vector<32x32xf32>
    %cst_35 = arith.constant dense<0xFF800000> : vector<32xf32>
    %133 = vector.multi_reduction <maximumf>, %132, %cst_35 [1] : vector<32x32xf32> to vector<32xf32>
    %134 = vector.shape_cast %133 : vector<32xf32> to vector<32x1xf32>
    %135 = vector.broadcast %134 : vector<32x1xf32> to vector<32x32xf32>
    %136 = arith.subf %132, %135 : vector<32x32xf32>
    %137 = arith.truncf %136 : vector<32x32xf32> to vector<32x32xbf16>
    %138 = math.exp %137 : vector<32x32xbf16>
    %139 = arith.extf %138 : vector<32x32xbf16> to vector<32x32xf32>
    %cst_36 = arith.constant dense<0.000000e+00> : vector<32xf32>
    %140 = vector.multi_reduction <add>, %139, %cst_36 [1] : vector<32x32xf32> to vector<32xf32>
    %141 = vector.shape_cast %140 : vector<32xf32> to vector<32x1xf32>
    %142 = tpu.reciprocal %141 {approx = true} : vector<32x1xf32> -> vector<32x1xf32>
    %143 = arith.truncf %142 : vector<32x1xf32> to vector<32x1xbf16>
    %144 = vector.broadcast %143 : vector<32x1xbf16> to vector<32x32xbf16>
    %145 = arith.mulf %138, %144 : vector<32x32xbf16>
    %146 = vector.extract_strided_slice %10 {offsets = [0, 32], sizes = [32, 8], strides = [1, 1]} : vector<32x64xbf16> to vector<32x8xbf16>
    %cst_37 = arith.constant dense<0.000000e+00> : vector<32x8xf32>
    %147 = tpu.matmul %145, %146, %cst_37 {dimension_numbers = #tpu.dot_dimension_numbers<[1], [0], [0], [1], [0, 0, 1, 1], [], []>} : vector<32x32xbf16>, vector<32x8xbf16>, vector<32x8xf32> -> vector<32x8xf32>
    %c0_38 = arith.constant 0 : index
    %c32 = arith.constant 32 : index
    %148 = vector.load %arg7[%c0_38, %c32] : memref<32x64xf32, #tpu.memory_space<vmem>>, vector<32x8xf32>
    tpu.vector_store %arg7[%c0_38, %c32], %147 {strides = array<i32>} : memref<32x64xf32, #tpu.memory_space<vmem>>, vector<32x8xf32>,
    %149 = vector.extract_strided_slice %11 {offsets = [0, 13], sizes = [32, 1], strides = [1, 1]} : vector<32x16xf32> to vector<32x1xf32>
    %150 = vector.extract_strided_slice %13 {offsets = [5, 0], sizes = [1, 32], strides = [1, 1]} : vector<8x32xf32> to vector<1x32xf32>
    %151 = vector.broadcast %149 : vector<32x1xf32> to vector<32x32xf32>
    %152 = vector.broadcast %150 : vector<1x32xf32> to vector<32x32xf32>
    %153 = arith.addf %151, %152 : vector<32x32xf32>
    %cst_39 = arith.constant 0.000000e+00 : f32
    %154 = vector.broadcast %cst_39 : f32 to vector<32x32xf32>
    %155 = arith.cmpf ogt, %153, %154 : vector<32x32xf32>
    %cst_40 = arith.constant 2.000000e-01 : f32
    %156 = vector.broadcast %cst_40 : f32 to vector<32x32xf32>
    %157 = arith.mulf %156, %153 : vector<32x32xf32>
    %158 = arith.select %155, %153, %157 : vector<32x32xi1>, vector<32x32xf32>
    %159 = arith.addf %158, %1 : vector<32x32xf32>
    %cst_41 = arith.constant dense<0xFF800000> : vector<32xf32>
    %160 = vector.multi_reduction <maximumf>, %159, %cst_41 [1] : vector<32x32xf32> to vector<32xf32>
    %161 = vector.shape_cast %160 : vector<32xf32> to vector<32x1xf32>
    %162 = vector.broadcast %161 : vector<32x1xf32> to vector<32x32xf32>
    %163 = arith.subf %159, %162 : vector<32x32xf32>
    %164 = arith.truncf %163 : vector<32x32xf32> to vector<32x32xbf16>
    %165 = math.exp %164 : vector<32x32xbf16>
    %166 = arith.extf %165 : vector<32x32xbf16> to vector<32x32xf32>
    %cst_42 = arith.constant dense<0.000000e+00> : vector<32xf32>
    %167 = vector.multi_reduction <add>, %166, %cst_42 [1] : vector<32x32xf32> to vector<32xf32>
    %168 = vector.shape_cast %167 : vector<32xf32> to vector<32x1xf32>
    %169 = tpu.reciprocal %168 {approx = true} : vector<32x1xf32> -> vector<32x1xf32>
    %170 = arith.truncf %169 : vector<32x1xf32> to vector<32x1xbf16>
    %171 = vector.broadcast %170 : vector<32x1xbf16> to vector<32x32xbf16>
    %172 = arith.mulf %165, %171 : vector<32x32xbf16>
    %173 = vector.extract_strided_slice %10 {offsets = [0, 40], sizes = [32, 8], strides = [1, 1]} : vector<32x64xbf16> to vector<32x8xbf16>
    %cst_43 = arith.constant dense<0.000000e+00> : vector<32x8xf32>
    %174 = tpu.matmul %172, %173, %cst_43 {dimension_numbers = #tpu.dot_dimension_numbers<[1], [0], [0], [1], [0, 0, 1, 1], [], []>} : vector<32x32xbf16>, vector<32x8xbf16>, vector<32x8xf32> -> vector<32x8xf32>
    %c0_44 = arith.constant 0 : index
    %c40 = arith.constant 40 : index
    %175 = vector.load %arg7[%c0_44, %c40] : memref<32x64xf32, #tpu.memory_space<vmem>>, vector<32x8xf32>
    tpu.vector_store %arg7[%c0_44, %c40], %174 {strides = array<i32>} : memref<32x64xf32, #tpu.memory_space<vmem>>, vector<32x8xf32>,
    %176 = vector.extract_strided_slice %11 {offsets = [0, 14], sizes = [32, 1], strides = [1, 1]} : vector<32x16xf32> to vector<32x1xf32>
    %177 = vector.extract_strided_slice %13 {offsets = [6, 0], sizes = [1, 32], strides = [1, 1]} : vector<8x32xf32> to vector<1x32xf32>
    %178 = vector.broadcast %176 : vector<32x1xf32> to vector<32x32xf32>
    %179 = vector.broadcast %177 : vector<1x32xf32> to vector<32x32xf32>
    %180 = arith.addf %178, %179 : vector<32x32xf32>
    %cst_45 = arith.constant 0.000000e+00 : f32
    %181 = vector.broadcast %cst_45 : f32 to vector<32x32xf32>
    %182 = arith.cmpf ogt, %180, %181 : vector<32x32xf32>
    %cst_46 = arith.constant 2.000000e-01 : f32
    %183 = vector.broadcast %cst_46 : f32 to vector<32x32xf32>
    %184 = arith.mulf %183, %180 : vector<32x32xf32>
    %185 = arith.select %182, %180, %184 : vector<32x32xi1>, vector<32x32xf32>
    %186 = arith.addf %185, %1 : vector<32x32xf32>
    %cst_47 = arith.constant dense<0xFF800000> : vector<32xf32>
    %187 = vector.multi_reduction <maximumf>, %186, %cst_47 [1] : vector<32x32xf32> to vector<32xf32>
    %188 = vector.shape_cast %187 : vector<32xf32> to vector<32x1xf32>
    %189 = vector.broadcast %188 : vector<32x1xf32> to vector<32x32xf32>
    %190 = arith.subf %186, %189 : vector<32x32xf32>
    %191 = arith.truncf %190 : vector<32x32xf32> to vector<32x32xbf16>
    %192 = math.exp %191 : vector<32x32xbf16>
    %193 = arith.extf %192 : vector<32x32xbf16> to vector<32x32xf32>
    %cst_48 = arith.constant dense<0.000000e+00> : vector<32xf32>
    %194 = vector.multi_reduction <add>, %193, %cst_48 [1] : vector<32x32xf32> to vector<32xf32>
    %195 = vector.shape_cast %194 : vector<32xf32> to vector<32x1xf32>
    %196 = tpu.reciprocal %195 {approx = true} : vector<32x1xf32> -> vector<32x1xf32>
    %197 = arith.truncf %196 : vector<32x1xf32> to vector<32x1xbf16>
    %198 = vector.broadcast %197 : vector<32x1xbf16> to vector<32x32xbf16>
    %199 = arith.mulf %192, %198 : vector<32x32xbf16>
    %200 = vector.extract_strided_slice %10 {offsets = [0, 48], sizes = [32, 8], strides = [1, 1]} : vector<32x64xbf16> to vector<32x8xbf16>
    %cst_49 = arith.constant dense<0.000000e+00> : vector<32x8xf32>
    %201 = tpu.matmul %199, %200, %cst_49 {dimension_numbers = #tpu.dot_dimension_numbers<[1], [0], [0], [1], [0, 0, 1, 1], [], []>} : vector<32x32xbf16>, vector<32x8xbf16>, vector<32x8xf32> -> vector<32x8xf32>
    %c0_50 = arith.constant 0 : index
    %c48 = arith.constant 48 : index
    %202 = vector.load %arg7[%c0_50, %c48] : memref<32x64xf32, #tpu.memory_space<vmem>>, vector<32x8xf32>
    tpu.vector_store %arg7[%c0_50, %c48], %201 {strides = array<i32>} : memref<32x64xf32, #tpu.memory_space<vmem>>, vector<32x8xf32>,
    %203 = vector.extract_strided_slice %11 {offsets = [0, 15], sizes = [32, 1], strides = [1, 1]} : vector<32x16xf32> to vector<32x1xf32>
    %204 = vector.extract_strided_slice %13 {offsets = [7, 0], sizes = [1, 32], strides = [1, 1]} : vector<8x32xf32> to vector<1x32xf32>
    %205 = vector.broadcast %203 : vector<32x1xf32> to vector<32x32xf32>
    %206 = vector.broadcast %204 : vector<1x32xf32> to vector<32x32xf32>
    %207 = arith.addf %205, %206 : vector<32x32xf32>
    %cst_51 = arith.constant 0.000000e+00 : f32
    %208 = vector.broadcast %cst_51 : f32 to vector<32x32xf32>
    %209 = arith.cmpf ogt, %207, %208 : vector<32x32xf32>
    %cst_52 = arith.constant 2.000000e-01 : f32
    %210 = vector.broadcast %cst_52 : f32 to vector<32x32xf32>
    %211 = arith.mulf %210, %207 : vector<32x32xf32>
    %212 = arith.select %209, %207, %211 : vector<32x32xi1>, vector<32x32xf32>
    %213 = arith.addf %212, %1 : vector<32x32xf32>
    %cst_53 = arith.constant dense<0xFF800000> : vector<32xf32>
    %214 = vector.multi_reduction <maximumf>, %213, %cst_53 [1] : vector<32x32xf32> to vector<32xf32>
    %215 = vector.shape_cast %214 : vector<32xf32> to vector<32x1xf32>
    %216 = vector.broadcast %215 : vector<32x1xf32> to vector<32x32xf32>
    %217 = arith.subf %213, %216 : vector<32x32xf32>
    %218 = arith.truncf %217 : vector<32x32xf32> to vector<32x32xbf16>
    %219 = math.exp %218 : vector<32x32xbf16>
    %220 = arith.extf %219 : vector<32x32xbf16> to vector<32x32xf32>
    %cst_54 = arith.constant dense<0.000000e+00> : vector<32xf32>
    %221 = vector.multi_reduction <add>, %220, %cst_54 [1] : vector<32x32xf32> to vector<32xf32>
    %222 = vector.shape_cast %221 : vector<32xf32> to vector<32x1xf32>
    %223 = tpu.reciprocal %222 {approx = true} : vector<32x1xf32> -> vector<32x1xf32>
    %224 = arith.truncf %223 : vector<32x1xf32> to vector<32x1xbf16>
    %225 = vector.broadcast %224 : vector<32x1xbf16> to vector<32x32xbf16>
    %226 = arith.mulf %219, %225 : vector<32x32xbf16>
    %227 = vector.extract_strided_slice %10 {offsets = [0, 56], sizes = [32, 8], strides = [1, 1]} : vector<32x64xbf16> to vector<32x8xbf16>
    %cst_55 = arith.constant dense<0.000000e+00> : vector<32x8xf32>
    %228 = tpu.matmul %226, %227, %cst_55 {dimension_numbers = #tpu.dot_dimension_numbers<[1], [0], [0], [1], [0, 0, 1, 1], [], []>} : vector<32x32xbf16>, vector<32x8xbf16>, vector<32x8xf32> -> vector<32x8xf32>
    %c0_56 = arith.constant 0 : index
    %c56 = arith.constant 56 : index
    %229 = vector.load %arg7[%c0_56, %c56] : memref<32x64xf32, #tpu.memory_space<vmem>>, vector<32x8xf32>
    tpu.vector_store %arg7[%c0_56, %c56], %228 {strides = array<i32>} : memref<32x64xf32, #tpu.memory_space<vmem>>, vector<32x8xf32>,
    %c0_57 = arith.constant 0 : index
    %c0_58 = arith.constant 0 : index
    %230 = vector.load %arg7[%c0_57, %c0_58] : memref<32x64xf32, #tpu.memory_space<vmem>>, vector<32x64xf32>
    %cst_59 = arith.constant 0.000000e+00 : f32
    %231 = vector.broadcast %cst_59 : f32 to vector<32x64xf32>
    %232 = arith.cmpf ogt, %230, %231 : vector<32x64xf32>
    %233 = math.exp %230 : vector<32x64xf32>
    %cst_60 = arith.constant 1.000000e+00 : f32
    %234 = vector.broadcast %cst_60 : f32 to vector<32x64xf32>
    %235 = arith.subf %233, %234 : vector<32x64xf32>
    %236 = arith.select %232, %230, %235 : vector<32x64xi1>, vector<32x64xf32>
    %237 = vector.extract_strided_slice %3 {offsets = [0, 16], sizes = [64, 16], strides = [1, 1]} : vector<64x32xbf16> to vector<64x16xbf16>
    %238 = arith.truncf %236 : vector<32x64xf32> to vector<32x64xbf16>
    %c0_61 = arith.constant 0 : index
    %c0_62 = arith.constant 0 : index
    %239 = vector.load %arg3[%c0_61, %c0_62] : memref<64x64xf32, #tpu.memory_space<vmem>>, vector<64x64xf32>
    %240 = arith.truncf %239 : vector<64x64xf32> to vector<64x64xbf16>
    %cst_63 = arith.constant dense<0.000000e+00> : vector<32x64xf32>
    %241 = tpu.matmul %238, %240, %cst_63 {dimension_numbers = #tpu.dot_dimension_numbers<[1], [0], [0], [1], [0, 0, 1, 1], [], []>} : vector<32x64xbf16>, vector<64x64xbf16>, vector<32x64xf32> -> vector<32x64xf32>
    %242 = arith.truncf %241 : vector<32x64xf32> to vector<32x64xbf16>
    %cst_64 = arith.constant dense<0.000000e+00> : vector<32x16xf32>
    %243 = tpu.matmul %242, %237, %cst_64 {dimension_numbers = #tpu.dot_dimension_numbers<[1], [0], [0], [1], [0, 0, 1, 1], [], []>} : vector<32x64xbf16>, vector<64x16xbf16>, vector<32x16xf32> -> vector<32x16xf32>
    %244 = vector.extract_strided_slice %243 {offsets = [0, 0], sizes = [32, 8], strides = [1, 1]} : vector<32x16xf32> to vector<32x8xf32>
    %245 = tpu.transpose %244, [1, 0] : vector<32x8xf32> -> vector<8x32xf32>
    %246 = vector.extract_strided_slice %243 {offsets = [0, 8], sizes = [32, 1], strides = [1, 1]} : vector<32x16xf32> to vector<32x1xf32>
    %247 = vector.extract_strided_slice %245 {offsets = [0, 0], sizes = [1, 32], strides = [1, 1]} : vector<8x32xf32> to vector<1x32xf32>
    %248 = vector.broadcast %246 : vector<32x1xf32> to vector<32x32xf32>
    %249 = vector.broadcast %247 : vector<1x32xf32> to vector<32x32xf32>
    %250 = arith.addf %248, %249 : vector<32x32xf32>
    %cst_65 = arith.constant 0.000000e+00 : f32
    %251 = vector.broadcast %cst_65 : f32 to vector<32x32xf32>
    %252 = arith.cmpf ogt, %250, %251 : vector<32x32xf32>
    %cst_66 = arith.constant 2.000000e-01 : f32
    %253 = vector.broadcast %cst_66 : f32 to vector<32x32xf32>
    %254 = arith.mulf %253, %250 : vector<32x32xf32>
    %255 = arith.select %252, %250, %254 : vector<32x32xi1>, vector<32x32xf32>
    %256 = arith.addf %255, %1 : vector<32x32xf32>
    %cst_67 = arith.constant dense<0xFF800000> : vector<32xf32>
    %257 = vector.multi_reduction <maximumf>, %256, %cst_67 [1] : vector<32x32xf32> to vector<32xf32>
    %258 = vector.shape_cast %257 : vector<32xf32> to vector<32x1xf32>
    %259 = vector.broadcast %258 : vector<32x1xf32> to vector<32x32xf32>
    %260 = arith.subf %256, %259 : vector<32x32xf32>
    %261 = arith.truncf %260 : vector<32x32xf32> to vector<32x32xbf16>
    %262 = math.exp %261 : vector<32x32xbf16>
    %263 = arith.extf %262 : vector<32x32xbf16> to vector<32x32xf32>
    %cst_68 = arith.constant dense<0.000000e+00> : vector<32xf32>
    %264 = vector.multi_reduction <add>, %263, %cst_68 [1] : vector<32x32xf32> to vector<32xf32>
    %265 = vector.shape_cast %264 : vector<32xf32> to vector<32x1xf32>
    %266 = tpu.reciprocal %265 {approx = true} : vector<32x1xf32> -> vector<32x1xf32>
    %267 = arith.truncf %266 : vector<32x1xf32> to vector<32x1xbf16>
    %268 = vector.broadcast %267 : vector<32x1xbf16> to vector<32x32xbf16>
    %269 = arith.mulf %262, %268 : vector<32x32xbf16>
    %270 = vector.extract_strided_slice %242 {offsets = [0, 0], sizes = [32, 8], strides = [1, 1]} : vector<32x64xbf16> to vector<32x8xbf16>
    %cst_69 = arith.constant dense<0.000000e+00> : vector<32x8xf32>
    %271 = tpu.matmul %269, %270, %cst_69 {dimension_numbers = #tpu.dot_dimension_numbers<[1], [0], [0], [1], [0, 0, 1, 1], [], []>} : vector<32x32xbf16>, vector<32x8xbf16>, vector<32x8xf32> -> vector<32x8xf32>
    %c0_70 = arith.constant 0 : index
    %c0_71 = arith.constant 0 : index
    %272 = vector.load %arg7[%c0_70, %c0_71] : memref<32x64xf32, #tpu.memory_space<vmem>>, vector<32x8xf32>
    tpu.vector_store %arg7[%c0_70, %c0_71], %271 {strides = array<i32>} : memref<32x64xf32, #tpu.memory_space<vmem>>, vector<32x8xf32>,
    %273 = vector.extract_strided_slice %243 {offsets = [0, 9], sizes = [32, 1], strides = [1, 1]} : vector<32x16xf32> to vector<32x1xf32>
    %274 = vector.extract_strided_slice %245 {offsets = [1, 0], sizes = [1, 32], strides = [1, 1]} : vector<8x32xf32> to vector<1x32xf32>
    %275 = vector.broadcast %273 : vector<32x1xf32> to vector<32x32xf32>
    %276 = vector.broadcast %274 : vector<1x32xf32> to vector<32x32xf32>
    %277 = arith.addf %275, %276 : vector<32x32xf32>
    %cst_72 = arith.constant 0.000000e+00 : f32
    %278 = vector.broadcast %cst_72 : f32 to vector<32x32xf32>
    %279 = arith.cmpf ogt, %277, %278 : vector<32x32xf32>
    %cst_73 = arith.constant 2.000000e-01 : f32
    %280 = vector.broadcast %cst_73 : f32 to vector<32x32xf32>
    %281 = arith.mulf %280, %277 : vector<32x32xf32>
    %282 = arith.select %279, %277, %281 : vector<32x32xi1>, vector<32x32xf32>
    %283 = arith.addf %282, %1 : vector<32x32xf32>
    %cst_74 = arith.constant dense<0xFF800000> : vector<32xf32>
    %284 = vector.multi_reduction <maximumf>, %283, %cst_74 [1] : vector<32x32xf32> to vector<32xf32>
    %285 = vector.shape_cast %284 : vector<32xf32> to vector<32x1xf32>
    %286 = vector.broadcast %285 : vector<32x1xf32> to vector<32x32xf32>
    %287 = arith.subf %283, %286 : vector<32x32xf32>
    %288 = arith.truncf %287 : vector<32x32xf32> to vector<32x32xbf16>
    %289 = math.exp %288 : vector<32x32xbf16>
    %290 = arith.extf %289 : vector<32x32xbf16> to vector<32x32xf32>
    %cst_75 = arith.constant dense<0.000000e+00> : vector<32xf32>
    %291 = vector.multi_reduction <add>, %290, %cst_75 [1] : vector<32x32xf32> to vector<32xf32>
    %292 = vector.shape_cast %291 : vector<32xf32> to vector<32x1xf32>
    %293 = tpu.reciprocal %292 {approx = true} : vector<32x1xf32> -> vector<32x1xf32>
    %294 = arith.truncf %293 : vector<32x1xf32> to vector<32x1xbf16>
    %295 = vector.broadcast %294 : vector<32x1xbf16> to vector<32x32xbf16>
    %296 = arith.mulf %289, %295 : vector<32x32xbf16>
    %297 = vector.extract_strided_slice %242 {offsets = [0, 8], sizes = [32, 8], strides = [1, 1]} : vector<32x64xbf16> to vector<32x8xbf16>
    %cst_76 = arith.constant dense<0.000000e+00> : vector<32x8xf32>
    %298 = tpu.matmul %296, %297, %cst_76 {dimension_numbers = #tpu.dot_dimension_numbers<[1], [0], [0], [1], [0, 0, 1, 1], [], []>} : vector<32x32xbf16>, vector<32x8xbf16>, vector<32x8xf32> -> vector<32x8xf32>
    %c0_77 = arith.constant 0 : index
    %c8_78 = arith.constant 8 : index
    %299 = vector.load %arg7[%c0_77, %c8_78] : memref<32x64xf32, #tpu.memory_space<vmem>>, vector<32x8xf32>
    tpu.vector_store %arg7[%c0_77, %c8_78], %298 {strides = array<i32>} : memref<32x64xf32, #tpu.memory_space<vmem>>, vector<32x8xf32>,
    %300 = vector.extract_strided_slice %243 {offsets = [0, 10], sizes = [32, 1], strides = [1, 1]} : vector<32x16xf32> to vector<32x1xf32>
    %301 = vector.extract_strided_slice %245 {offsets = [2, 0], sizes = [1, 32], strides = [1, 1]} : vector<8x32xf32> to vector<1x32xf32>
    %302 = vector.broadcast %300 : vector<32x1xf32> to vector<32x32xf32>
    %303 = vector.broadcast %301 : vector<1x32xf32> to vector<32x32xf32>
    %304 = arith.addf %302, %303 : vector<32x32xf32>
    %cst_79 = arith.constant 0.000000e+00 : f32
    %305 = vector.broadcast %cst_79 : f32 to vector<32x32xf32>
    %306 = arith.cmpf ogt, %304, %305 : vector<32x32xf32>
    %cst_80 = arith.constant 2.000000e-01 : f32
    %307 = vector.broadcast %cst_80 : f32 to vector<32x32xf32>
    %308 = arith.mulf %307, %304 : vector<32x32xf32>
    %309 = arith.select %306, %304, %308 : vector<32x32xi1>, vector<32x32xf32>
    %310 = arith.addf %309, %1 : vector<32x32xf32>
    %cst_81 = arith.constant dense<0xFF800000> : vector<32xf32>
    %311 = vector.multi_reduction <maximumf>, %310, %cst_81 [1] : vector<32x32xf32> to vector<32xf32>
    %312 = vector.shape_cast %311 : vector<32xf32> to vector<32x1xf32>
    %313 = vector.broadcast %312 : vector<32x1xf32> to vector<32x32xf32>
    %314 = arith.subf %310, %313 : vector<32x32xf32>
    %315 = arith.truncf %314 : vector<32x32xf32> to vector<32x32xbf16>
    %316 = math.exp %315 : vector<32x32xbf16>
    %317 = arith.extf %316 : vector<32x32xbf16> to vector<32x32xf32>
    %cst_82 = arith.constant dense<0.000000e+00> : vector<32xf32>
    %318 = vector.multi_reduction <add>, %317, %cst_82 [1] : vector<32x32xf32> to vector<32xf32>
    %319 = vector.shape_cast %318 : vector<32xf32> to vector<32x1xf32>
    %320 = tpu.reciprocal %319 {approx = true} : vector<32x1xf32> -> vector<32x1xf32>
    %321 = arith.truncf %320 : vector<32x1xf32> to vector<32x1xbf16>
    %322 = vector.broadcast %321 : vector<32x1xbf16> to vector<32x32xbf16>
    %323 = arith.mulf %316, %322 : vector<32x32xbf16>
    %324 = vector.extract_strided_slice %242 {offsets = [0, 16], sizes = [32, 8], strides = [1, 1]} : vector<32x64xbf16> to vector<32x8xbf16>
    %cst_83 = arith.constant dense<0.000000e+00> : vector<32x8xf32>
    %325 = tpu.matmul %323, %324, %cst_83 {dimension_numbers = #tpu.dot_dimension_numbers<[1], [0], [0], [1], [0, 0, 1, 1], [], []>} : vector<32x32xbf16>, vector<32x8xbf16>, vector<32x8xf32> -> vector<32x8xf32>
    %c0_84 = arith.constant 0 : index
    %c16_85 = arith.constant 16 : index
    %326 = vector.load %arg7[%c0_84, %c16_85] : memref<32x64xf32, #tpu.memory_space<vmem>>, vector<32x8xf32>
    tpu.vector_store %arg7[%c0_84, %c16_85], %325 {strides = array<i32>} : memref<32x64xf32, #tpu.memory_space<vmem>>, vector<32x8xf32>,
    %327 = vector.extract_strided_slice %243 {offsets = [0, 11], sizes = [32, 1], strides = [1, 1]} : vector<32x16xf32> to vector<32x1xf32>
    %328 = vector.extract_strided_slice %245 {offsets = [3, 0], sizes = [1, 32], strides = [1, 1]} : vector<8x32xf32> to vector<1x32xf32>
    %329 = vector.broadcast %327 : vector<32x1xf32> to vector<32x32xf32>
    %330 = vector.broadcast %328 : vector<1x32xf32> to vector<32x32xf32>
    %331 = arith.addf %329, %330 : vector<32x32xf32>
    %cst_86 = arith.constant 0.000000e+00 : f32
    %332 = vector.broadcast %cst_86 : f32 to vector<32x32xf32>
    %333 = arith.cmpf ogt, %331, %332 : vector<32x32xf32>
    %cst_87 = arith.constant 2.000000e-01 : f32
    %334 = vector.broadcast %cst_87 : f32 to vector<32x32xf32>
    %335 = arith.mulf %334, %331 : vector<32x32xf32>
    %336 = arith.select %333, %331, %335 : vector<32x32xi1>, vector<32x32xf32>
    %337 = arith.addf %336, %1 : vector<32x32xf32>
    %cst_88 = arith.constant dense<0xFF800000> : vector<32xf32>
    %338 = vector.multi_reduction <maximumf>, %337, %cst_88 [1] : vector<32x32xf32> to vector<32xf32>
    %339 = vector.shape_cast %338 : vector<32xf32> to vector<32x1xf32>
    %340 = vector.broadcast %339 : vector<32x1xf32> to vector<32x32xf32>
    %341 = arith.subf %337, %340 : vector<32x32xf32>
    %342 = arith.truncf %341 : vector<32x32xf32> to vector<32x32xbf16>
    %343 = math.exp %342 : vector<32x32xbf16>
    %344 = arith.extf %343 : vector<32x32xbf16> to vector<32x32xf32>
    %cst_89 = arith.constant dense<0.000000e+00> : vector<32xf32>
    %345 = vector.multi_reduction <add>, %344, %cst_89 [1] : vector<32x32xf32> to vector<32xf32>
    %346 = vector.shape_cast %345 : vector<32xf32> to vector<32x1xf32>
    %347 = tpu.reciprocal %346 {approx = true} : vector<32x1xf32> -> vector<32x1xf32>
    %348 = arith.truncf %347 : vector<32x1xf32> to vector<32x1xbf16>
    %349 = vector.broadcast %348 : vector<32x1xbf16> to vector<32x32xbf16>
    %350 = arith.mulf %343, %349 : vector<32x32xbf16>
    %351 = vector.extract_strided_slice %242 {offsets = [0, 24], sizes = [32, 8], strides = [1, 1]} : vector<32x64xbf16> to vector<32x8xbf16>
    %cst_90 = arith.constant dense<0.000000e+00> : vector<32x8xf32>
    %352 = tpu.matmul %350, %351, %cst_90 {dimension_numbers = #tpu.dot_dimension_numbers<[1], [0], [0], [1], [0, 0, 1, 1], [], []>} : vector<32x32xbf16>, vector<32x8xbf16>, vector<32x8xf32> -> vector<32x8xf32>
    %c0_91 = arith.constant 0 : index
    %c24_92 = arith.constant 24 : index
    %353 = vector.load %arg7[%c0_91, %c24_92] : memref<32x64xf32, #tpu.memory_space<vmem>>, vector<32x8xf32>
    tpu.vector_store %arg7[%c0_91, %c24_92], %352 {strides = array<i32>} : memref<32x64xf32, #tpu.memory_space<vmem>>, vector<32x8xf32>,
    %354 = vector.extract_strided_slice %243 {offsets = [0, 12], sizes = [32, 1], strides = [1, 1]} : vector<32x16xf32> to vector<32x1xf32>
    %355 = vector.extract_strided_slice %245 {offsets = [4, 0], sizes = [1, 32], strides = [1, 1]} : vector<8x32xf32> to vector<1x32xf32>
    %356 = vector.broadcast %354 : vector<32x1xf32> to vector<32x32xf32>
    %357 = vector.broadcast %355 : vector<1x32xf32> to vector<32x32xf32>
    %358 = arith.addf %356, %357 : vector<32x32xf32>
    %cst_93 = arith.constant 0.000000e+00 : f32
    %359 = vector.broadcast %cst_93 : f32 to vector<32x32xf32>
    %360 = arith.cmpf ogt, %358, %359 : vector<32x32xf32>
    %cst_94 = arith.constant 2.000000e-01 : f32
    %361 = vector.broadcast %cst_94 : f32 to vector<32x32xf32>
    %362 = arith.mulf %361, %358 : vector<32x32xf32>
    %363 = arith.select %360, %358, %362 : vector<32x32xi1>, vector<32x32xf32>
    %364 = arith.addf %363, %1 : vector<32x32xf32>
    %cst_95 = arith.constant dense<0xFF800000> : vector<32xf32>
    %365 = vector.multi_reduction <maximumf>, %364, %cst_95 [1] : vector<32x32xf32> to vector<32xf32>
    %366 = vector.shape_cast %365 : vector<32xf32> to vector<32x1xf32>
    %367 = vector.broadcast %366 : vector<32x1xf32> to vector<32x32xf32>
    %368 = arith.subf %364, %367 : vector<32x32xf32>
    %369 = arith.truncf %368 : vector<32x32xf32> to vector<32x32xbf16>
    %370 = math.exp %369 : vector<32x32xbf16>
    %371 = arith.extf %370 : vector<32x32xbf16> to vector<32x32xf32>
    %cst_96 = arith.constant dense<0.000000e+00> : vector<32xf32>
    %372 = vector.multi_reduction <add>, %371, %cst_96 [1] : vector<32x32xf32> to vector<32xf32>
    %373 = vector.shape_cast %372 : vector<32xf32> to vector<32x1xf32>
    %374 = tpu.reciprocal %373 {approx = true} : vector<32x1xf32> -> vector<32x1xf32>
    %375 = arith.truncf %374 : vector<32x1xf32> to vector<32x1xbf16>
    %376 = vector.broadcast %375 : vector<32x1xbf16> to vector<32x32xbf16>
    %377 = arith.mulf %370, %376 : vector<32x32xbf16>
    %378 = vector.extract_strided_slice %242 {offsets = [0, 32], sizes = [32, 8], strides = [1, 1]} : vector<32x64xbf16> to vector<32x8xbf16>
    %cst_97 = arith.constant dense<0.000000e+00> : vector<32x8xf32>
    %379 = tpu.matmul %377, %378, %cst_97 {dimension_numbers = #tpu.dot_dimension_numbers<[1], [0], [0], [1], [0, 0, 1, 1], [], []>} : vector<32x32xbf16>, vector<32x8xbf16>, vector<32x8xf32> -> vector<32x8xf32>
    %c0_98 = arith.constant 0 : index
    %c32_99 = arith.constant 32 : index
    %380 = vector.load %arg7[%c0_98, %c32_99] : memref<32x64xf32, #tpu.memory_space<vmem>>, vector<32x8xf32>
    tpu.vector_store %arg7[%c0_98, %c32_99], %379 {strides = array<i32>} : memref<32x64xf32, #tpu.memory_space<vmem>>, vector<32x8xf32>,
    %381 = vector.extract_strided_slice %243 {offsets = [0, 13], sizes = [32, 1], strides = [1, 1]} : vector<32x16xf32> to vector<32x1xf32>
    %382 = vector.extract_strided_slice %245 {offsets = [5, 0], sizes = [1, 32], strides = [1, 1]} : vector<8x32xf32> to vector<1x32xf32>
    %383 = vector.broadcast %381 : vector<32x1xf32> to vector<32x32xf32>
    %384 = vector.broadcast %382 : vector<1x32xf32> to vector<32x32xf32>
    %385 = arith.addf %383, %384 : vector<32x32xf32>
    %cst_100 = arith.constant 0.000000e+00 : f32
    %386 = vector.broadcast %cst_100 : f32 to vector<32x32xf32>
    %387 = arith.cmpf ogt, %385, %386 : vector<32x32xf32>
    %cst_101 = arith.constant 2.000000e-01 : f32
    %388 = vector.broadcast %cst_101 : f32 to vector<32x32xf32>
    %389 = arith.mulf %388, %385 : vector<32x32xf32>
    %390 = arith.select %387, %385, %389 : vector<32x32xi1>, vector<32x32xf32>
    %391 = arith.addf %390, %1 : vector<32x32xf32>
    %cst_102 = arith.constant dense<0xFF800000> : vector<32xf32>
    %392 = vector.multi_reduction <maximumf>, %391, %cst_102 [1] : vector<32x32xf32> to vector<32xf32>
    %393 = vector.shape_cast %392 : vector<32xf32> to vector<32x1xf32>
    %394 = vector.broadcast %393 : vector<32x1xf32> to vector<32x32xf32>
    %395 = arith.subf %391, %394 : vector<32x32xf32>
    %396 = arith.truncf %395 : vector<32x32xf32> to vector<32x32xbf16>
    %397 = math.exp %396 : vector<32x32xbf16>
    %398 = arith.extf %397 : vector<32x32xbf16> to vector<32x32xf32>
    %cst_103 = arith.constant dense<0.000000e+00> : vector<32xf32>
    %399 = vector.multi_reduction <add>, %398, %cst_103 [1] : vector<32x32xf32> to vector<32xf32>
    %400 = vector.shape_cast %399 : vector<32xf32> to vector<32x1xf32>
    %401 = tpu.reciprocal %400 {approx = true} : vector<32x1xf32> -> vector<32x1xf32>
    %402 = arith.truncf %401 : vector<32x1xf32> to vector<32x1xbf16>
    %403 = vector.broadcast %402 : vector<32x1xbf16> to vector<32x32xbf16>
    %404 = arith.mulf %397, %403 : vector<32x32xbf16>
    %405 = vector.extract_strided_slice %242 {offsets = [0, 40], sizes = [32, 8], strides = [1, 1]} : vector<32x64xbf16> to vector<32x8xbf16>
    %cst_104 = arith.constant dense<0.000000e+00> : vector<32x8xf32>
    %406 = tpu.matmul %404, %405, %cst_104 {dimension_numbers = #tpu.dot_dimension_numbers<[1], [0], [0], [1], [0, 0, 1, 1], [], []>} : vector<32x32xbf16>, vector<32x8xbf16>, vector<32x8xf32> -> vector<32x8xf32>
    %c0_105 = arith.constant 0 : index
    %c40_106 = arith.constant 40 : index
    %407 = vector.load %arg7[%c0_105, %c40_106] : memref<32x64xf32, #tpu.memory_space<vmem>>, vector<32x8xf32>
    tpu.vector_store %arg7[%c0_105, %c40_106], %406 {strides = array<i32>} : memref<32x64xf32, #tpu.memory_space<vmem>>, vector<32x8xf32>,
    %408 = vector.extract_strided_slice %243 {offsets = [0, 14], sizes = [32, 1], strides = [1, 1]} : vector<32x16xf32> to vector<32x1xf32>
    %409 = vector.extract_strided_slice %245 {offsets = [6, 0], sizes = [1, 32], strides = [1, 1]} : vector<8x32xf32> to vector<1x32xf32>
    %410 = vector.broadcast %408 : vector<32x1xf32> to vector<32x32xf32>
    %411 = vector.broadcast %409 : vector<1x32xf32> to vector<32x32xf32>
    %412 = arith.addf %410, %411 : vector<32x32xf32>
    %cst_107 = arith.constant 0.000000e+00 : f32
    %413 = vector.broadcast %cst_107 : f32 to vector<32x32xf32>
    %414 = arith.cmpf ogt, %412, %413 : vector<32x32xf32>
    %cst_108 = arith.constant 2.000000e-01 : f32
    %415 = vector.broadcast %cst_108 : f32 to vector<32x32xf32>
    %416 = arith.mulf %415, %412 : vector<32x32xf32>
    %417 = arith.select %414, %412, %416 : vector<32x32xi1>, vector<32x32xf32>
    %418 = arith.addf %417, %1 : vector<32x32xf32>
    %cst_109 = arith.constant dense<0xFF800000> : vector<32xf32>
    %419 = vector.multi_reduction <maximumf>, %418, %cst_109 [1] : vector<32x32xf32> to vector<32xf32>
    %420 = vector.shape_cast %419 : vector<32xf32> to vector<32x1xf32>
    %421 = vector.broadcast %420 : vector<32x1xf32> to vector<32x32xf32>
    %422 = arith.subf %418, %421 : vector<32x32xf32>
    %423 = arith.truncf %422 : vector<32x32xf32> to vector<32x32xbf16>
    %424 = math.exp %423 : vector<32x32xbf16>
    %425 = arith.extf %424 : vector<32x32xbf16> to vector<32x32xf32>
    %cst_110 = arith.constant dense<0.000000e+00> : vector<32xf32>
    %426 = vector.multi_reduction <add>, %425, %cst_110 [1] : vector<32x32xf32> to vector<32xf32>
    %427 = vector.shape_cast %426 : vector<32xf32> to vector<32x1xf32>
    %428 = tpu.reciprocal %427 {approx = true} : vector<32x1xf32> -> vector<32x1xf32>
    %429 = arith.truncf %428 : vector<32x1xf32> to vector<32x1xbf16>
    %430 = vector.broadcast %429 : vector<32x1xbf16> to vector<32x32xbf16>
    %431 = arith.mulf %424, %430 : vector<32x32xbf16>
    %432 = vector.extract_strided_slice %242 {offsets = [0, 48], sizes = [32, 8], strides = [1, 1]} : vector<32x64xbf16> to vector<32x8xbf16>
    %cst_111 = arith.constant dense<0.000000e+00> : vector<32x8xf32>
    %433 = tpu.matmul %431, %432, %cst_111 {dimension_numbers = #tpu.dot_dimension_numbers<[1], [0], [0], [1], [0, 0, 1, 1], [], []>} : vector<32x32xbf16>, vector<32x8xbf16>, vector<32x8xf32> -> vector<32x8xf32>
    %c0_112 = arith.constant 0 : index
    %c48_113 = arith.constant 48 : index
    %434 = vector.load %arg7[%c0_112, %c48_113] : memref<32x64xf32, #tpu.memory_space<vmem>>, vector<32x8xf32>
    tpu.vector_store %arg7[%c0_112, %c48_113], %433 {strides = array<i32>} : memref<32x64xf32, #tpu.memory_space<vmem>>, vector<32x8xf32>,
    %435 = vector.extract_strided_slice %243 {offsets = [0, 15], sizes = [32, 1], strides = [1, 1]} : vector<32x16xf32> to vector<32x1xf32>
    %436 = vector.extract_strided_slice %245 {offsets = [7, 0], sizes = [1, 32], strides = [1, 1]} : vector<8x32xf32> to vector<1x32xf32>
    %437 = vector.broadcast %435 : vector<32x1xf32> to vector<32x32xf32>
    %438 = vector.broadcast %436 : vector<1x32xf32> to vector<32x32xf32>
    %439 = arith.addf %437, %438 : vector<32x32xf32>
    %cst_114 = arith.constant 0.000000e+00 : f32
    %440 = vector.broadcast %cst_114 : f32 to vector<32x32xf32>
    %441 = arith.cmpf ogt, %439, %440 : vector<32x32xf32>
    %cst_115 = arith.constant 2.000000e-01 : f32
    %442 = vector.broadcast %cst_115 : f32 to vector<32x32xf32>
    %443 = arith.mulf %442, %439 : vector<32x32xf32>
    %444 = arith.select %441, %439, %443 : vector<32x32xi1>, vector<32x32xf32>
    %445 = arith.addf %444, %1 : vector<32x32xf32>
    %cst_116 = arith.constant dense<0xFF800000> : vector<32xf32>
    %446 = vector.multi_reduction <maximumf>, %445, %cst_116 [1] : vector<32x32xf32> to vector<32xf32>
    %447 = vector.shape_cast %446 : vector<32xf32> to vector<32x1xf32>
    %448 = vector.broadcast %447 : vector<32x1xf32> to vector<32x32xf32>
    %449 = arith.subf %445, %448 : vector<32x32xf32>
    %450 = arith.truncf %449 : vector<32x32xf32> to vector<32x32xbf16>
    %451 = math.exp %450 : vector<32x32xbf16>
    %452 = arith.extf %451 : vector<32x32xbf16> to vector<32x32xf32>
    %cst_117 = arith.constant dense<0.000000e+00> : vector<32xf32>
    %453 = vector.multi_reduction <add>, %452, %cst_117 [1] : vector<32x32xf32> to vector<32xf32>
    %454 = vector.shape_cast %453 : vector<32xf32> to vector<32x1xf32>
    %455 = tpu.reciprocal %454 {approx = true} : vector<32x1xf32> -> vector<32x1xf32>
    %456 = arith.truncf %455 : vector<32x1xf32> to vector<32x1xbf16>
    %457 = vector.broadcast %456 : vector<32x1xbf16> to vector<32x32xbf16>
    %458 = arith.mulf %451, %457 : vector<32x32xbf16>
    %459 = vector.extract_strided_slice %242 {offsets = [0, 56], sizes = [32, 8], strides = [1, 1]} : vector<32x64xbf16> to vector<32x8xbf16>
    %cst_118 = arith.constant dense<0.000000e+00> : vector<32x8xf32>
    %460 = tpu.matmul %458, %459, %cst_118 {dimension_numbers = #tpu.dot_dimension_numbers<[1], [0], [0], [1], [0, 0, 1, 1], [], []>} : vector<32x32xbf16>, vector<32x8xbf16>, vector<32x8xf32> -> vector<32x8xf32>
    %c0_119 = arith.constant 0 : index
    %c56_120 = arith.constant 56 : index
    %461 = vector.load %arg7[%c0_119, %c56_120] : memref<32x64xf32, #tpu.memory_space<vmem>>, vector<32x8xf32>
    tpu.vector_store %arg7[%c0_119, %c56_120], %460 {strides = array<i32>} : memref<32x64xf32, #tpu.memory_space<vmem>>, vector<32x8xf32>,
    %c0_121 = arith.constant 0 : index
    %c0_122 = arith.constant 0 : index
    %462 = vector.load %arg7[%c0_121, %c0_122] : memref<32x64xf32, #tpu.memory_space<vmem>>, vector<32x64xf32>
    %cst_123 = arith.constant 0.000000e+00 : f32
    %463 = vector.broadcast %cst_123 : f32 to vector<32x64xf32>
    %464 = arith.cmpf ogt, %462, %463 : vector<32x64xf32>
    %465 = math.exp %462 : vector<32x64xf32>
    %cst_124 = arith.constant 1.000000e+00 : f32
    %466 = vector.broadcast %cst_124 : f32 to vector<32x64xf32>
    %467 = arith.subf %465, %466 : vector<32x64xf32>
    %468 = arith.select %464, %462, %467 : vector<32x64xi1>, vector<32x64xf32>
    %cst_125 = arith.constant 0.000000e+00 : f32
    %469 = vector.broadcast %cst_125 : f32 to vector<32x64xf32>
    %470 = arith.cmpf ogt, %468, %469 : vector<32x64xf32>
    %471 = math.exp %468 : vector<32x64xf32>
    %cst_126 = arith.constant 1.000000e+00 : f32
    %472 = vector.broadcast %cst_126 : f32 to vector<32x64xf32>
    %473 = arith.subf %471, %472 : vector<32x64xf32>
    %474 = arith.select %470, %468, %473 : vector<32x64xi1>, vector<32x64xf32>
    %475 = arith.truncf %474 : vector<32x64xf32> to vector<32x64xbf16>
    %c0_127 = arith.constant 0 : index
    %c0_128 = arith.constant 0 : index
    %476 = vector.load %arg4[%c0_127, %c0_128] : memref<64x3xf32, #tpu.memory_space<vmem>>, vector<64x3xf32>
    %477 = arith.truncf %476 : vector<64x3xf32> to vector<64x3xbf16>
    %cst_129 = arith.constant dense<0.000000e+00> : vector<32x3xf32>
    %478 = tpu.matmul %475, %477, %cst_129 {dimension_numbers = #tpu.dot_dimension_numbers<[1], [0], [0], [1], [0, 0, 1, 1], [], []>} : vector<32x64xbf16>, vector<64x3xbf16>, vector<32x3xf32> -> vector<32x3xf32>
    %479 = vector.extract_strided_slice %478 {offsets = [0, 0], sizes = [32, 1], strides = [1, 1]} : vector<32x3xf32> to vector<32x1xf32>
    %480 = vector.extract_strided_slice %478 {offsets = [0, 1], sizes = [32, 1], strides = [1, 1]} : vector<32x3xf32> to vector<32x1xf32>
    %481 = vector.extract_strided_slice %478 {offsets = [0, 2], sizes = [32, 1], strides = [1, 1]} : vector<32x3xf32> to vector<32x1xf32>
    %482 = tpu.transpose %480, [1, 0] : vector<32x1xf32> -> vector<1x32xf32>
    %483 = vector.broadcast %481 : vector<32x1xf32> to vector<32x32xf32>
    %484 = vector.broadcast %482 : vector<1x32xf32> to vector<32x32xf32>
    %485 = arith.addf %483, %484 : vector<32x32xf32>
    %cst_130 = arith.constant 0.000000e+00 : f32
    %486 = vector.broadcast %cst_130 : f32 to vector<32x32xf32>
    %487 = arith.cmpf ogt, %485, %486 : vector<32x32xf32>
    %cst_131 = arith.constant 2.000000e-01 : f32
    %488 = vector.broadcast %cst_131 : f32 to vector<32x32xf32>
    %489 = arith.mulf %488, %485 : vector<32x32xf32>
    %490 = arith.select %487, %485, %489 : vector<32x32xi1>, vector<32x32xf32>
    %491 = arith.addf %490, %1 : vector<32x32xf32>
    %cst_132 = arith.constant dense<0xFF800000> : vector<32xf32>
    %492 = vector.multi_reduction <maximumf>, %491, %cst_132 [1] : vector<32x32xf32> to vector<32xf32>
    %493 = vector.shape_cast %492 : vector<32xf32> to vector<32x1xf32>
    %494 = vector.broadcast %493 : vector<32x1xf32> to vector<32x32xf32>
    %495 = arith.subf %491, %494 : vector<32x32xf32>
    %496 = arith.truncf %495 : vector<32x32xf32> to vector<32x32xbf16>
    %497 = math.exp %496 : vector<32x32xbf16>
    %498 = arith.extf %497 : vector<32x32xbf16> to vector<32x32xf32>
    %cst_133 = arith.constant dense<0.000000e+00> : vector<32xf32>
    %499 = vector.multi_reduction <add>, %498, %cst_133 [1] : vector<32x32xf32> to vector<32xf32>
    %500 = vector.shape_cast %499 : vector<32xf32> to vector<32x1xf32>
    %501 = tpu.reciprocal %500 {approx = true} : vector<32x1xf32> -> vector<32x1xf32>
    %502 = arith.truncf %501 : vector<32x1xf32> to vector<32x1xbf16>
    %503 = vector.broadcast %502 : vector<32x1xbf16> to vector<32x32xbf16>
    %504 = arith.mulf %497, %503 : vector<32x32xbf16>
    %505 = arith.truncf %479 : vector<32x1xf32> to vector<32x1xbf16>
    %cst_134 = arith.constant dense<0.000000e+00> : vector<32x1xf32>
    %506 = tpu.matmul %504, %505, %cst_134 {dimension_numbers = #tpu.dot_dimension_numbers<[1], [0], [0], [1], [0, 0, 1, 1], [], []>} : vector<32x32xbf16>, vector<32x1xbf16>, vector<32x1xf32> -> vector<32x1xf32>
    %507 = vector.shape_cast %506 : vector<32x1xf32> to vector<32x1xf32>
    %508 = vector.broadcast %507 : vector<32x1xf32> to vector<32x128xf32>
    %c0_135 = arith.constant 0 : index
    %c0_136 = arith.constant 0 : index
    %509 = vector.load %arg6[%c0_135, %c0_136] : memref<32x128xf32, #tpu.memory_space<vmem>>, vector<32x128xf32>
    tpu.vector_store %arg6[%c0_135, %c0_136], %508 {strides = array<i32>} : memref<32x128xf32, #tpu.memory_space<vmem>>, vector<32x128xf32>,
    return
  }
}

</mosaic_0001>

<bundles_post_ra>
// kernel: gat_forward.1
= control target key start
LH: loop header
LB: loop body
LE: loop exit
PB: predicated region body
PF: predicated region fallthrough
CT: control target
= control target key end

     0   :  { %vm53_vm0 = vcmask 130048   ;;  %v5664_v21 = vmov 14   ;;  %v5662_v22 = vmov 8   ;;  %vm111_vm1 = vcmask 523264   ;;  %s4093_s26 = smov 112   ;;  %s4094_s27 = smov 104   ;;  %s5650_s2 = inlined_call_operand.vmem [shape: f32[16,64], index: 2, kind: input, shape index: {}]   ;;  %s5651_s0 = inlined_call_operand.vmem [shape: f32[32,16], index: 0, kind: input, shape index: {}]   ;;  %s5652_s5 = inlined_call_operand.vmem [shape: f32[64,32], index: 5, kind: input, shape index: {}]   ;;  %s5653_s1 = inlined_call_operand.vmem [shape: bf16[32,32], index: 1, kind: input, shape index: {}]   ;;  %s5654_s3 = inlined_call_operand.vmem [shape: f32[64,64], index: 3, kind: input, shape index: {}]   ;;  %s5655_s4 = inlined_call_operand.vmem [shape: f32[64,3], index: 4, kind: input, shape index: {}]   ;;  %s5656_s6 = inlined_call_operand.vmem [shape: f32[32,128], index: 6, kind: output, shape index: {}]  }
   0x1   :  { %v50_v0 = vld [vmem:[%s5650_s2] sm:$0xff]  ;;  %v51_v1 = vld [vmem:[%s5650_s2 + $0x8] sm:$0xff]  ;;  %v46_v5 = vld [vmem:[%s5651_s0 + $0x10] sm:$0xff]  ;;  %3794 = vset.pattern.permute.xlu0 %v5664_v21  ;;  %3788 = vset.pattern.permute.xlu1 %v5662_v22  ;;  %v5670_v30 = vmov 15   ;;  %v5678_v31 = vmov 9   ;;  %v5674_v33 = vmov 10   ;;  %v219_v59 = vlaneseq }
   0x2   :  { %v44_v2 = vld [vmem:[%s5651_s0] sm:$0xff]  ;;  %v52_v3 = vpack.c.bf16 %v51_v1, %v50_v0  ;;  %v45_v4 = vld [vmem:[%s5651_s0 + $0x8] sm:$0xff]  ;;  %v47_v6 = vld [vmem:[%s5651_s0 + $0x18] sm:$0xff]  ;;  %v5676_v34 = vmov 11   ;;  %v5668_v35 = vmov 12   ;;  %v5672_v36 = vmov 13  }
   0x3   :  { %v48_v7 = vpack.c.bf16 %v45_v4, %v44_v2  ;;  %v38_v8 = vld [vmem:[%s5652_s5 + $0x30] sm:$0xff]  ;;  %v39_v9 = vld [vmem:[%s5652_s5 + $0x38] sm:$0xff]  ;;  %v36_v10 = vld [vmem:[%s5652_s5 + $0x20] sm:$0xff]  ;;  %v49_v11 = vpack.c.bf16 %v47_v6, %v46_v5  ;;  %v4302_v62 = vshrl.u32 %v219_v59, 7  ;;  %vm243_vm2 = vcmask 261120   ;;  %s4095_s28 = smov 96  }
   0x4   :  { %3572 = vmatprep.subr.bf16.mxu0 %v52_v3  ;;  %v4171_v12 = vpack.c.bf16 %v39_v9, %v38_v8  ;;  %v37_v13 = vld [vmem:[%s5652_s5 + $0x28] sm:$0xff]  ;;  %v34_v15 = vld [vmem:[%s5652_s5 + $0x10] sm:$0xff]  ;;  %v35_v16 = vld [vmem:[%s5652_s5 + $0x18] sm:$0xff]  ;;  %s4096_s29 = smov 88   ;;  %s4097_s30 = smov 80  }
   0x5   :  { %3573 = vmatpush3.bf16.msra.mxu0 %v52_v3  ;;  %3574 = vmatprep.mubr.msk.bf16.mxu0 %vm53_vm0, %v48_v7  ;;  %v4177_v14 = vpack.c.bf16 %v37_v13, %v36_v10  ;;  %v4190_v17 = vpack.c.bf16 %v35_v16, %v34_v15  ;;  %v32_v18 = vld [vmem:[%s5652_s5] sm:$0xff]  ;;  %v33_v19 = vld [vmem:[%s5652_s5 + $0x8] sm:$0xff]  ;;  %5711 = vst [vmem:[#allocation7_spill] sm:$0xff] %v4302_v62  ;;  %v5659_v1 = vsub.s32 1, %v4302_v62  ;;  %v4311_v2 = vsub.s32 0, %v4302_v62  ;;  %s4098_s7 = smov 72  }
   0x6   :  { %5707 = vst [vmem:[#allocation3_spill] sm:$0xff] %v4171_v12  ;;  %3578 = vmatprep.subr.bf16.mxu1 %v4171_v12  ;;  %v4200_v20 = vpack.c.bf16 %v33_v19, %v32_v18  ;;  %v3476_v0 = vld [vmem:[%s5653_s1 + $0x8] sm:$0xff]   ;;  %v5658_v3 = vsub.s32 2, %v4302_v62  ;;  %v5657_v4 = vsub.s32 3, %v4302_v62  ;;  %v5661_v6 = vsub.s32 4, %v4302_v62  ;;  %s4099_s8 = smov 16  }
   0x7   :  { %5708 = vst [vmem:[#allocation4_spill] sm:$0xff] %v4177_v14  ;;  %3579 = vmatpush3.bf16.msra.mxu1 %v4171_v12  ;;  %5709 = vst [vmem:[#allocation5_spill] sm:$0xff] %v4190_v17  ;;  %v5660_v7 = vsub.s32 5, %v4302_v62  ;;  %v4317_v9 = vunpack.c.h.bf16 %v3476_v0  ;;  %v4319_v10 = vunpack.c.l.bf16 %v3476_v0  ;;  %s4100_s2 = smov 8   ;;  %s4101_s9 = smov 32  }
   0x8   :  { %3575 = vmatmul.mubr.msk.bf16.vlgmr.msra.gmra.mxu0 %vm53_vm0, %v49_v11  ;;  %3580 = vmatprep.subr.bf16.mxu1 %v4177_v14  ;;  %5710 = vst [vmem:[#allocation6_spill] sm:$0xff] %v4200_v20  ;;  %5712 = vst [vmem:[#allocation8_spill] sm:$0xff] %v4311_v2  ;;  %s4102_s10 = smov 24   ;;  %s4103_s11 = smov 48  }
   0x9   :  { %5713 = vst [vmem:[#allocation9_spill] sm:$0xff] %v4317_v9  ;;  %5714 = vst [vmem:[#allocation10_spill] sm:$0xff] %v4319_v10  ;;  %s4104_s12 = smov 40   ;;  %s4105_s23 = smov 56  }
   0xb   :  { %3581 = vmatpush3.bf16.msra.mxu1 %v4177_v14 }
   0xc   :  { %3582 = vmatprep.subr.bf16.mxu1 %v4190_v17 }
   0xf   :  { %3583 = vmatpush3.bf16.msra.mxu1 %v4190_v17 }
  0x10   :  { %3584 = vmatprep.subr.bf16.mxu1 %v4200_v20 }
  0x13   :  { %3585 = vmatpush3.bf16.msra.mxu1 %v4200_v20 }
  0xc8   :  { %v3576_v23 = vpop.f32.mrf.mxu0 }
  0xca   :  { %v94_v24 = vpop.f32.mrf.mxu0 }
  0xcc   :  { %v3577_v25 = vpop.f32.mrf.mxu0 }
  0xcd   :  { %v4206_v26 = vpack.c.bf16 %v3577_v25, %v3576_v23  ;;  %v5667_v23 = vsub.s32 6, %v4302_v62 }
  0xce   :  { %v97_v27 = vpop.f32.mrf.mxu0 }
  0xcf   :  { %v4208_v28 = vpack.c.bf16 %v97_v27, %v94_v24  ;;  %3590 = vmatprep.subr.bf16.mxu0 %v4206_v26  ;;  %v5666_v24 = vsub.s32 7, %v4302_v62 }
  0xd0   :  { %3591 = vmatpush3.bf16.msra.mxu0 %v4206_v26 }
  0xd1   :  { %3586 = vmatprep.mubr.msk.bf16.mxu1 %vm111_vm1, %v4208_v28  ;;  %3592 = vmatprep.subr.bf16.mxu0 %v4208_v28 }
  0xd2   :  { %3587 = vmatmul.mubr.msk.bf16.vlgmr.msra.gmra.mxu1 %vm111_vm1, %v4206_v26 }
  0xd4   :  { %3593 = vmatpush3.bf16.msra.mxu0 %v4208_v28 }
 0x192   :  { %v4218_v29 = vpop.f32.mrf.mxu1 }
 0x193   :  { %1213 = vperm.xlu0 %3794, %v4218_v29   ;;  %211 = vperm.xlu1 %3788, %v4218_v29  }
 0x194   :  { %v4226_v32 = vpop.f32.mrf.mxu1 }
 0x196   :  { %v3589_v37 = vpop.f32.mrf.mxu1 }
 0x197   :  { %3795 = vset.pattern.permute.xlu0 %v5670_v30  ;;  %3789 = vset.pattern.permute.xlu1 %v5678_v31 }
 0x198   :  { %1383 = vperm.xlu0 %3795, %v4218_v29   ;;  %361 = vperm.xlu1 %3789, %v4218_v29   ;;  %v155_v38 = vpop.f32.mrf.mxu1 }
 0x19c   :  { %3796 = vset.pattern.permute.xlu0 %v5662_v22  ;;  %3790 = vset.pattern.permute.xlu1 %v5674_v33 }
 0x19d   :  { %533 = vperm.xlu1 %3790, %v4218_v29   ;;  %201 = vperm.xlu0 %3796, %v4226_v32  }
 0x1a1   :  { %3791 = vset.pattern.permute.xlu1 %v5676_v34  ;;  %3797 = vset.pattern.permute.xlu0 %v5678_v31 }
 0x1a2   :  { %703 = vperm.xlu1 %3791, %v4218_v29   ;;  %353 = vperm.xlu0 %3797, %v4226_v32  }
 0x1a6   :  { %3792 = vset.pattern.permute.xlu1 %v5668_v35  ;;  %3799 = vset.pattern.permute.xlu0 %v5676_v34 }
 0x1a7   :  { %873 = vperm.xlu1 %3792, %v4218_v29   ;;  %695 = vperm.xlu0 %3799, %v4226_v32  }
 0x1ab   :  { %3793 = vset.pattern.permute.xlu1 %v5672_v36  ;;  %3801 = vset.pattern.permute.xlu0 %v5672_v36 }
 0x1ac   :  { %1043 = vperm.xlu1 %3793, %v4218_v29   ;;  %1035 = vperm.xlu0 %3801, %v4226_v32  }
 0x1b0   :  { %3798 = vset.pattern.permute.xlu1 %v5674_v33  ;;  %3802 = vset.pattern.permute.xlu0 %v5664_v21 }
 0x1b1   :  { %525 = vperm.xlu1 %3798, %v4226_v32   ;;  %1205 = vperm.xlu0 %3802, %v4226_v32  }
 0x1b5   :  { %3800 = vset.pattern.permute.xlu1 %v5668_v35  ;;  %3803 = vset.pattern.permute.xlu0 %v5670_v30 }
 0x1b6   :  { %865 = vperm.xlu1 %3800, %v4226_v32   ;;  %1375 = vperm.xlu0 %3803, %v4226_v32  }
 0x1ba   :  { %3804 = vset.pattern.permute.xlu1 %v5662_v22  ;;  %3805 = vset.pattern.permute.xlu0 %v5678_v31 }
 0x1bb   :  { %365 = vperm.xlu0 %3805, %v3589_v37   ;;  %216 = vperm.xlu1 %3804, %v3589_v37  }
 0x1bf   :  { %3807 = vset.pattern.permute.xlu0 %v5676_v34  ;;  %3806 = vset.pattern.permute.xlu1 %v5674_v33 }
 0x1c0   :  { %707 = vperm.xlu0 %3807, %v3589_v37   ;;  %537 = vperm.xlu1 %3806, %v3589_v37  }
 0x1c4   :  { %3809 = vset.pattern.permute.xlu0 %v5672_v36  ;;  %3808 = vset.pattern.permute.xlu1 %v5668_v35 }
 0x1c5   :  { %1047 = vperm.xlu0 %3809, %v3589_v37   ;;  %877 = vperm.xlu1 %3808, %v3589_v37  }
 0x1c9   :  { %3810 = vset.pattern.permute.xlu0 %v5664_v21  ;;  %3813 = vset.pattern.permute.xlu1 %v5678_v31 }
 0x1ca   :  { %1217 = vperm.xlu0 %3810, %v3589_v37   ;;  %357 = vperm.xlu1 %3813, %v155_v38  }
 0x1ce   :  { %3811 = vset.pattern.permute.xlu0 %v5670_v30  ;;  %3815 = vset.pattern.permute.xlu1 %v5676_v34 }
 0x1cf   :  { %1387 = vperm.xlu0 %3811, %v3589_v37   ;;  %699 = vperm.xlu1 %3815, %v155_v38  }
 0x1d3   :  { %3812 = vset.pattern.permute.xlu0 %v5662_v22  ;;  %3817 = vset.pattern.permute.xlu1 %v5672_v36 }
 0x1d4   :  { %1039 = vperm.xlu1 %3817, %v155_v38   ;;  %206 = vperm.xlu0 %3812, %v155_v38  }
 0x1d8   :  { %3814 = vset.pattern.permute.xlu0 %v5674_v33 }
 0x1d9   :  { %529 = vperm.xlu0 %3814, %v155_v38  }
 0x1dd   :  { %3816 = vset.pattern.permute.xlu0 %v5668_v35 }
 0x1de   :  { %869 = vperm.xlu0 %3816, %v155_v38  }
 0x1e2   :  { %3818 = vset.pattern.permute.xlu0 %v5664_v21 }
 0x1e3   :  { %1209 = vperm.xlu0 %3818, %v155_v38  }
 0x1e7   :  { %3819 = vset.pattern.permute.xlu0 %v5670_v30 }
 0x1e8   :  { %1379 = vperm.xlu0 %3819, %v155_v38  }
 0x1ec   :  { %3829 = vset.pattern.permute.xlu0 %v5678_v31 }
 0x1fd   :  { %167 = vxpose.xlu1.b32.start [1/4] (short) (narrow) %v4226_v32, 8 }
 0x201   :  { %168 = vxpose.xlu1.b32.cont [2/4] (short) (narrow) %v155_v38, 8 }
 0x205   :  { %169 = vxpose.xlu1.b32.cont [3/4] (short) (narrow) %v4218_v29, 8 }
 0x209   :  { %170 = vxpose.xlu1.b32.end [4/4] (short) (narrow) %v3589_v37, 8 }
 0x20e   :  { %v212_v39 = vpop.permute.xlu1 %211  ;;  %v4274_v44 = vpop.permute.xlu0 %1213 }
 0x213   :  { %v362_v40 = vpop.permute.xlu1 %361  ;;  %v4278_v46 = vpop.permute.xlu0 %1383 }
 0x218   :  { %v534_v41 = vpop.permute.xlu1 %533  ;;  %v4282_v48 = vpop.permute.xlu0 %201 }
 0x21d   :  { %v704_v42 = vpop.permute.xlu1 %703  ;;  %v4286_v50 = vpop.permute.xlu0 %353 }
 0x222   :  { %v4272_v43 = vpop.permute.xlu1 %873  ;;  %v4290_v52 = vpop.permute.xlu0 %695 }
 0x227   :  { %3820 = vset.pattern.permute.xlu1 %v5662_v22  ;;  %v4276_v45 = vpop.permute.xlu1 %1043  ;;  %v4292_v54 = vpop.permute.xlu0 %1035 }
 0x22c   :  { %v4280_v47 = vpop.permute.xlu1 %525  ;;  %v4294_v56 = vpop.permute.xlu0 %1205 }
 0x231   :  { %v4284_v49 = vpop.permute.xlu1 %865  ;;  %v4298_v58 = vpop.permute.xlu0 %1375 }
 0x236   :  { %v4288_v51 = vpop.permute.xlu1 %216  ;;  %v366_v61 = vpop.permute.xlu0 %365 }
 0x23b   :  { %v538_v53 = vpop.permute.xlu1 %537  ;;  %v708_v5 = vpop.permute.xlu0 %707 }
 0x240   :  { %v878_v55 = vpop.permute.xlu1 %877  ;;  %v1048_v37 = vpop.permute.xlu0 %1047 }
 0x245   :  { %v4296_v57 = vpop.permute.xlu1 %357 }
 0x24a   :  { %v4300_v60 = vpop.permute.xlu1 %699 }
 0x24f   :  { %v4304_v63 = vpop.permute.xlu1 %1039 }
 0x279   :  { %v183_v8 = vpop.trf.xlu1 }
 0x27a   :  { %v4323_v11 = vrot.slane %v183_v8, %v5659_v1  ;;  %v4326_v13 = vrot.slane %v183_v8, %v4311_v2  ;;  %v4330_v15 = vrot.slane %v183_v8, %v5658_v3  ;;  %v4334_v16 = vrot.slane %v183_v8, %v5657_v4 }
 0x27b   :  { %v4338_v18 = vrot.slane %v183_v8, %v5661_v6  ;;  %v4342_v19 = vrot.slane %v183_v8, %v5660_v7 }
 0x27c   :  { %v375_v25 = vadd.f32 %v4323_v11, %v366_v61  ;;  %v225_v27 = vadd.f32 %v4326_v13, %v212_v39  ;;  %v547_v29 = vadd.f32 %v4330_v15, %v538_v53  ;;  %v374_v32 = vadd.f32 %v4323_v11, %v362_v40 }
 0x27d   :  { %v717_v38 = vadd.f32 %v4334_v16, %v708_v5  ;;  %v546_v59 = vadd.f32 %v4330_v15, %v534_v41  ;;  %v887_v0 = vadd.f32 %v4338_v18, %v878_v55  ;;  %v716_v4 = vadd.f32 %v4334_v16, %v704_v42 }
 0x27e   :  { %vm379_vm3 = vcmp.gt.f32.partialorder %v375_v25, 0.0  ;;  %v383_v3 = vmul.f32 0.2, %v375_v25  ;;  %vm229_vm4 = vcmp.gt.f32.partialorder %v225_v27, 0.0  ;;  %v233_v1 = vmul.f32 0.2, %v225_v27 }
 0x27f   :  { %vm551_vm5 = vcmp.gt.f32.partialorder %v547_v29, 0.0  ;;  %v555_v61 = vmul.f32 0.2, %v547_v29  ;;  %vm378_vm6 = vcmp.gt.f32.partialorder %v374_v32, 0.0  ;;  %v382_v39 = vmul.f32 0.2, %v374_v32 }
 0x280   :  { %v387_v53 = vsel %vm379_vm3, %v375_v25, %v383_v3  ;;  %v237_v7 = vsel %vm229_vm4, %v225_v27, %v233_v1  ;;  %vm721_vm7 = vcmp.gt.f32.partialorder %v717_v38, 0.0  ;;  %v725_v40 = vmul.f32 0.2, %v717_v38  ;;  %v1218_v3 = vpop.permute.xlu0 %1217 }
 0x281   :  { %v4355_v5 = vadd.f32 %v4317_v9, %v387_v53  ;;  %v4358_v41 = vadd.f32 %v4319_v10, %v237_v7  ;;  %v559_v55 = vsel %vm551_vm5, %v547_v29, %v555_v61  ;;  %v386_v42 = vsel %vm378_vm6, %v374_v32, %v382_v39 }
 0x282   :  { %v4361_v6 = vadd.f32 %v4317_v9, %v559_v55  ;;  %v4364_v22 = vadd.f32 %v4319_v10, %v386_v42  ;;  %v729_v21 = vsel %vm721_vm7, %v717_v38, %v725_v40  ;;  %vm550_vm8 = vcmp.gt.f32.partialorder %v546_v59, 0.0 }
 0x283   :  { %v401_v1 = vsel %vm243_vm2, %v4355_v5, -inf  ;;  %v250_v25 = vsel %vm243_vm2, %v4358_v41, -inf  ;;  %v554_v27 = vmul.f32 0.2, %v546_v59  ;;  %v4372_v7 = vrot.slane %v183_v8, %v5667_v23 }
 0x284   :  { %402 = vmax.xlane.f32.xlu1 %v401_v1  ;;  %251 = vmax.xlane.f32.xlu0 %v250_v25  ;;  %v4375_v29 = vadd.f32 %v4317_v9, %v729_v21  ;;  %vm891_vm9 = vcmp.gt.f32.partialorder %v887_v0, 0.0  ;;  %v895_v32 = vmul.f32 0.2, %v887_v0  ;;  %v4379_v38 = vrot.slane %v183_v8, %v5666_v24  ;;  %v1388_v24 = vpop.permute.xlu0 %1387 }
 0x285   :  { %v573_v61 = vsel %vm243_vm2, %v4361_v6, -inf  ;;  %v558_v39 = vsel %vm550_vm8, %v546_v59, %v554_v27  ;;  %vm720_vm10 = vcmp.gt.f32.partialorder %v716_v4, 0.0  ;;  %v724_v53 = vmul.f32 0.2, %v716_v4 }
 0x286   :  { %v398_v40 = vsel %vm243_vm2, %v4364_v22, -inf  ;;  %v4386_v55 = vadd.f32 %v4319_v10, %v558_v39  ;;  %v1057_v21 = vadd.f32 %v4342_v19, %v1048_v37  ;;  %v886_v42 = vadd.f32 %v4338_v18, %v4272_v43 }
 0x287   :  { %v899_v1 = vsel %vm891_vm9, %v887_v0, %v895_v32  ;;  %v728_v8 = vsel %vm720_vm10, %v716_v4, %v724_v53  ;;  %v1227_v25 = vadd.f32 %v4372_v7, %v1218_v3  ;;  %v1056_v59 = vadd.f32 %v4342_v19, %v4276_v45 }
 0x288   :  { %574 = vmax.xlane.f32.xlu1 %v573_v61  ;;  %399 = vmax.xlane.f32.xlu0 %v398_v40  ;;  %vm1061_vm11 = vcmp.gt.f32.partialorder %v1057_v21, 0.0  ;;  %v1065_v27 = vmul.f32 0.2, %v1057_v21  ;;  %vm890_vm12 = vcmp.gt.f32.partialorder %v886_v42, 0.0  ;;  %v894_v39 = vmul.f32 0.2, %v886_v42 }
 0x289   :  { %v743_v37 = vsel %vm243_vm2, %v4375_v29, -inf  ;;  %v570_v43 = vsel %vm243_vm2, %v4386_v55, -inf  ;;  %v4399_v4 = vadd.f32 %v4317_v9, %v899_v1  ;;  %v4402_v0 = vadd.f32 %v4319_v10, %v728_v8 }
 0x28a   :  { %v1069_v45 = vsel %vm1061_vm11, %v1057_v21, %v1065_v27  ;;  %v1235_v3 = vmul.f32 0.2, %v1227_v25  ;;  %v1064_v32 = vmul.f32 0.2, %v1056_v59  ;;  %v1397_v61 = vadd.f32 %v4379_v38, %v1388_v24  ;;  %v207_v27 = vpop.permute.xlu0 %206 }
 0x28b   :  { %v898_v53 = vsel %vm890_vm12, %v886_v42, %v894_v39  ;;  %vm1231_vm13 = vcmp.gt.f32.partialorder %v1227_v25, 0.0  ;;  %vm1060_vm14 = vcmp.gt.f32.partialorder %v1056_v59, 0.0  ;;  %v1226_v40 = vadd.f32 %v4372_v7, %v4274_v44 }
 0x28c   :  { %744 = vmax.xlane.f32.xlu1 %v743_v37  ;;  %571 = vmax.xlane.f32.xlu0 %v570_v43  ;;  %v913_v1 = vsel %vm243_vm2, %v4399_v4, -inf  ;;  %v740_v8 = vsel %vm243_vm2, %v4402_v0, -inf  ;;  %v4412_v21 = vadd.f32 %v4317_v9, %v1069_v45  ;;  %v4415_v24 = vadd.f32 %v4319_v10, %v898_v53 }
 0x28d   :  { %v1239_v37 = vsel %vm1231_vm13, %v1227_v25, %v1235_v3  ;;  %v1068_v42 = vsel %vm1060_vm14, %v1056_v59, %v1064_v32  ;;  %v1405_v39 = vmul.f32 0.2, %v1397_v61  ;;  %vm1401_vm15 = vcmp.gt.f32.partialorder %v1397_v61, 0.0 }
 0x28e   :  { %v1234_v44 = vmul.f32 0.2, %v1226_v40  ;;  %v1396_v43 = vadd.f32 %v4379_v38, %v4278_v46  ;;  %v224_v23 = vadd.f32 %v4326_v13, %v207_v27  ;;  %vm1230_vm0 = vcmp.gt.f32.partialorder %v1226_v40, 0.0  ;;  %v3469_v46 = vld [vmem:[%s5653_s1] sm:$0xff]   ;;  %s4092_s1 = smov 120  }
 0x28f   :  { %v1083_v45 = vsel %vm243_vm2, %v4412_v21, -inf  ;;  %v910_v53 = vsel %vm243_vm2, %v4415_v24, -inf  ;;  %v4425_v25 = vadd.f32 %v4317_v9, %v1239_v37  ;;  %v4428_v59 = vadd.f32 %v4319_v10, %v1068_v42 }
 0x290   :  { %914 = vmax.xlane.f32.xlu1 %v913_v1  ;;  %741 = vmax.xlane.f32.xlu0 %v740_v8  ;;  %v1409_v3 = vsel %vm1401_vm15, %v1397_v61, %v1405_v39  ;;  %v1238_v32 = vsel %vm1230_vm0, %v1226_v40, %v1234_v44  ;;  %v1404_v1 = vmul.f32 0.2, %v1396_v43  ;;  %v232_v8 = vmul.f32 0.2, %v224_v23 }
 0x291   :  { %v223_v27 = vadd.f32 %v4326_v13, %v4282_v48  ;;  %vm1400_vm3 = vcmp.gt.f32.partialorder %v1396_v43, 0.0  ;;  %vm228_vm4 = vcmp.gt.f32.partialorder %v224_v23, 0.0  ;;  %v4435_v37 = vunpack.c.h.bf16 %v3469_v46 }
 0x292   :  { %v1253_v42 = vsel %vm243_vm2, %v4425_v25, -inf  ;;  %v1080_v61 = vsel %vm243_vm2, %v4428_v59, -inf  ;;  %v4442_v39 = vadd.f32 %v4317_v9, %v1409_v3  ;;  %v4445_v40 = vadd.f32 %v4319_v10, %v1238_v32 }
 0x293   :  { %5715 = vst [vmem:[#allocation11_spill] sm:$0xff] %v4435_v37  ;;  %v1408_v44 = vsel %vm1400_vm3, %v1396_v43, %v1404_v1  ;;  %v236_v48 = vsel %vm228_vm4, %v224_v23, %v232_v8  ;;  %vm227_vm5 = vcmp.gt.f32.partialorder %v223_v27, 0.0  ;;  %v4449_v35 = vunpack.c.l.bf16 %v3469_v46 }
 0x294   :  { %1084 = vmax.xlane.f32.xlu1 %v1083_v45  ;;  %911 = vmax.xlane.f32.xlu0 %v910_v53  ;;  %v231_v45 = vmul.f32 0.2, %v223_v27  ;;  %v372_v53 = vadd.f32 %v4323_v11, %v4286_v50  ;;  %v1423_v30 = vsel %vm243_vm2, %v4442_v39, -inf  ;;  %v1250_v3 = vsel %vm243_vm2, %v4445_v40, -inf }
 0x295   :  { %5716 = vst [vmem:[#allocation12_spill] sm:$0xff] %v4449_v35  ;;  %v4456_v32 = vadd.f32 %v4319_v10, %v1408_v44  ;;  %v544_v50 = vadd.f32 %v4330_v15, %v4280_v47 }
 0x296   :  { %v235_v23 = vsel %vm227_vm5, %v223_v27, %v231_v45  ;;  %v380_v43 = vmul.f32 0.2, %v372_v53  ;;  %vm376_vm6 = vcmp.gt.f32.partialorder %v372_v53, 0.0  ;;  %v714_v27 = vadd.f32 %v4334_v16, %v4290_v52 }
 0x297   :  { %v1420_v46 = vsel %vm243_vm2, %v4456_v32, -inf  ;;  %v4468_v8 = vadd.f32 %v4449_v35, %v235_v23  ;;  %vm548_vm7 = vcmp.gt.f32.partialorder %v544_v50, 0.0 }
 0x298   :  { %1254 = vmax.xlane.f32.xlu1 %v1253_v42  ;;  %1081 = vmax.xlane.f32.xlu0 %v1080_v61  ;;  %v4459_v42 = vadd.f32 %v4435_v37, %v236_v48  ;;  %v384_v61 = vsel %vm376_vm6, %v372_v53, %v380_v43  ;;  %v722_v45 = vmul.f32 0.2, %v714_v27  ;;  %vm718_vm8 = vcmp.gt.f32.partialorder %v714_v27, 0.0 }
 0x299   :  { %v244_v47 = vsel %vm243_vm2, %v4468_v8, -inf  ;;  %v4475_v44 = vadd.f32 %v4449_v35, %v384_v61 }
 0x29a   :  { %v247_v1 = vsel %vm243_vm2, %v4459_v42, -inf  ;;  %v726_v52 = vsel %vm718_vm8, %v714_v27, %v722_v45  ;;  %v1394_v45 = vadd.f32 %v4379_v38, %v4298_v58  ;;  %vm519_vm8 = vcmask 130112  }
 0x29b   :  { %v392_v53 = vsel %vm243_vm2, %v4475_v44, -inf }
 0x29c   :  { %1424 = vmax.xlane.f32.xlu1 %v1423_v30  ;;  %1251 = vmax.xlane.f32.xlu0 %v1250_v3  ;;  %v552_v30 = vmul.f32 0.2, %v544_v50  ;;  %v884_v3 = vadd.f32 %v4338_v18, %v4284_v49  ;;  %vm1398_vm12 = vcmp.gt.f32.partialorder %v1394_v45, 0.0 }
 0x29e   :  { %v556_v48 = vsel %vm548_vm7, %v544_v50, %v552_v30  ;;  %v892_v43 = vmul.f32 0.2, %v884_v3  ;;  %vm888_vm9 = vcmp.gt.f32.partialorder %v884_v3, 0.0  ;;  %v1224_v30 = vadd.f32 %v4372_v7, %v4294_v56 }
 0x29f   :  { %v4482_v23 = vadd.f32 %v4449_v35, %v556_v48  ;;  %vm347_vm7 = vcmask 64512  }
 0x2a0   :  { %1421 = vmax.xlane.f32.xlu0 %v1420_v46  ;;  %248 = vmax.xlane.f32.xlu1 %v247_v1  ;;  %v1054_v46 = vadd.f32 %v4342_v19, %v4292_v54  ;;  %v4489_v1 = vadd.f32 %v4449_v35, %v726_v52  ;;  %v896_v49 = vsel %vm888_vm9, %v884_v3, %v892_v43  ;;  %v1232_v48 = vmul.f32 0.2, %v1224_v30 }
 0x2a1   :  { %v564_v50 = vsel %vm243_vm2, %v4482_v23, -inf  ;;  %vm1228_vm11 = vcmp.gt.f32.partialorder %v1224_v30, 0.0  ;;  %v1402_v52 = vmul.f32 0.2, %v1394_v45  ;;  %v226_v43 = vadd.f32 %v4326_v13, %v4288_v51 }
 0x2a2   :  { %v1062_v61 = vmul.f32 0.2, %v1054_v46  ;;  %vm1058_vm10 = vcmp.gt.f32.partialorder %v1054_v46, 0.0  ;;  %v734_v27 = vsel %vm243_vm2, %v4489_v1, -inf  ;;  %vm689_vm9 = vcmask 195712  }
 0x2a3   :  { %vm230_vm13 = vcmp.gt.f32.partialorder %v226_v43, 0.0 }
 0x2a4   :  { %245 = vmax.xlane.f32.xlu0 %v244_v47  ;;  %v4496_v47 = vadd.f32 %v4449_v35, %v896_v49  ;;  %v1066_v54 = vsel %vm1058_vm10, %v1054_v46, %v1062_v61  ;;  %v234_v49 = vmul.f32 0.2, %v226_v43  ;;  %v373_v61 = vadd.f32 %v4323_v11, %v4296_v57 }
 0x2a5   :  { %v4505_v3 = vadd.f32 %v4449_v35, %v1066_v54  ;;  %vm859_vm10 = vcmask 261312  }
 0x2a6   :  { %v904_v56 = vsel %vm243_vm2, %v4496_v47, -inf  ;;  %vm377_vm14 = vcmp.gt.f32.partialorder %v373_v61, 0.0 }
 0x2a7   :  { %5717 = vst [vmem:[#allocation13_spill] sm:$0xff] %v4505_v3  ;;  %v1074_v58 = vsel %vm243_vm2, %v4505_v3, -inf }
 0x2a8   :  { %393 = vmax.xlane.f32.xlu0 %v392_v53  ;;  %v1236_v53 = vsel %vm1228_vm11, %v1224_v30, %v1232_v48  ;;  %v238_v30 = vsel %vm230_vm13, %v226_v43, %v234_v49  ;;  %vm1029_vm11 = vcmask 326912   ;;  %vm1369_vm13 = vcmask 458112  }
 0x2a9   :  { %v4514_v46 = vadd.f32 %v4449_v35, %v1236_v53  ;;  %v4528_v57 = vadd.f32 %v4317_v9, %v238_v30  ;;  %v530_v53 = vpop.permute.xlu0 %529 }
 0x2ab   :  { %5718 = vst [vmem:[#allocation14_spill] sm:$0xff] %v4514_v46  ;;  %v1244_v51 = vsel %vm243_vm2, %v4514_v46, -inf  ;;  %v253_v48 = vsel %vm243_vm2, %v4528_v57, -inf }
 0x2ac   :  { %565 = vmax.xlane.f32.xlu0 %v564_v50  ;;  %v1406_v50 = vsel %vm1398_vm12, %v1394_v45, %v1402_v52  ;;  %v545_v52 = vadd.f32 %v4330_v15, %v530_v53  ;;  %vm1199_vm12 = vcmask 392512  }
 0x2ad   :  { %v4523_v13 = vadd.f32 %v4449_v35, %v1406_v50  ;;  %v870_v50 = vpop.permute.xlu0 %869 }
 0x2ae   :  { %v553_v43 = vmul.f32 0.2, %v545_v52  ;;  %vm549_vm15 = vcmp.gt.f32.partialorder %v545_v52, 0.0 }
 0x2af   :  { %5719 = vst [vmem:[#allocation15_spill] sm:$0xff] %v4523_v13  ;;  %v1414_v54 = vsel %vm243_vm2, %v4523_v13, -inf }
 0x2b0   :  { %735 = vmax.xlane.f32.xlu0 %v734_v27  ;;  %v381_v27 = vmul.f32 0.2, %v373_v61  ;;  %v557_v49 = vsel %vm549_vm15, %v545_v52, %v553_v43 }
 0x2b1   :  { %442 = vrot.lane.b32.xlu1 %v4208_v28, %s4092_s1  ;;  %v4542_v30 = vadd.f32 %v4435_v37, %v557_v49  ;;  %v1210_v15 = vpop.permute.xlu0 %1209 }
 0x2b2   :  { %v385_v11 = vsel %vm377_vm14, %v373_v61, %v381_v27  ;;  %vm1539_vm14 = vcmask 523712  }
 0x2b3   :  { %v4533_v45 = vadd.f32 %v4435_v37, %v385_v11  ;;  %v1055_v11 = vadd.f32 %v4342_v19, %v4304_v63 }
 0x2b4   :  { %905 = vmax.xlane.f32.xlu0 %v904_v56 }
 0x2b5   :  { %614 = vrot.lane.b32.xlu1 %v4206_v26, %s4093_s26  ;;  %v395_v56 = vsel %vm243_vm2, %v4533_v45, -inf  ;;  %vm1059_vm4 = vcmp.gt.f32.partialorder %v1055_v11, 0.0  ;;  %v1380_v53 = vpop.permute.xlu0 %1379 }
 0x2b8   :  { %1075 = vmax.xlane.f32.xlu0 %v1074_v58  ;;  %v715_v58 = vadd.f32 %v4334_v16, %v4300_v60  ;;  %v567_v60 = vsel %vm243_vm2, %v4542_v30, -inf }
 0x2b9   :  { %784 = vrot.lane.b32.xlu1 %v4206_v26, %s4094_s27 }
 0x2ba   :  { %v723_v61 = vmul.f32 0.2, %v715_v58  ;;  %vm719_vm0 = vcmp.gt.f32.partialorder %v715_v58, 0.0 }
 0x2bc   :  { %1245 = vmax.xlane.f32.xlu0 %v1244_v51  ;;  %v885_v51 = vadd.f32 %v4338_v18, %v870_v50  ;;  %v727_v27 = vsel %vm719_vm0, %v715_v58, %v723_v61  ;;  %v1063_v18 = vmul.f32 0.2, %v1055_v11  ;;  %v1395_v58 = vadd.f32 %v4379_v38, %v1380_v53 }
 0x2bd   :  { %v4549_v16 = vadd.f32 %v4435_v37, %v727_v27 }
 0x2be   :  { %vm889_vm3 = vcmp.gt.f32.partialorder %v885_v51, 0.0  ;;  %v1067_v52 = vsel %vm1059_vm4, %v1055_v11, %v1063_v18  ;;  %v1403_v61 = vmul.f32 0.2, %v1395_v58  ;;  %vm1399_vm6 = vcmp.gt.f32.partialorder %v1395_v58, 0.0 }
 0x2bf   :  { %v737_v63 = vsel %vm243_vm2, %v4549_v16, -inf  ;;  %v4563_v50 = vadd.f32 %v4435_v37, %v1067_v52 }
 0x2c0   :  { %1415 = vmax.xlane.f32.xlu0 %v1414_v54  ;;  %v893_v54 = vmul.f32 0.2, %v885_v51 }
 0x2c4   :  { %254 = vmax.xlane.f32.xlu0 %v253_v48  ;;  %v897_v48 = vsel %vm889_vm3, %v885_v51, %v893_v54  ;;  %v1077_v51 = vsel %vm243_vm2, %v4563_v50, -inf  ;;  %v1407_v54 = vsel %vm1399_vm6, %v1395_v58, %v1403_v61 }
 0x2c5   :  { %v4557_v19 = vadd.f32 %v4435_v37, %v897_v48  ;;  %v4573_v11 = vadd.f32 %v4435_v37, %v1407_v54 }
 0x2c7   :  { %5721 = vst [vmem:[#allocation17_spill] sm:$0xff] %v4573_v11 }
 0x2c8   :  { %396 = vmax.xlane.f32.xlu0 %v395_v56  ;;  %v1225_v56 = vadd.f32 %v4372_v7, %v1210_v15  ;;  %v907_v7 = vsel %vm243_vm2, %v4557_v19, -inf  ;;  %v1417_v15 = vsel %vm243_vm2, %v4573_v11, -inf }
 0x2ca   :  { %v1233_v43 = vmul.f32 0.2, %v1225_v56  ;;  %vm1229_vm5 = vcmp.gt.f32.partialorder %v1225_v56, 0.0 }
 0x2cc   :  { %v1237_v49 = vsel %vm1229_vm5, %v1225_v56, %v1233_v43 }
 0x2cd   :  { %v4568_v27 = vadd.f32 %v4435_v37, %v1237_v49 }
 0x2cf   :  { %5720 = vst [vmem:[#allocation16_spill] sm:$0xff] %v4568_v27  ;;  %v1247_v38 = vsel %vm243_vm2, %v4568_v27, -inf }
 0x2dd   :  { %568 = vmax.xlane.f32.xlu1 %v567_v60 }
 0x2de   :  { %444 = vrot.lane.b32.xlu0 %v4206_v26, %s4092_s1 }
 0x2e1   :  { %738 = vmax.xlane.f32.xlu1 %v737_v63 }
 0x2e5   :  { %908 = vmax.xlane.f32.xlu1 %v907_v7 }
 0x2e9   :  { %1078 = vmax.xlane.f32.xlu1 %v1077_v51 }
 0x2ed   :  { %1248 = vmax.xlane.f32.xlu1 %v1247_v38 }
 0x2f1   :  { %1418 = vmax.xlane.f32.xlu1 %v1417_v15 }
 0x30d   :  { %v403_v60 = vpop.xlane.xlu1 %402  ;;  %v252_v48 = vpop.xlane.xlu0 %251 }
 0x30e   :  { %v407_v20 = vsub.f32 %v4355_v5, %v403_v60 }
 0x311   :  { %v575_v18 = vpop.xlane.xlu1 %574  ;;  %v400_v56 = vpop.xlane.xlu0 %399 }
 0x312   :  { %v406_v62 = vsub.f32 %v4364_v22, %v400_v56  ;;  %v579_v13 = vsub.f32 %v4361_v6, %v575_v18 }
 0x314   :  { %v409_v14 = vpack.c.bf16 %v407_v20, %v406_v62 }
 0x315   :  { %v745_v53 = vpop.xlane.xlu1 %744  ;;  %v572_v63 = vpop.xlane.xlu0 %571 }
 0x316   :  { %v578_v12 = vsub.f32 %v4386_v55, %v572_v63  ;;  %v414_v46 = vmul.bf16 1069105081, %v409_v14  ;;  %v749_v5 = vsub.f32 %v4375_v29, %v745_v53 }
 0x318   :  { %v581_v27 = vpack.c.bf16 %v579_v13, %v578_v12  ;;  %3856 = vpow.bf16 %v414_v46 }
 0x319   :  { %v915_v52 = vpop.xlane.xlu1 %914  ;;  %v742_v43 = vpop.xlane.xlu0 %741 }
 0x31a   :  { %v586_v20 = vmul.bf16 1069105081, %v581_v27  ;;  %v919_v6 = vsub.f32 %v4399_v4, %v915_v52 }
 0x31d   :  { %v1085_v58 = vpop.xlane.xlu1 %1084  ;;  %v912_v7 = vpop.xlane.xlu0 %911 }
 0x31e   :  { %v918_v55 = vsub.f32 %v4415_v24, %v912_v7  ;;  %v1089_v29 = vsub.f32 %v4412_v21, %v1085_v58 }
 0x320   :  { %v921_v14 = vpack.c.bf16 %v919_v6, %v918_v55 }
 0x321   :  { %v1255_v49 = vpop.xlane.xlu1 %1254  ;;  %v1082_v61 = vpop.xlane.xlu0 %1081 }
 0x322   :  { %v1259_v46 = vsub.f32 %v4425_v25, %v1255_v49 }
 0x325   :  { %v1425_v51 = vpop.xlane.xlu1 %1424  ;;  %v1252_v54 = vpop.xlane.xlu0 %1251 }
 0x326   :  { %v1429_v4 = vsub.f32 %v4442_v39, %v1425_v51 }
 0x329   :  { %v4577_v36 = vpop.xlane.xlu1 %248  ;;  %v1422_v38 = vpop.xlane.xlu0 %1421 }
 0x32a   :  { %v1428_v24 = vsub.f32 %v4456_v32, %v1422_v38 }
 0x32c   :  { %v1431_v27 = vpack.c.bf16 %v1429_v4, %v1428_v24 }
 0x32d   :  { %v4579_v33 = vpop.permute.xlu1 %442  ;;  %v246_v15 = vpop.xlane.xlu0 %245 }
 0x32e   :  { %5722 = vst [vmem:[#allocation18_spill] sm:$0xff] %v4579_v33  ;;  %v258_v33 = vsub.f32 %v4358_v41, %v252_v48  ;;  %v1436_v39 = vmul.bf16 1069105081, %v1431_v27 }
 0x331   :  { %v615_v34 = vpop.permute.xlu1 %614  ;;  %v4581_v31 = vpop.xlane.xlu0 %393 }
 0x332   :  { %3606 = vmatprep.subr.bf16.mxu1 %v615_v34 }
 0x333   :  { %3607 = vmatpush3.bf16.msra.mxu1 %v615_v34 }
 0x335   :  { %v4583_v37 = vpop.xlane.xlu0 %565 }
 0x339   :  { %v4585_v9 = vpop.xlane.xlu0 %735 }
 0x33d   :  { %v4587_v35 = vpop.xlane.xlu0 %905 }
 0x341   :  { %v4589_v10 = vpop.xlane.xlu0 %1075 }
 0x345   :  { %v4591_v2 = vpop.xlane.xlu0 %1245 }
 0x346   :  { %5723 = vst [vmem:[#allocation19_spill] sm:$0xff] %v4591_v2  ;;  %v748_v2 = vsub.f32 %v4402_v0, %v742_v43  ;;  %v1258_v0 = vsub.f32 %v4445_v40, %v1252_v54  ;;  %v257_v40 = vsub.f32 %v4459_v42, %v4577_v36 }
 0x348   :  { %v751_v62 = vpack.c.bf16 %v749_v5, %v748_v2  ;;  %v926_v2 = vmul.bf16 1069105081, %v921_v14  ;;  %v1261_v13 = vpack.c.bf16 %v1259_v46, %v1258_v0 }
 0x349   :  { %v4595_v17 = vpop.xlane.xlu0 %1415 }
 0x34a   :  { %v756_v12 = vmul.bf16 1069105081, %v751_v62  ;;  %v1266_v48 = vmul.bf16 1069105081, %v1261_v13 }
 0x34d   :  { %v255_v34 = vpop.xlane.xlu0 %254 }
 0x34e   :  { %v259_v11 = vsub.f32 %v4528_v57, %v255_v34 }
 0x350   :  { %v261_v3 = vpack.c.bf16 %v259_v11, %v258_v33  ;;  %v1088_v33 = vsub.f32 %v4428_v59, %v1082_v61  ;;  %v256_v11 = vsub.f32 %v4468_v8, %v246_v15  ;;  %v4617_v59 = vpop.eup %3856 }
 0x351   :  { %v4602_v22 = vpop.xlane.xlu0 %396  ;;  %v419_v8 = vunpack.c.h.bf16 %v4617_v59  ;;  %v418_v63 = vunpack.c.l.bf16 %v4617_v59 }
 0x352   :  { %v266_v60 = vmul.bf16 1069105081, %v261_v3  ;;  %v1091_v3 = vpack.c.bf16 %v1089_v29, %v1088_v33  ;;  %v260_v18 = vpack.c.bf16 %v257_v40, %v256_v11 }
 0x353   :  { %v429_v42 = vsel %vm243_vm2, %v419_v8, 0.0  ;;  %v426_v43 = vsel %vm243_vm2, %v418_v63, 0.0 }
 0x354   :  { %3858 = vpow.bf16 %v266_v60  ;;  %v1096_v57 = vmul.bf16 1069105081, %v1091_v3  ;;  %v263_v36 = vmul.bf16 1069105081, %v260_v18  ;;  %v405_v18 = vsub.f32 %v4533_v45, %v4602_v22 }
 0x355   :  { %v4606_v41 = vpop.permute.xlu0 %444  ;;  %3860 = vpow.bf16 %v586_v20 }
 0x356   :  { %3598 = vmatprep.subr.bf16.mxu0 %v4606_v41  ;;  %3862 = vpow.bf16 %v756_v12 }
 0x357   :  { %3864 = vpow.bf16 %v926_v2 }
 0x358   :  { %3866 = vpow.bf16 %v1096_v57 }
 0x359   :  { %3868 = vpow.bf16 %v1266_v48 }
 0x35a   :  { %3870 = vpow.bf16 %v1436_v39 }
 0x35b   :  { %3872 = vpow.bf16 %v263_v36  ;;  %v576_v36 = vsub.f32 %v4482_v23, %v4583_v37 }
 0x362   :  { %v4619_v21 = vpop.eup %3858 }
 0x363   :  { %v271_v32 = vunpack.c.h.bf16 %v4619_v21  ;;  %v270_v25 = vunpack.c.l.bf16 %v4619_v21  ;;  %v4629_v52 = vpop.eup %3860 }
 0x364   :  { %v591_v58 = vunpack.c.h.bf16 %v4629_v52  ;;  %v590_v7 = vunpack.c.l.bf16 %v4629_v52  ;;  %v4635_v49 = vpop.eup %3862 }
 0x365   :  { %v281_v56 = vsel %vm243_vm2, %v271_v32, 0.0  ;;  %v278_v53 = vsel %vm243_vm2, %v270_v25, 0.0  ;;  %v761_v54 = vunpack.c.h.bf16 %v4635_v49  ;;  %v760_v38 = vunpack.c.l.bf16 %v4635_v49  ;;  %v4641_v15 = vpop.eup %3864  ;;  %v4671_v25 = vpop.permute.xlu1 %784 }
 0x366   :  { %282 = vadd.xlane.f32.xlu1 %v281_v56  ;;  %279 = vadd.xlane.f32.xlu0 %v278_v53  ;;  %v601_v61 = vsel %vm243_vm2, %v591_v58, 0.0  ;;  %v598_v51 = vsel %vm243_vm2, %v590_v7, 0.0  ;;  %v931_v60 = vunpack.c.h.bf16 %v4641_v15  ;;  %v930_v20 = vunpack.c.l.bf16 %v4641_v15  ;;  %v4647_v62 = vpop.eup %3866 }
 0x367   :  { %v771_v34 = vsel %vm243_vm2, %v761_v54, 0.0  ;;  %v768_v5 = vsel %vm243_vm2, %v760_v38, 0.0  ;;  %v4649_v55 = vpop.eup %3868  ;;  %v1101_v14 = vunpack.c.h.bf16 %v4647_v62  ;;  %v1100_v33 = vunpack.c.l.bf16 %v4647_v62 }
 0x368   :  { %v941_v6 = vsel %vm243_vm2, %v931_v60, 0.0  ;;  %v938_v12 = vsel %vm243_vm2, %v930_v20, 0.0  ;;  %v4655_v29 = vpop.eup %3870  ;;  %v1270_v3 = vunpack.c.l.bf16 %v4649_v55  ;;  %v1271_v57 = vunpack.c.h.bf16 %v4649_v55 }
 0x369   :  { %v1111_v0 = vsel %vm243_vm2, %v1101_v14, 0.0  ;;  %v1108_v2 = vsel %vm243_vm2, %v1100_v33, 0.0  ;;  %v1440_v24 = vunpack.c.l.bf16 %v4655_v29  ;;  %v4661_v46 = vpop.eup %3872  ;;  %v1441_v48 = vunpack.c.h.bf16 %v4655_v29  ;;  %v569_v39 = vpop.xlane.xlu1 %568 }
 0x36a   :  { %430 = vadd.xlane.f32.xlu1 %v429_v42  ;;  %427 = vadd.xlane.f32.xlu0 %v426_v43  ;;  %v1278_v4 = vsel %vm243_vm2, %v1270_v3, 0.0  ;;  %v268_v27 = vunpack.c.l.bf16 %v4661_v46  ;;  %v1281_v11 = vsel %vm243_vm2, %v1271_v57, 0.0  ;;  %v404_v53 = vsub.f32 %v4475_v44, %v4581_v31  ;;  %v5725_v3 = vld [vmem:[#allocation16_spill] sm:$0xff]  ;;  %v5727_v57 = vld [vmem:[#allocation14_spill] sm:$0xff] }
 0x36b   :  { %v1448_v13 = vsel %vm243_vm2, %v1440_v24, 0.0  ;;  %v1451_v32 = vsel %vm243_vm2, %v1441_v48, 0.0  ;;  %v577_v63 = vsub.f32 %v4542_v30, %v569_v39  ;;  %v746_v44 = vsub.f32 %v4489_v1, %v4585_v9  ;;  %v5724_v1 = vld [vmem:[#allocation13_spill] sm:$0xff] }
 0x36c   :  { %v272_v40 = vsel %vm243_vm2, %v268_v27, 0.0  ;;  %v408_v8 = vpack.c.bf16 %v405_v18, %v404_v53  ;;  %v916_v58 = vsub.f32 %v4496_v47, %v4587_v35  ;;  %v269_v48 = vunpack.c.h.bf16 %v4661_v46  ;;  %v5728_v39 = vld [vmem:[#allocation17_spill] sm:$0xff] }
 0x36d   :  { %v739_v56 = vpop.xlane.xlu1 %738  ;;  %v580_v42 = vpack.c.bf16 %v577_v63, %v576_v36 }
 0x36e   :  { %602 = vadd.xlane.f32.xlu1 %v601_v61  ;;  %599 = vadd.xlane.f32.xlu0 %v598_v51  ;;  %v411_v22 = vmul.bf16 1069105081, %v408_v8  ;;  %v747_v31 = vsub.f32 %v4549_v16, %v739_v56  ;;  %v1086_v61 = vsub.f32 %v5724_v1, %v4589_v10  ;;  %v275_v56 = vsel %vm243_vm2, %v269_v48, 0.0  ;;  %v5729_v8 = vld [vmem:[#allocation15_spill] sm:$0xff] }
 0x36f   :  { %v583_v30 = vmul.bf16 1069105081, %v580_v42  ;;  %v1426_v63 = vsub.f32 %v5729_v8, %v4595_v17 }
 0x370   :  { %3874 = vpow.bf16 %v411_v22  ;;  %v750_v43 = vpack.c.bf16 %v747_v31, %v746_v44 }
 0x371   :  { %v909_v45 = vpop.xlane.xlu1 %908  ;;  %3876 = vpow.bf16 %v583_v30 }
 0x372   :  { %772 = vadd.xlane.f32.xlu1 %v771_v34  ;;  %769 = vadd.xlane.f32.xlu0 %v768_v5  ;;  %v917_v37 = vsub.f32 %v4557_v19, %v909_v45  ;;  %v753_v16 = vmul.bf16 1069105081, %v750_v43 }
 0x374   :  { %v920_v7 = vpack.c.bf16 %v917_v37, %v916_v58  ;;  %3878 = vpow.bf16 %v753_v16 }
 0x375   :  { %v1079_v23 = vpop.xlane.xlu1 %1078 }
 0x376   :  { %942 = vadd.xlane.f32.xlu1 %v941_v6  ;;  %939 = vadd.xlane.f32.xlu0 %v938_v12  ;;  %v1087_v9 = vsub.f32 %v4563_v50, %v1079_v23  ;;  %v923_v19 = vmul.bf16 1069105081, %v920_v7 }
 0x378   :  { %v1090_v51 = vpack.c.bf16 %v1087_v9, %v1086_v61  ;;  %3880 = vpow.bf16 %v923_v19 }
 0x379   :  { %v1249_v33 = vpop.xlane.xlu1 %1248 }
 0x37a   :  { %1112 = vadd.xlane.f32.xlu1 %v1111_v0  ;;  %1109 = vadd.xlane.f32.xlu0 %v1108_v2  ;;  %v1093_v35 = vmul.bf16 1069105081, %v1090_v51  ;;  %v1257_v24 = vsub.f32 %v5725_v3, %v1249_v33 }
 0x37c   :  { %3882 = vpow.bf16 %v1093_v35 }
 0x37e   :  { %1279 = vadd.xlane.f32.xlu1 %v1278_v4  ;;  %1449 = vadd.xlane.f32.xlu0 %v1448_v13  ;;  %v4703_v47 = vpop.eup %3874  ;;  %v5726_v13 = vld [vmem:[#allocation19_spill] sm:$0xff] }
 0x37f   :  { %v416_v50 = vunpack.c.l.bf16 %v4703_v47  ;;  %v4706_v54 = vpop.eup %3876  ;;  %v1256_v27 = vsub.f32 %v5727_v57, %v5726_v13  ;;  %v417_v53 = vunpack.c.h.bf16 %v4703_v47 }
 0x380   :  { %v588_v38 = vunpack.c.l.bf16 %v4706_v54  ;;  %v589_v22 = vunpack.c.h.bf16 %v4706_v54 }
 0x381   :  { %v420_v10 = vsel %vm243_vm2, %v416_v50, 0.0  ;;  %v423_v45 = vsel %vm243_vm2, %v417_v53, 0.0 }
 0x382   :  { %1282 = vadd.xlane.f32.xlu1 %v1281_v11  ;;  %273 = vadd.xlane.f32.xlu0 %v272_v40  ;;  %v4710_v34 = vpop.eup %3878  ;;  %v592_v5 = vsel %vm243_vm2, %v588_v38, 0.0  ;;  %v1260_v11 = vpack.c.bf16 %v1257_v24, %v1256_v27  ;;  %v1419_v40 = vpop.xlane.xlu1 %1418  ;;  %v595_v31 = vsel %vm243_vm2, %v589_v22, 0.0 }
 0x383   :  { %v758_v60 = vunpack.c.l.bf16 %v4710_v34  ;;  %v1427_v18 = vsub.f32 %v5728_v39, %v1419_v40  ;;  %v759_v44 = vunpack.c.h.bf16 %v4710_v34 }
 0x385   :  { %v762_v6 = vsel %vm243_vm2, %v758_v60, 0.0  ;;  %v1430_v36 = vpack.c.bf16 %v1427_v18, %v1426_v63  ;;  %v765_v30 = vsel %vm243_vm2, %v759_v44, 0.0 }
 0x386   :  { %1452 = vadd.xlane.f32.xlu1 %v1451_v32  ;;  %v4714_v20 = vpop.eup %3880  ;;  %v1263_v32 = vmul.bf16 1069105081, %v1260_v11 }
 0x387   :  { %v928_v12 = vunpack.c.l.bf16 %v4714_v20  ;;  %v1433_v42 = vmul.bf16 1069105081, %v1430_v36  ;;  %v929_v43 = vunpack.c.h.bf16 %v4714_v20 }
 0x388   :  { %3884 = vpow.bf16 %v1263_v32 }
 0x389   :  { %v932_v0 = vsel %vm243_vm2, %v928_v12, 0.0  ;;  %3886 = vpow.bf16 %v1433_v42  ;;  %v935_v17 = vsel %vm243_vm2, %v929_v43, 0.0 }
 0x38a   :  { %v4718_v14 = vpop.eup %3882 }
 0x38b   :  { %v1098_v2 = vunpack.c.l.bf16 %v4718_v14  ;;  %v1099_v37 = vunpack.c.h.bf16 %v4718_v14 }
 0x38d   :  { %v1102_v4 = vsel %vm243_vm2, %v1098_v2, 0.0  ;;  %v1105_v58 = vsel %vm243_vm2, %v1099_v37, 0.0 }
 0x396   :  { %v4742_v23 = vpop.eup %3884 }
 0x397   :  { %782 = vrot.lane.b32.xlu1 %v4208_v28, %s4094_s27  ;;  %v1268_v16 = vunpack.c.l.bf16 %v4742_v23  ;;  %v1269_v9 = vunpack.c.h.bf16 %v4742_v23 }
 0x398   :  { %612 = vrot.lane.b32.xlu0 %v4208_v28, %s4093_s26 }
 0x399   :  { %v1272_v7 = vsel %vm243_vm2, %v1268_v16, 0.0  ;;  %v1275_v1 = vsel %vm243_vm2, %v1269_v9, 0.0 }
 0x39b   :  { %954 = vrot.lane.b32.xlu1 %v4206_v26, %s4095_s28 }
 0x39f   :  { %1124 = vrot.lane.b32.xlu1 %v4206_v26, %s4096_s29 }
 0x3a3   :  { %952 = vrot.lane.b32.xlu1 %v4208_v28, %s4095_s28 }
 0x3a7   :  { %1122 = vrot.lane.b32.xlu1 %v4208_v28, %s4096_s29 }
 0x3ab   :  { %1294 = vrot.lane.b32.xlu1 %v4206_v26, %s4097_s30 }
 0x3b7   :  { %421 = vadd.xlane.f32.xlu0 %v420_v10 }
 0x3bb   :  { %593 = vadd.xlane.f32.xlu0 %v592_v5 }
 0x3bf   :  { %763 = vadd.xlane.f32.xlu0 %v762_v6 }
 0x3c3   :  { %933 = vadd.xlane.f32.xlu0 %v932_v0 }
 0x3c7   :  { %1103 = vadd.xlane.f32.xlu0 %v1102_v4 }
 0x3cf   :  { %276 = vadd.xlane.f32.xlu1 %v275_v56 }
 0x3d3   :  { %424 = vadd.xlane.f32.xlu1 %v423_v45 }
 0x3d7   :  { %596 = vadd.xlane.f32.xlu1 %v595_v31 }
 0x3db   :  { %766 = vadd.xlane.f32.xlu1 %v765_v30 }
 0x3dd   :  { %1464 = vrot.lane.b32.xlu0 %v4206_v26, %s4098_s7  ;;  %v4750_v26 = vpop.eup %3886 }
 0x3de   :  { %v1438_v61 = vunpack.c.l.bf16 %v4750_v26  ;;  %v1439_v51 = vunpack.c.h.bf16 %v4750_v26 }
 0x3df   :  { %936 = vadd.xlane.f32.xlu1 %v935_v17 }
 0x3e0   :  { %v1442_v19 = vsel %vm243_vm2, %v1438_v61, 0.0  ;;  %v1445_v10 = vsel %vm243_vm2, %v1439_v51, 0.0 }
 0x3e1   :  { %1462 = vrot.lane.b32.xlu0 %v4208_v28, %s4098_s7 }
 0x3e3   :  { %1106 = vadd.xlane.f32.xlu1 %v1105_v58 }
 0x3e7   :  { %1273 = vadd.xlane.f32.xlu1 %v1272_v7 }
 0x3eb   :  { %1276 = vadd.xlane.f32.xlu1 %v1275_v1 }
 0x3ef   :  { %v283_v35 = vpop.xlane.xlu1 %282  ;;  %1443 = vadd.xlane.f32.xlu1 %v1442_v19  ;;  %v280_v50 = vpop.xlane.xlu0 %279 }
 0x3f0   :  { %3888 = vrcp.f32 %v283_v35 }
 0x3f1   :  { %3890 = vrcp.f32 %v280_v50 }
 0x3f3   :  { %v431_v38 = vpop.xlane.xlu1 %430  ;;  %1446 = vadd.xlane.f32.xlu1 %v1445_v10  ;;  %v428_v5 = vpop.xlane.xlu0 %427 }
 0x3f4   :  { %3892 = vrcp.f32 %v431_v38 }
 0x3f7   :  { %v603_v60 = vpop.xlane.xlu1 %602  ;;  %v600_v6 = vpop.xlane.xlu0 %599 }
 0x3fb   :  { %v773_v12 = vpop.xlane.xlu1 %772  ;;  %v770_v33 = vpop.xlane.xlu0 %769 }
 0x3fd   :  { %v3889_v42 = vpop.eup %3888 }
 0x3fe   :  { %v3891_v31 = vpop.eup %3890 }
 0x3ff   :  { %v943_v0 = vpop.xlane.xlu1 %942  ;;  %v940_v2 = vpop.xlane.xlu0 %939  ;;  %v289_v58 = vpack.c.bf16 %v3889_v42, %v3891_v31 }
 0x401   :  { %v3893_v30 = vpop.eup %3892  ;;  %v291_v50 = vmul.bf16 %v4619_v21, %v289_v58  ;;  %v5730_v21 = vld [vmem:[#allocation18_spill] sm:$0xff] }
 0x403   :  { %v1113_v3 = vpop.xlane.xlu1 %1112  ;;  %v4757_v24 = vpop.xlane.xlu0 %1109 }
 0x404   :  { %1292 = vrot.lane.b32.xlu1 %v4208_v28, %s4097_s30 }
 0x407   :  { %v4761_v4 = vpop.xlane.xlu1 %1279  ;;  %v4763_v13 = vpop.xlane.xlu0 %1449 }
 0x40b   :  { %v4765_v57 = vpop.xlane.xlu1 %1282  ;;  %v274_v27 = vpop.xlane.xlu0 %273 }
 0x40c   :  { %3894 = vrcp.f32 %v274_v27 }
 0x40f   :  { %v4767_v11 = vpop.xlane.xlu1 %1452  ;;  %v613_v40 = vpop.permute.xlu0 %612 }
 0x410   :  { %3608 = vmatprep.subr.bf16.mxu1 %v613_v40 }
 0x411   :  { %3609 = vmatpush3.bf16.msra.mxu1 %v613_v40 }
 0x413   :  { %v4769_v48 = vpop.permute.xlu1 %782 }
 0x417   :  { %v4771_v32 = vpop.permute.xlu1 %954 }
 0x418   :  { %3622 = vmatprep.subr.bf16.mxu1 %v4771_v32 }
 0x419   :  { %v3895_v17 = vpop.eup %3894 }
 0x41b   :  { %v4774_v39 = vpop.permute.xlu1 %1124 }
 0x41f   :  { %v4776_v28 = vpop.permute.xlu1 %952 }
 0x423   :  { %v4778_v18 = vpop.permute.xlu1 %1122 }
 0x427   :  { %v4780_v53 = vpop.permute.xlu1 %1294 }
 0x440   :  { %v422_v56 = vpop.xlane.xlu0 %421 }
 0x444   :  { %v594_v8 = vpop.xlane.xlu0 %593 }
 0x448   :  { %v764_v45 = vpop.xlane.xlu0 %763 }
 0x44c   :  { %v934_v44 = vpop.xlane.xlu0 %933 }
 0x450   :  { %v1104_v19 = vpop.xlane.xlu0 %1103 }
 0x458   :  { %v277_v63 = vpop.xlane.xlu1 %276 }
 0x459   :  { %3896 = vrcp.f32 %v277_v63 }
 0x45a   :  { %3898 = vrcp.f32 %v428_v5 }
 0x45b   :  { %3900 = vrcp.f32 %v603_v60 }
 0x45c   :  { %3902 = vrcp.f32 %v422_v56  ;;  %v425_v36 = vpop.xlane.xlu1 %424 }
 0x45d   :  { %3904 = vrcp.f32 %v425_v36 }
 0x45e   :  { %3906 = vrcp.f32 %v600_v6 }
 0x45f   :  { %3908 = vrcp.f32 %v773_v12 }
 0x460   :  { %3910 = vrcp.f32 %v594_v8  ;;  %v597_v22 = vpop.xlane.xlu1 %596 }
 0x461   :  { %3912 = vrcp.f32 %v597_v22 }
 0x462   :  { %3914 = vrcp.f32 %v770_v33 }
 0x463   :  { %3916 = vrcp.f32 %v943_v0 }
 0x464   :  { %3918 = vrcp.f32 %v764_v45  ;;  %v767_v43 = vpop.xlane.xlu1 %766 }
 0x465   :  { %3920 = vrcp.f32 %v767_v43 }
 0x466   :  { %v3897_v37 = vpop.eup %3896  ;;  %3922 = vrcp.f32 %v940_v2 }
 0x467   :  { %v3899_v16 = vpop.eup %3898  ;;  %v288_v7 = vpack.c.bf16 %v3897_v37, %v3895_v17  ;;  %3924 = vrcp.f32 %v934_v44 }
 0x468   :  { %v3901_v9 = vpop.eup %3900  ;;  %v937_v1 = vpop.xlane.xlu1 %936  ;;  %v437_v33 = vpack.c.bf16 %v3893_v30, %v3899_v16 }
 0x469   :  { %v3903_v61 = vpop.eup %3902  ;;  %3926 = vrcp.f32 %v937_v1  ;;  %v290_v51 = vmul.bf16 %v4661_v46, %v288_v7 }
 0x46a   :  { %v3905_v35 = vpop.eup %3904  ;;  %3928 = vrcp.f32 %v1113_v3 }
 0x46b   :  { %v3907_v10 = vpop.eup %3906  ;;  %3594 = vmatprep.mubr.msk.bf16.mxu0 %vm243_vm2, %v290_v51  ;;  %v436_v38 = vpack.c.bf16 %v3905_v35, %v3903_v61  ;;  %3930 = vrcp.f32 %v1104_v19 }
 0x46c   :  { %v3909_v5 = vpop.eup %3908  ;;  %v1107_v60 = vpop.xlane.xlu1 %1106  ;;  %3595 = vmatmul.mubr.msk.bf16.vlgmr.msra.gmra.mxu0 %vm243_vm2, %v291_v50  ;;  %v609_v0 = vpack.c.bf16 %v3901_v9, %v3907_v10 }
 0x46d   :  { %v3911_v6 = vpop.eup %3910  ;;  %3932 = vrcp.f32 %v1107_v60  ;;  %3599 = vmatpush3.bf16.msra.mxu0 %v4606_v41  ;;  %v438_v12 = vmul.bf16 %v4703_v47, %v436_v38  ;;  %v439_v47 = vmul.bf16 %v4617_v59, %v437_v33 }
 0x46e   :  { %v3913_v46 = vpop.eup %3912  ;;  %3934 = vrcp.f32 %v4757_v24  ;;  %3600 = vmatprep.subr.bf16.mxu0 %v5730_v21  ;;  %v611_v24 = vmul.bf16 %v4629_v52, %v609_v0 }
 0x46f   :  { %v3915_v2 = vpop.eup %3914  ;;  %3602 = vmatprep.mubr.msk.bf16.mxu0 %vm243_vm2, %v438_v12  ;;  %v608_v3 = vpack.c.bf16 %v3913_v46, %v3911_v6  ;;  %3936 = vrcp.f32 %v4765_v57 }
 0x470   :  { %v3917_v27 = vpop.eup %3916  ;;  %v1274_v40 = vpop.xlane.xlu1 %1273  ;;  %3938 = vrcp.f32 %v4761_v4  ;;  %v779_v4 = vpack.c.bf16 %v3909_v5, %v3915_v2 }
 0x471   :  { %v3919_v56 = vpop.eup %3918  ;;  %3601 = vmatpush3.bf16.msra.mxu0 %v5730_v21  ;;  %v610_v41 = vmul.bf16 %v4706_v54, %v608_v3  ;;  %3940 = vrcp.f32 %v1274_v40 }
 0x472   :  { %v3921_v8 = vpop.eup %3920  ;;  %3614 = vmatprep.subr.bf16.mxu0 %v4671_v25 }
 0x473   :  { %v3923_v63 = vpop.eup %3922  ;;  %3610 = vmatprep.mubr.msk.bf16.mxu1 %vm243_vm2, %v610_v41  ;;  %v778_v36 = vpack.c.bf16 %v3921_v8, %v3919_v56 }
 0x474   :  { %v1277_v45 = vpop.xlane.xlu1 %1276  ;;  %3603 = vmatmul.mubr.msk.bf16.vlgmr.msra.gmra.mxu0 %vm243_vm2, %v439_v47  ;;  %3611 = vmatmul.mubr.msk.bf16.vlgmr.msra.gmra.mxu1 %vm243_vm2, %v611_v24  ;;  %v3925_v54 = vpop.eup %3924  ;;  %v949_v57 = vpack.c.bf16 %v3917_v27, %v3923_v63 }
 0x475   :  { %3942 = vrcp.f32 %v1277_v45  ;;  %3615 = vmatpush3.bf16.msra.mxu0 %v4671_v25  ;;  %3623 = vmatpush3.bf16.msra.mxu1 %v4771_v32  ;;  %v780_v59 = vmul.bf16 %v4710_v34, %v778_v36  ;;  %v781_v32 = vmul.bf16 %v4635_v49, %v779_v4 }
 0x476   :  { %v3927_v52 = vpop.eup %3926  ;;  %3616 = vmatprep.subr.bf16.mxu0 %v4769_v48  ;;  %3624 = vmatprep.subr.bf16.mxu1 %v4776_v28  ;;  %3944 = vrcp.f32 %v4767_v11  ;;  %v951_v30 = vmul.bf16 %v4641_v15, %v949_v57  ;;  %v1576_v57 = vld [vmem:[%s5654_s3 + $0x30] sm:$0xff] }
 0x477   :  { %3618 = vmatprep.mubr.msk.bf16.mxu0 %vm243_vm2, %v780_v59  ;;  %v948_v22 = vpack.c.bf16 %v3927_v52, %v3925_v54  ;;  %v3929_v42 = vpop.eup %3928  ;;  %3946 = vrcp.f32 %v4763_v13  ;;  %v1465_v13 = vpop.permute.xlu0 %1464 }
 0x478   :  { %v1444_v31 = vpop.xlane.xlu1 %1443  ;;  %v3931_v44 = vpop.eup %3930 }
 0x479   :  { %3617 = vmatpush3.bf16.msra.mxu0 %v4769_v48  ;;  %3625 = vmatpush3.bf16.msra.mxu1 %v4776_v28  ;;  %v950_v25 = vmul.bf16 %v4714_v20, %v948_v22  ;;  %3948 = vrcp.f32 %v1444_v31  ;;  %v1577_v22 = vld [vmem:[%s5654_s3 + $0x38] sm:$0xff]  ;;  %v1574_v31 = vld [vmem:[%s5654_s3 + $0x20] sm:$0xff] }
 0x47a   :  { %v3933_v34 = vpop.eup %3932  ;;  %3630 = vmatprep.subr.bf16.mxu0 %v4774_v39  ;;  %3638 = vmatprep.subr.bf16.mxu1 %v4780_v53 }
 0x47b   :  { %v3935_v43 = vpop.eup %3934  ;;  %3626 = vmatprep.mubr.msk.bf16.mxu1 %vm243_vm2, %v950_v25  ;;  %v1118_v48 = vpack.c.bf16 %v3933_v34, %v3931_v44  ;;  %v1463_v16 = vpop.permute.xlu0 %1462  ;;  %v1575_v44 = vld [vmem:[%s5654_s3 + $0x28] sm:$0xff] }
 0x47c   :  { %v1447_v28 = vpop.xlane.xlu1 %1446  ;;  %3619 = vmatmul.mubr.msk.bf16.vlgmr.msra.gmra.mxu0 %vm243_vm2, %v781_v32  ;;  %3627 = vmatmul.mubr.msk.bf16.vlgmr.msra.gmra.mxu1 %vm243_vm2, %v951_v30  ;;  %v1119_v15 = vpack.c.bf16 %v3929_v42, %v3935_v43  ;;  %v3937_v20 = vpop.eup %3936  ;;  %v1581_v42 = vpack.c.bf16 %v1577_v22, %v1576_v57  ;;  %v1580_v25 = vpack.c.bf16 %v1575_v44, %v1574_v31  ;;  %v1572_v32 = vld [vmem:[%s5654_s3 + $0x10] sm:$0xff]  ;;  %v1573_v30 = vld [vmem:[%s5654_s3 + $0x18] sm:$0xff] }
 0x47d   :  { %3950 = vrcp.f32 %v1447_v28  ;;  %3631 = vmatpush3.bf16.msra.mxu0 %v4774_v39  ;;  %3639 = vmatpush3.bf16.msra.mxu1 %v4780_v53  ;;  %v1120_v49 = vmul.bf16 %v4718_v14, %v1118_v48  ;;  %v3939_v11 = vpop.eup %3938  ;;  %v1579_v43 = vpack.c.bf16 %v1573_v30, %v1572_v32  ;;  %v1570_v28 = vld [vmem:[%s5654_s3] sm:$0xff] }
 0x47e   :  { %3632 = vmatprep.subr.bf16.mxu0 %v4778_v18  ;;  %v3941_v37 = vpop.eup %3940  ;;  %v1121_v39 = vmul.bf16 %v4647_v62, %v1119_v15  ;;  %v1289_v53 = vpack.c.bf16 %v3937_v20, %v3939_v11  ;;  %v5731_v20 = vld [vmem:[#allocation3_spill] sm:$0xff]  ;;  %v5733_v11 = vld [vmem:[#allocation5_spill] sm:$0xff] }
 0x47f   :  { %3634 = vmatprep.mubr.msk.bf16.mxu0 %vm243_vm2, %v1120_v49  ;;  %v1571_v49 = vld [vmem:[%s5654_s3 + $0x8] sm:$0xff] }
 0x480   :  { %v1293_v17 = vpop.permute.xlu1 %1292  ;;  %v1291_v9 = vmul.bf16 %v4649_v55, %v1289_v53  ;;  %v1578_v15 = vpack.c.bf16 %v1571_v49, %v1570_v28 }
 0x481   :  { %3633 = vmatpush3.bf16.msra.mxu0 %v4778_v18  ;;  %3640 = vmatprep.subr.bf16.mxu1 %v1293_v17 }
 0x482   :  { %v3943_v58 = vpop.eup %3942  ;;  %3646 = vmatprep.subr.bf16.mxu0 %v1465_v13  ;;  %3641 = vmatpush3.bf16.msra.mxu1 %v1293_v17  ;;  %v5734_v17 = vld [vmem:[#allocation6_spill] sm:$0xff] }
 0x483   :  { %v1288_v14 = vpack.c.bf16 %v3943_v58, %v3941_v37  ;;  %v3945_v1 = vpop.eup %3944  ;;  %3654 = vmatprep.subr.bf16.mxu1 %v1581_v42 }
 0x484   :  { %3635 = vmatmul.mubr.msk.bf16.vlgmr.msra.gmra.mxu0 %vm243_vm2, %v1121_v39  ;;  %v3947_v18 = vpop.eup %3946 }
 0x485   :  { %3647 = vmatpush3.bf16.msra.mxu0 %v1465_v13  ;;  %v1290_v7 = vmul.bf16 %v4742_v23, %v1288_v14  ;;  %v1459_v19 = vpack.c.bf16 %v3945_v1, %v3947_v18  ;;  %v5732_v13 = vld [vmem:[#allocation4_spill] sm:$0xff] }
 0x486   :  { %3648 = vmatprep.subr.bf16.mxu0 %v1463_v16  ;;  %v3949_v61 = vpop.eup %3948 }
 0x487   :  { %3642 = vmatprep.mubr.msk.bf16.mxu1 %vm243_vm2, %v1290_v7  ;;  %v1461_v50 = vmul.bf16 %v4655_v29, %v1459_v19 }
 0x488   :  { %3643 = vmatmul.mubr.msk.bf16.vlgmr.msra.gmra.mxu1 %vm243_vm2, %v1291_v9 }
 0x489   :  { %3649 = vmatpush3.bf16.msra.mxu0 %v1463_v16  ;;  %3655 = vmatpush3.bf16.msra.mxu1 %v1581_v42 }
 0x48a   :  { %v3951_v62 = vpop.eup %3950  ;;  %3656 = vmatprep.subr.bf16.mxu1 %v1580_v25 }
 0x48b   :  { %v1458_v51 = vpack.c.bf16 %v3951_v62, %v3949_v61 }
 0x48d   :  { %v1460_v35 = vmul.bf16 %v4750_v26, %v1458_v51  ;;  %3657 = vmatpush3.bf16.msra.mxu1 %v1580_v25 }
 0x48e   :  { %3658 = vmatprep.subr.bf16.mxu1 %v1579_v43 }
 0x48f   :  { %3650 = vmatprep.mubr.msk.bf16.mxu0 %vm243_vm2, %v1460_v35 }
 0x490   :  { %3651 = vmatmul.mubr.msk.bf16.vlgmr.msra.gmra.mxu0 %vm243_vm2, %v1461_v50 }
 0x491   :  { %3659 = vmatpush3.bf16.msra.mxu1 %v1579_v43 }
 0x492   :  { %3660 = vmatprep.subr.bf16.mxu1 %v1578_v15 }
 0x495   :  { %3661 = vmatpush3.bf16.msra.mxu1 %v1578_v15 }
 0x52c   :  { %v3596_v55 = vpop.f32.mrf.mxu0 }
 0x52d   :  { %350 = vst.msk [vmem:[#allocation2 + $0x10] sm:$0xff] %vm347_vm7, %v3596_v55 }
 0x52e   :  { %v332_v23 = vpop.f32.mrf.mxu0 }
 0x52f   :  { %348 = vst.msk [vmem:[#allocation2] sm:$0xff] %vm347_vm7, %v332_v23 }
 0x530   :  { %v3597_v10 = vpop.f32.mrf.mxu0 }
 0x531   :  { %351 = vst.msk [vmem:[#allocation2 + $0x18] sm:$0xff] %vm347_vm7, %v3597_v10 }
 0x532   :  { %v335_v38 = vpop.f32.mrf.mxu0 }
 0x533   :  { %349 = vst.msk [vmem:[#allocation2 + $0x8] sm:$0xff] %vm347_vm7, %v335_v38 }
 0x534   :  { %v3604_v26 = vpop.f32.mrf.mxu0  ;;  %v3612_v5 = vpop.f32.mrf.mxu1 }
 0x535   :  { %681 = vrot.lane.b32.xlu1 %v3612_v5, %s4099_s8 }
 0x536   :  { %v488_v29 = vpop.f32.mrf.mxu0  ;;  %v658_v60 = vpop.f32.mrf.mxu1 }
 0x538   :  { %v3605_v6 = vpop.f32.mrf.mxu0  ;;  %v3613_v12 = vpop.f32.mrf.mxu1 }
 0x539   :  { %677 = vrot.lane.b32.xlu1 %v658_v60, %s4099_s8  ;;  %683 = vrot.lane.b32.xlu0 %v3613_v12, %s4099_s8 }
 0x53a   :  { %v491_v46 = vpop.f32.mrf.mxu0  ;;  %v661_v21 = vpop.f32.mrf.mxu1 }
 0x53c   :  { %v3628_v33 = vpop.f32.mrf.mxu1  ;;  %v3620_v0 = vpop.f32.mrf.mxu0 }
 0x53d   :  { %511 = vrot.lane.b32.xlu1 %v3604_v26, %s4100_s2  ;;  %679 = vrot.lane.b32.xlu0 %v661_v21, %s4099_s8 }
 0x53e   :  { %v998_v2 = vpop.f32.mrf.mxu1  ;;  %v828_v3 = vpop.f32.mrf.mxu0 }
 0x540   :  { %v3629_v27 = vpop.f32.mrf.mxu1  ;;  %v3621_v40 = vpop.f32.mrf.mxu0 }
 0x541   :  { %513 = vrot.lane.b32.xlu0 %v3605_v6, %s4100_s2  ;;  %1021 = vrot.lane.b32.xlu1 %v3628_v33, %s4101_s9 }
 0x542   :  { %v831_v56 = vpop.f32.mrf.mxu0  ;;  %v1001_v41 = vpop.f32.mrf.mxu1 }
 0x544   :  { %v3636_v47 = vpop.f32.mrf.mxu0 }
 0x545   :  { %507 = vrot.lane.b32.xlu1 %v488_v29, %s4100_s2  ;;  %1023 = vrot.lane.b32.xlu0 %v3629_v27, %s4101_s9 }
 0x546   :  { %v1168_v63 = vpop.f32.mrf.mxu0 }
 0x548   :  { %v3644_v8 = vpop.f32.mrf.mxu1  ;;  %v3637_v45 = vpop.f32.mrf.mxu0 }
 0x549   :  { %1017 = vrot.lane.b32.xlu1 %v998_v2, %s4101_s9  ;;  %509 = vrot.lane.b32.xlu0 %v491_v46, %s4100_s2 }
 0x54a   :  { %v1338_v24 = vpop.f32.mrf.mxu1  ;;  %v1171_v54 = vpop.f32.mrf.mxu0 }
 0x54c   :  { %v3645_v36 = vpop.f32.mrf.mxu1 }
 0x54d   :  { %851 = vrot.lane.b32.xlu1 %v3620_v0, %s4102_s10  ;;  %1019 = vrot.lane.b32.xlu0 %v1001_v41, %s4101_s9 }
 0x54e   :  { %v1341_v59 = vpop.f32.mrf.mxu1 }
 0x550   :  { %v3652_v52 = vpop.f32.mrf.mxu0 }
 0x551   :  { %853 = vrot.lane.b32.xlu0 %v3621_v40, %s4102_s10  ;;  %1361 = vrot.lane.b32.xlu1 %v3644_v8, %s4103_s11 }
 0x552   :  { %v1508_v4 = vpop.f32.mrf.mxu0 }
 0x554   :  { %v3653_v34 = vpop.f32.mrf.mxu0 }
 0x555   :  { %847 = vrot.lane.b32.xlu1 %v828_v3, %s4102_s10  ;;  %1363 = vrot.lane.b32.xlu0 %v3645_v36, %s4103_s11 }
 0x556   :  { %v1511_v48 = vpop.f32.mrf.mxu0 }
 0x559   :  { %1357 = vrot.lane.b32.xlu1 %v1338_v24, %s4103_s11  ;;  %849 = vrot.lane.b32.xlu0 %v831_v56, %s4102_s10 }
 0x55d   :  { %1359 = vrot.lane.b32.xlu0 %v1341_v59, %s4103_s11  ;;  %1191 = vrot.lane.b32.xlu1 %v3636_v47, %s4104_s12 }
 0x561   :  { %1187 = vrot.lane.b32.xlu1 %v1168_v63, %s4104_s12  ;;  %1193 = vrot.lane.b32.xlu0 %v3637_v45, %s4104_s12 }
 0x565   :  { %1189 = vrot.lane.b32.xlu0 %v1171_v54, %s4104_s12  ;;  %1527 = vrot.lane.b32.xlu1 %v1508_v4, %s4105_s23 }
 0x569   :  { %1531 = vrot.lane.b32.xlu1 %v3652_v52, %s4105_s23  ;;  %1529 = vrot.lane.b32.xlu0 %v1511_v48, %s4105_s23 }
 0x56d   :  { %1533 = vrot.lane.b32.xlu0 %v3653_v34, %s4105_s23  ;;  %1649 = vrot.lane.b32.xlu1 %v5731_v20, %s4093_s26 }
 0x571   :  { %1647 = vrot.lane.b32.xlu0 %v5732_v13, %s4093_s26  ;;  %1645 = vrot.lane.b32.xlu1 %v5733_v11, %s4093_s26 }
 0x575   :  { %1643 = vrot.lane.b32.xlu0 %v5734_v17, %s4093_s26 }
 0x5a7   :  { %v682_v37 = vpop.permute.xlu1 %681 }
 0x5ab   :  { %v678_v58 = vpop.permute.xlu1 %677  ;;  %v684_v39 = vpop.permute.xlu0 %683 }
 0x5af   :  { %v512_v53 = vpop.permute.xlu1 %511  ;;  %v680_v14 = vpop.permute.xlu0 %679 }
 0x5b0   :  { %522 = vst.msk [vmem:[#allocation2 + $0x10] sm:$0xff] %vm519_vm8, %v512_v53  ;;  %v5738_v53 = vmov 13  }
 0x5b1   :  { %692 = vst.msk [vmem:[#allocation2 + $0x10] sm:$0xff] %vm689_vm9, %v682_v37  ;;  %v5735_v37 = vmov 9  }
 0x5b3   :  { %v1022_v16 = vpop.permute.xlu1 %1021  ;;  %v514_v7 = vpop.permute.xlu0 %513 }
 0x5b4   :  { %523 = vst.msk [vmem:[#allocation2 + $0x18] sm:$0xff] %vm519_vm8, %v514_v7 }
 0x5b5   :  { %693 = vst.msk [vmem:[#allocation2 + $0x18] sm:$0xff] %vm689_vm9, %v684_v39  ;;  %v5737_v39 = vmov 10  }
 0x5b7   :  { %v508_v9 = vpop.permute.xlu1 %507  ;;  %v1024_v1 = vpop.permute.xlu0 %1023 }
 0x5b8   :  { %520 = vst.msk [vmem:[#allocation2] sm:$0xff] %vm519_vm8, %v508_v9  ;;  %v5741_v9 = vmov 14  }
 0x5b9   :  { %690 = vst.msk [vmem:[#allocation2] sm:$0xff] %vm689_vm9, %v678_v58  ;;  %v5736_v58 = vmov 11  }
 0x5bb   :  { %v1018_v18 = vpop.permute.xlu1 %1017  ;;  %v510_v61 = vpop.permute.xlu0 %509 }
 0x5bc   :  { %521 = vst.msk [vmem:[#allocation2 + $0x8] sm:$0xff] %vm519_vm8, %v510_v61 }
 0x5bd   :  { %691 = vst.msk [vmem:[#allocation2 + $0x8] sm:$0xff] %vm689_vm9, %v680_v14  ;;  %v5739_v14 = vmov 15  }
 0x5bf   :  { %v852_v62 = vpop.permute.xlu1 %851  ;;  %v1020_v19 = vpop.permute.xlu0 %1019 }
 0x5c0   :  { %862 = vst.msk [vmem:[#allocation2 + $0x10] sm:$0xff] %vm859_vm10, %v852_v62 }
 0x5c1   :  { %1032 = vst.msk [vmem:[#allocation2 + $0x10] sm:$0xff] %vm1029_vm11, %v1022_v16  ;;  %v5740_v16 = vmov 12  }
 0x5c3   :  { %v1362_v51 = vpop.permute.xlu1 %1361  ;;  %v854_v35 = vpop.permute.xlu0 %853 }
 0x5c4   :  { %863 = vst.msk [vmem:[#allocation2 + $0x18] sm:$0xff] %vm859_vm10, %v854_v35 }
 0x5c5   :  { %1033 = vst.msk [vmem:[#allocation2 + $0x18] sm:$0xff] %vm1029_vm11, %v1024_v1  ;;  %v5742_v1 = vmov 8  }
 0x5c7   :  { %v848_v50 = vpop.permute.xlu1 %847  ;;  %v1364_v55 = vpop.permute.xlu0 %1363 }
 0x5c8   :  { %860 = vst.msk [vmem:[#allocation2] sm:$0xff] %vm859_vm10, %v848_v50 }
 0x5c9   :  { %1030 = vst.msk [vmem:[#allocation2] sm:$0xff] %vm1029_vm11, %v1018_v18 }
 0x5cb   :  { %v1358_v23 = vpop.permute.xlu1 %1357  ;;  %v850_v10 = vpop.permute.xlu0 %849 }
 0x5cc   :  { %861 = vst.msk [vmem:[#allocation2 + $0x8] sm:$0xff] %vm859_vm10, %v850_v10 }
 0x5cd   :  { %1031 = vst.msk [vmem:[#allocation2 + $0x8] sm:$0xff] %vm1029_vm11, %v1020_v19 }
 0x5cf   :  { %v1192_v38 = vpop.permute.xlu1 %1191  ;;  %v1360_v26 = vpop.permute.xlu0 %1359 }
 0x5d0   :  { %1202 = vst.msk [vmem:[#allocation2 + $0x10] sm:$0xff] %vm1199_vm12, %v1192_v38 }
 0x5d1   :  { %1372 = vst.msk [vmem:[#allocation2 + $0x10] sm:$0xff] %vm1369_vm13, %v1362_v51 }
 0x5d3   :  { %v1188_v5 = vpop.permute.xlu1 %1187  ;;  %v1194_v29 = vpop.permute.xlu0 %1193 }
 0x5d4   :  { %1200 = vst.msk [vmem:[#allocation2] sm:$0xff] %vm1199_vm12, %v1188_v5  ;;  %1203 = vst.msk [vmem:[#allocation2 + $0x18] sm:$0xff] %vm1199_vm12, %v1194_v29 }
 0x5d5   :  { %1370 = vst.msk [vmem:[#allocation2] sm:$0xff] %vm1369_vm13, %v1358_v23  ;;  %1373 = vst.msk [vmem:[#allocation2 + $0x18] sm:$0xff] %vm1369_vm13, %v1364_v55 }
 0x5d7   :  { %v1528_v60 = vpop.permute.xlu1 %1527  ;;  %v1190_v6 = vpop.permute.xlu0 %1189 }
 0x5d8   :  { %1540 = vst.msk [vmem:[#allocation2] sm:$0xff] %vm1539_vm14, %v1528_v60 }
 0x5d9   :  { %1201 = vst.msk [vmem:[#allocation2 + $0x8] sm:$0xff] %vm1199_vm12, %v1190_v6 }
 0x5da   :  { %1371 = vst.msk [vmem:[#allocation2 + $0x8] sm:$0xff] %vm1369_vm13, %v1360_v26 }
 0x5db   :  { %v1532_v12 = vpop.permute.xlu1 %1531  ;;  %v1530_v46 = vpop.permute.xlu0 %1529 }
 0x5dc   :  { %1542 = vst.msk [vmem:[#allocation2 + $0x10] sm:$0xff] %vm1539_vm14, %v1532_v12  ;;  %1541 = vst.msk [vmem:[#allocation2 + $0x8] sm:$0xff] %vm1539_vm14, %v1530_v46 }
 0x5df   :  { %v1534_v21 = vpop.permute.xlu0 %1533  ;;  %v1544_v33 = vld [vmem:[#allocation2] sm:$0xff]  ;;  %v1650_v0 = vpop.permute.xlu1 %1649 }
 0x5e0   :  { %1543 = vst.msk [vmem:[#allocation2 + $0x18] sm:$0xff] %vm1539_vm14, %v1534_v21  ;;  %v1552_v2 = vmul.f32 1.442695, %v1544_v33  ;;  %3666 = vmatprep.subr.bf16.mxu0 %v1650_v0  ;;  %vm1548_vm15 = vcmp.gt.f32.partialorder %v1544_v33, 0.0 }
 0x5e1   :  { %3667 = vmatpush3.bf16.msra.mxu0 %v1650_v0 }
 0x5e2   :  { %3952 = vpow2.f32 %v1552_v2 }
 0x5e3   :  { %v1545_v3 = vld [vmem:[#allocation2 + $0x8] sm:$0xff]  ;;  %v1546_v27 = vld [vmem:[#allocation2 + $0x10] sm:$0xff]  ;;  %v1648_v40 = vpop.permute.xlu0 %1647  ;;  %v1646_v56 = vpop.permute.xlu1 %1645 }
 0x5e4   :  { %v1554_v41 = vmul.f32 1.442695, %v1545_v3  ;;  %v1556_v8 = vmul.f32 1.442695, %v1546_v27  ;;  %3668 = vmatprep.subr.bf16.mxu0 %v1648_v40  ;;  %vm1549_vm0 = vcmp.gt.f32.partialorder %v1545_v3, 0.0  ;;  %vm1550_vm3 = vcmp.gt.f32.partialorder %v1546_v27, 0.0 }
 0x5e5   :  { %3669 = vmatpush3.bf16.msra.mxu0 %v1648_v40 }
 0x5e6   :  { %3954 = vpow2.f32 %v1554_v41  ;;  %3670 = vmatprep.subr.bf16.mxu0 %v1646_v56  ;;  %v5745_v41 = vld [vmem:[#allocation8_spill] sm:$0xff] }
 0x5e7   :  { %v1547_v47 = vld [vmem:[#allocation2 + $0x18] sm:$0xff]  ;;  %3956 = vpow2.f32 %v1556_v8  ;;  %v1644_v32 = vpop.permute.xlu0 %1643 }
 0x5e8   :  { %v1558_v24 = vmul.f32 1.442695, %v1547_v47  ;;  %vm1551_vm4 = vcmp.gt.f32.partialorder %v1547_v47, 0.0 }
 0x5e9   :  { %3671 = vmatpush3.bf16.msra.mxu0 %v1646_v56 }
 0x5ea   :  { %3958 = vpow2.f32 %v1558_v24  ;;  %3672 = vmatprep.subr.bf16.mxu0 %v1644_v32 }
 0x5ed   :  { %3673 = vmatpush3.bf16.msra.mxu0 %v1644_v32 }
 0x5ef   :  { %v3953_v63 = vpop.eup %3952 }
 0x5f0   :  { %v3432_v36 = vadd.f32 -1.0, %v3953_v63 }
 0x5f2   :  { %v1564_v52 = vsel %vm1548_vm15, %v1544_v33, %v3432_v36 }
 0x5f3   :  { %v3955_v45 = vpop.eup %3954 }
 0x5f4   :  { %v3957_v54 = vpop.eup %3956  ;;  %v3433_v59 = vadd.f32 -1.0, %v3955_v45 }
 0x5f5   :  { %v3434_v57 = vadd.f32 -1.0, %v3957_v54 }
 0x5f6   :  { %v1565_v4 = vsel %vm1549_vm0, %v1545_v3, %v3433_v59 }
 0x5f7   :  { %v3959_v22 = vpop.eup %3958  ;;  %v1568_v42 = vpack.c.bf16 %v1565_v4, %v1564_v52  ;;  %v1566_v44 = vsel %vm1550_vm3, %v1546_v27, %v3434_v57  ;;  %v5743_v27 = vld [vmem:[#allocation7_spill] sm:$0xff] }
 0x5f8   :  { %v3435_v31 = vadd.f32 -1.0, %v3959_v22  ;;  %v5744_v40 = vsub.s32 4, %v5743_v27  ;;  %v5747_v63 = vsub.s32 1, %v5743_v27  ;;  %v5748_v45 = vsub.s32 6, %v5743_v27 }
 0x5f9   :  { %3662 = vmatprep.mubr.msk.bf16.mxu1 %vm111_vm1, %v1568_v42  ;;  %v5749_v59 = vsub.s32 2, %v5743_v27  ;;  %v5750_v4 = vsub.s32 7, %v5743_v27  ;;  %v5751_v22 = vsub.s32 3, %v5743_v27 }
 0x5fa   :  { %v1567_v25 = vsel %vm1551_vm4, %v1547_v47, %v3435_v31  ;;  %v5746_v47 = vsub.s32 5, %v5743_v27 }
 0x5fb   :  { %v1569_v34 = vpack.c.bf16 %v1567_v25, %v1566_v44 }
 0x5fd   :  { %3663 = vmatmul.mubr.msk.bf16.vlgmr.msra.gmra.mxu1 %vm111_vm1, %v1569_v34 }
 0x6bd   :  { %v3664_v30 = vpop.f32.mrf.mxu1 }
 0x6bf   :  { %v1622_v43 = vpop.f32.mrf.mxu1 }
 0x6c1   :  { %v3665_v48 = vpop.f32.mrf.mxu1 }
 0x6c2   :  { %v4929_v28 = vpack.c.bf16 %v3665_v48, %v3664_v30 }
 0x6c3   :  { %v1625_v49 = vpop.f32.mrf.mxu1 }
 0x6c4   :  { %v4931_v15 = vpack.c.bf16 %v1625_v49, %v1622_v43  ;;  %1985 = vrot.lane.b32.xlu1 %v4929_v28, %s4092_s1  ;;  %3678 = vmatprep.subr.bf16.mxu1 %v4929_v28 }
 0x6c5   :  { %3679 = vmatpush3.bf16.msra.mxu1 %v4929_v28 }
 0x6c6   :  { %1983 = vrot.lane.b32.xlu0 %v4931_v15, %s4092_s1  ;;  %3674 = vmatprep.mubr.msk.bf16.mxu0 %vm111_vm1, %v4931_v15 }
 0x6c7   :  { %3680 = vmatprep.subr.bf16.mxu1 %v4931_v15  ;;  %3675 = vmatmul.mubr.msk.bf16.vlgmr.msra.gmra.mxu0 %vm111_vm1, %v4929_v28 }
 0x6c9   :  { %3681 = vmatpush3.bf16.msra.mxu1 %v4931_v15 }
 0x736   :  { %v1986_v20 = vpop.permute.xlu1 %1985 }
 0x737   :  { %3686 = vmatprep.subr.bf16.mxu0 %v1986_v20 }
 0x738   :  { %3687 = vmatpush3.bf16.msra.mxu0 %v1986_v20  ;;  %v1984_v13 = vpop.permute.xlu0 %1983 }
 0x739   :  { %3688 = vmatprep.subr.bf16.mxu0 %v1984_v13 }
 0x73c   :  { %3689 = vmatpush3.bf16.msra.mxu0 %v1984_v13 }
 0x787   :  { %v4945_v11 = vpop.f32.mrf.mxu0 }
 0x788   :  { %1754 = vperm.xlu1 %3820, %v4945_v11  }
 0x789   :  { %v4948_v17 = vpop.f32.mrf.mxu0 }
 0x78a   :  { %1894 = vperm.xlu0 %3829, %v4948_v17  }
 0x78b   :  { %v3677_v7 = vpop.f32.mrf.mxu0 }
 0x78c   :  { %3821 = vset.pattern.permute.xlu1 %v5735_v37 }
 0x78d   :  { %1902 = vperm.xlu1 %3821, %v4945_v11   ;;  %v1698_v18 = vpop.f32.mrf.mxu0 }
 0x78e   :  { %3831 = vset.pattern.permute.xlu0 %v5736_v58 }
 0x78f   :  { %2234 = vperm.xlu0 %3831, %v4948_v17  }
 0x791   :  { %3822 = vset.pattern.permute.xlu1 %v5737_v39 }
 0x792   :  { %2073 = vperm.xlu1 %3822, %v4945_v11  }
 0x793   :  { %3833 = vset.pattern.permute.xlu0 %v5738_v53 }
 0x794   :  { %2572 = vperm.xlu0 %3833, %v4948_v17  }
 0x796   :  { %3823 = vset.pattern.permute.xlu1 %v5736_v58 }
 0x797   :  { %2242 = vperm.xlu1 %3823, %v4945_v11  }
 0x798   :  { %3835 = vset.pattern.permute.xlu0 %v5739_v14 }
 0x799   :  { %2910 = vperm.xlu0 %3835, %v4948_v17  }
 0x79b   :  { %3824 = vset.pattern.permute.xlu1 %v5740_v16 }
 0x79c   :  { %2411 = vperm.xlu1 %3824, %v4945_v11  }
 0x79d   :  { %3837 = vset.pattern.permute.xlu0 %v5735_v37 }
 0x79e   :  { %1906 = vperm.xlu0 %3837, %v3677_v7  }
 0x7a0   :  { %3825 = vset.pattern.permute.xlu1 %v5738_v53 }
 0x7a1   :  { %2580 = vperm.xlu1 %3825, %v4945_v11  }
 0x7a2   :  { %3839 = vset.pattern.permute.xlu0 %v5736_v58 }
 0x7a3   :  { %2246 = vperm.xlu0 %3839, %v3677_v7  }
 0x7a5   :  { %3826 = vset.pattern.permute.xlu1 %v5741_v9 }
 0x7a6   :  { %2749 = vperm.xlu1 %3826, %v4945_v11  }
 0x7a7   :  { %3841 = vset.pattern.permute.xlu0 %v5738_v53 }
 0x7a8   :  { %2584 = vperm.xlu0 %3841, %v3677_v7  }
 0x7aa   :  { %3827 = vset.pattern.permute.xlu1 %v5739_v14 }
 0x7ab   :  { %2918 = vperm.xlu1 %3827, %v4945_v11  }
 0x7ac   :  { %3843 = vset.pattern.permute.xlu0 %v5739_v14 }
 0x7ad   :  { %2922 = vperm.xlu0 %3843, %v3677_v7  }
 0x7af   :  { %3828 = vset.pattern.permute.xlu1 %v5742_v1 }
 0x7b0   :  { %1744 = vperm.xlu1 %3828, %v4948_v17  }
 0x7b1   :  { %3844 = vset.pattern.permute.xlu0 %v5742_v1 }
 0x7b2   :  { %1749 = vperm.xlu0 %3844, %v1698_v18  }
 0x7b4   :  { %3830 = vset.pattern.permute.xlu1 %v5737_v39 }
 0x7b5   :  { %2065 = vperm.xlu1 %3830, %v4948_v17  }
 0x7b6   :  { %3846 = vset.pattern.permute.xlu0 %v5737_v39 }
 0x7b7   :  { %2069 = vperm.xlu0 %3846, %v1698_v18  }
 0x7b9   :  { %3832 = vset.pattern.permute.xlu1 %v5740_v16 }
 0x7ba   :  { %2403 = vperm.xlu1 %3832, %v4948_v17  }
 0x7bb   :  { %3848 = vset.pattern.permute.xlu0 %v5740_v16 }
 0x7bc   :  { %2407 = vperm.xlu0 %3848, %v1698_v18  }
 0x7be   :  { %3834 = vset.pattern.permute.xlu1 %v5741_v9 }
 0x7bf   :  { %2741 = vperm.xlu1 %3834, %v4948_v17  }
 0x7c0   :  { %3850 = vset.pattern.permute.xlu0 %v5741_v9 }
 0x7c1   :  { %2745 = vperm.xlu0 %3850, %v1698_v18  }
 0x7c3   :  { %3836 = vset.pattern.permute.xlu1 %v5742_v1 }
 0x7c4   :  { %1759 = vperm.xlu1 %3836, %v3677_v7  }
 0x7c8   :  { %3838 = vset.pattern.permute.xlu1 %v5737_v39 }
 0x7c9   :  { %2077 = vperm.xlu1 %3838, %v3677_v7  }
 0x7cd   :  { %3840 = vset.pattern.permute.xlu1 %v5740_v16 }
 0x7ce   :  { %2415 = vperm.xlu1 %3840, %v3677_v7  }
 0x7d2   :  { %3842 = vset.pattern.permute.xlu1 %v5741_v9 }
 0x7d3   :  { %2753 = vperm.xlu1 %3842, %v3677_v7  }
 0x7d7   :  { %3845 = vset.pattern.permute.xlu1 %v5735_v37 }
 0x7d8   :  { %1898 = vperm.xlu1 %3845, %v1698_v18  }
 0x7dc   :  { %3847 = vset.pattern.permute.xlu1 %v5736_v58 }
 0x7dd   :  { %2238 = vperm.xlu1 %3847, %v1698_v18  }
 0x7e1   :  { %3849 = vset.pattern.permute.xlu1 %v5738_v53  ;;  %v5752_v53 = vld [vmem:[#allocation10_spill] sm:$0xff] }
 0x7e2   :  { %2576 = vperm.xlu1 %3849, %v1698_v18  }
 0x7e6   :  { %3851 = vset.pattern.permute.xlu1 %v5739_v14 }
 0x7e7   :  { %2914 = vperm.xlu1 %3851, %v1698_v18  }
 0x803   :  { %v1755_v61 = vpop.permute.xlu1 %1754 }
 0x805   :  { %v1895_v2 = vpop.permute.xlu0 %1894 }
 0x808   :  { %v1903_v62 = vpop.permute.xlu1 %1902 }
 0x80a   :  { %v5056_v32 = vpop.permute.xlu0 %2234 }
 0x80d   :  { %v2074_v19 = vpop.permute.xlu1 %2073 }
 0x810   :  { %1710 = vxpose.xlu1.b32.start [1/4] (short) (narrow) %v4948_v17, 8 }
 0x812   :  { %v2243_v51 = vpop.permute.xlu1 %2242 }
 0x814   :  { %1711 = vxpose.xlu1.b32.cont [2/4] (short) (narrow) %v1698_v18, 8 }
 0x817   :  { %v2412_v35 = vpop.permute.xlu1 %2411 }
 0x818   :  { %1712 = vxpose.xlu1.b32.cont [3/4] (short) (narrow) %v4945_v11, 8 }
 0x81c   :  { %1713 = vxpose.xlu1.b32.end [4/4] (short) (narrow) %v3677_v7, 8  ;;  %v2581_v50 = vpop.permute.xlu1 %2580 }
 0x821   :  { %v2750_v55 = vpop.permute.xlu1 %2749 }
 0x826   :  { %v2919_v23 = vpop.permute.xlu1 %2918 }
 0x82b   :  { %v4997_v10 = vpop.permute.xlu1 %1744 }
 0x830   :  { %v4999_v38 = vpop.permute.xlu1 %2065 }
 0x835   :  { %v5001_v26 = vpop.permute.xlu1 %2403 }
 0x83a   :  { %v5003_v5 = vpop.permute.xlu1 %2741 }
 0x83f   :  { %v5005_v29 = vpop.permute.xlu1 %1759 }
 0x844   :  { %v5007_v60 = vpop.permute.xlu1 %2077 }
 0x849   :  { %v5009_v6 = vpop.permute.xlu1 %2415 }
 0x84e   :  { %v5011_v12 = vpop.permute.xlu1 %2753 }
 0x853   :  { %v5013_v46 = vpop.permute.xlu1 %1898 }
 0x858   :  { %v5015_v21 = vpop.permute.xlu1 %2238 }
 0x85d   :  { %v5017_v33 = vpop.permute.xlu1 %2576 }
 0x862   :  { %v5019_v0 = vpop.permute.xlu1 %2914 }
 0x88c   :  { %v1726_v3 = vpop.trf.xlu1 }
 0x88d   :  { %v5023_v56 = vrot.slane %v1726_v3, %v5744_v40  ;;  %v5026_v8 = vrot.slane %v1726_v3, %v5745_v41  ;;  %v5030_v24 = vrot.slane %v1726_v3, %v5746_v47  ;;  %v5034_v36 = vrot.slane %v1726_v3, %v5747_v63 }
 0x88e   :  { %v5038_v54 = vrot.slane %v1726_v3, %v5748_v45  ;;  %v5042_v52 = vrot.slane %v1726_v3, %v5749_v59  ;;  %v5046_v57 = vrot.slane %v1726_v3, %v5750_v4  ;;  %v5050_v42 = vrot.slane %v1726_v3, %v5751_v22 }
 0x88f   :  { %v2424_v31 = vadd.f32 %v5023_v56, %v2412_v35  ;;  %v1768_v44 = vadd.f32 %v5026_v8, %v1755_v61  ;;  %v2593_v25 = vadd.f32 %v5030_v24, %v2581_v50  ;;  %v1915_v34 = vadd.f32 %v5034_v36, %v1903_v62  ;;  %v2573_v62 = vpop.permute.xlu0 %2572 }
 0x890   :  { %v2762_v30 = vadd.f32 %v5038_v54, %v2750_v55  ;;  %v2086_v43 = vadd.f32 %v5042_v52, %v2074_v19  ;;  %v2931_v48 = vadd.f32 %v5046_v57, %v2919_v23  ;;  %v2255_v49 = vadd.f32 %v5050_v42, %v2243_v51 }
 0x891   :  { %vm2428_vm5 = vcmp.gt.f32.partialorder %v2424_v31, 0.0  ;;  %v2432_v20 = vmul.f32 0.2, %v2424_v31  ;;  %vm1772_vm6 = vcmp.gt.f32.partialorder %v1768_v44, 0.0  ;;  %v1776_v13 = vmul.f32 0.2, %v1768_v44 }
 0x892   :  { %vm2597_vm15 = vcmp.gt.f32.partialorder %v2593_v25, 0.0  ;;  %v2601_v11 = vmul.f32 0.2, %v2593_v25  ;;  %vm1919_vm0 = vcmp.gt.f32.partialorder %v1915_v34, 0.0  ;;  %v1923_v17 = vmul.f32 0.2, %v1915_v34 }
 0x893   :  { %v2436_v37 = vsel %vm2428_vm5, %v2424_v31, %v2432_v20  ;;  %v1780_v58 = vsel %vm1772_vm6, %v1768_v44, %v1776_v13  ;;  %vm2766_vm3 = vcmp.gt.f32.partialorder %v2762_v30, 0.0  ;;  %v2770_v39 = vmul.f32 0.2, %v2762_v30 }
 0x894   :  { %v5063_v14 = vadd.f32 %v5752_v53, %v2436_v37  ;;  %v5066_v16 = vadd.f32 %v5752_v53, %v1780_v58  ;;  %v2605_v7 = vsel %vm2597_vm15, %v2593_v25, %v2601_v11  ;;  %v1927_v9 = vsel %vm1919_vm0, %v1915_v34, %v1923_v17  ;;  %v2911_v25 = vpop.permute.xlu0 %2910  ;;  %v5753_v58 = vld [vmem:[#allocation12_spill] sm:$0xff] }
 0x895   :  { %v5069_v1 = vadd.f32 %v5752_v53, %v2605_v7  ;;  %v5072_v18 = vadd.f32 %v5752_v53, %v1927_v9  ;;  %v2774_v61 = vsel %vm2766_vm3, %v2762_v30, %v2770_v39  ;;  %vm2090_vm4 = vcmp.gt.f32.partialorder %v2086_v43, 0.0 }
 0x896   :  { %v2448_v19 = vsel %vm243_vm2, %v5063_v14, -inf  ;;  %v1792_v51 = vsel %vm243_vm2, %v5066_v16, -inf  ;;  %v2094_v35 = vmul.f32 0.2, %v2086_v43  ;;  %v5079_v50 = vadd.f32 %v5752_v53, %v2774_v61 }
 0x897   :  { %2449 = vmax.xlane.f32.xlu1 %v2448_v19  ;;  %1793 = vmax.xlane.f32.xlu0 %v1792_v51  ;;  %vm2935_vm5 = vcmp.gt.f32.partialorder %v2931_v48, 0.0  ;;  %v2939_v55 = vmul.f32 0.2, %v2931_v48  ;;  %v2617_v23 = vsel %vm243_vm2, %v5069_v1, -inf  ;;  %vm2259_vm6 = vcmp.gt.f32.partialorder %v2255_v49, 0.0 }
 0x898   :  { %v2098_v3 = vsel %vm2090_vm4, %v2086_v43, %v2094_v35  ;;  %v2263_v27 = vmul.f32 0.2, %v2255_v49  ;;  %v1939_v40 = vsel %vm243_vm2, %v5072_v18, -inf  ;;  %v1766_v63 = vadd.f32 %v5026_v8, %v4997_v10  ;;  %v1907_v7 = vpop.permute.xlu0 %1906 }
 0x899   :  { %v5086_v47 = vadd.f32 %v5752_v53, %v2098_v3  ;;  %v2591_v45 = vadd.f32 %v5030_v24, %v2573_v62  ;;  %v2943_v59 = vsel %vm2935_vm5, %v2931_v48, %v2939_v55  ;;  %v1913_v22 = vadd.f32 %v5034_v36, %v1895_v2 }
 0x89a   :  { %v2267_v4 = vsel %vm2259_vm6, %v2255_v49, %v2263_v27  ;;  %v2760_v31 = vadd.f32 %v5038_v54, %v5003_v5  ;;  %vm1770_vm15 = vcmp.gt.f32.partialorder %v1766_v63, 0.0  ;;  %v1774_v44 = vmul.f32 0.2, %v1766_v63 }
 0x89b   :  { %2618 = vmax.xlane.f32.xlu1 %v2617_v23  ;;  %1940 = vmax.xlane.f32.xlu0 %v1939_v40  ;;  %vm2595_vm0 = vcmp.gt.f32.partialorder %v2591_v45, 0.0  ;;  %v2599_v34 = vmul.f32 0.2, %v2591_v45  ;;  %v2786_v30 = vsel %vm243_vm2, %v5079_v50, -inf  ;;  %v2110_v10 = vsel %vm243_vm2, %v5086_v47, -inf }
 0x89c   :  { %v5099_v43 = vadd.f32 %v5752_v53, %v2943_v59  ;;  %v5102_v2 = vadd.f32 %v5752_v53, %v2267_v4  ;;  %v1778_v5 = vsel %vm1770_vm15, %v1766_v63, %v1774_v44  ;;  %v1921_v48 = vmul.f32 0.2, %v1913_v22 }
 0x89d   :  { %v2768_v49 = vmul.f32 0.2, %v2760_v31  ;;  %v2084_v20 = vadd.f32 %v5042_v52, %v4999_v38  ;;  %v2603_v13 = vsel %vm2595_vm0, %v2591_v45, %v2599_v34  ;;  %vm1917_vm3 = vcmp.gt.f32.partialorder %v1913_v22, 0.0 }
 0x89e   :  { %vm2764_vm4 = vcmp.gt.f32.partialorder %v2760_v31, 0.0  ;;  %v2929_v11 = vadd.f32 %v5046_v57, %v2911_v25  ;;  %v2955_v17 = vsel %vm243_vm2, %v5099_v43, -inf  ;;  %v2279_v37 = vsel %vm243_vm2, %v5102_v2, -inf }
 0x89f   :  { %2787 = vmax.xlane.f32.xlu1 %v2786_v30  ;;  %2111 = vmax.xlane.f32.xlu0 %v2110_v10  ;;  %v5112_v39 = vadd.f32 %v5753_v58, %v1778_v5  ;;  %v5115_v9 = vadd.f32 %v5753_v58, %v2603_v13  ;;  %v1925_v38 = vsel %vm1917_vm3, %v1913_v22, %v1921_v48  ;;  %v2092_v62 = vmul.f32 0.2, %v2084_v20 }
 0x8a0   :  { %v2772_v61 = vsel %vm2764_vm4, %v2760_v31, %v2768_v49  ;;  %vm2088_vm5 = vcmp.gt.f32.partialorder %v2084_v20, 0.0  ;;  %v2937_v19 = vmul.f32 0.2, %v2929_v11  ;;  %v2253_v51 = vadd.f32 %v5050_v42, %v5056_v32  ;;  %v5754_v49 = vld [vmem:[#allocation9_spill] sm:$0xff] }
 0x8a1   :  { %v1916_v35 = vadd.f32 %v5034_v36, %v1907_v7  ;;  %vm2933_vm6 = vcmp.gt.f32.partialorder %v2929_v11, 0.0  ;;  %v1786_v55 = vsel %vm243_vm2, %v5112_v39, -inf  ;;  %v2611_v23 = vsel %vm243_vm2, %v5115_v9, -inf }
 0x8a2   :  { %v5125_v3 = vadd.f32 %v5753_v58, %v1925_v38  ;;  %v5128_v27 = vadd.f32 %v5753_v58, %v2772_v61  ;;  %v2096_v40 = vsel %vm2088_vm5, %v2084_v20, %v2092_v62  ;;  %v2941_v63 = vsel %vm2933_vm6, %v2929_v11, %v2937_v19 }
 0x8a3   :  { %2956 = vmax.xlane.f32.xlu1 %v2955_v17  ;;  %2280 = vmax.xlane.f32.xlu0 %v2279_v37  ;;  %v2261_v32 = vmul.f32 0.2, %v2253_v51  ;;  %v1924_v45 = vmul.f32 0.2, %v1916_v35  ;;  %v2422_v59 = vadd.f32 %v5023_v56, %v5001_v26  ;;  %vm2257_vm15 = vcmp.gt.f32.partialorder %v2253_v51, 0.0 }
 0x8a4   :  { %vm1920_vm0 = vcmp.gt.f32.partialorder %v1916_v35, 0.0  ;;  %v1933_v4 = vsel %vm243_vm2, %v5125_v3, -inf  ;;  %v2780_v22 = vsel %vm243_vm2, %v5128_v27, -inf  ;;  %v5137_v31 = vadd.f32 %v5753_v58, %v2096_v40 }
 0x8a5   :  { %v5140_v44 = vadd.f32 %v5753_v58, %v2941_v63  ;;  %v2265_v25 = vsel %vm2257_vm15, %v2253_v51, %v2261_v32  ;;  %v1928_v34 = vsel %vm1920_vm0, %v1916_v35, %v1924_v45  ;;  %v2430_v30 = vmul.f32 0.2, %v2422_v59  ;;  %v2247_v51 = vpop.permute.xlu0 %2246 }
 0x8a6   :  { %v1769_v26 = vadd.f32 %v5026_v8, %v5005_v29  ;;  %vm2426_vm3 = vcmp.gt.f32.partialorder %v2422_v59, 0.0  ;;  %v2104_v10 = vsel %vm243_vm2, %v5137_v31, -inf  ;;  %v5149_v48 = vadd.f32 %v5753_v58, %v2265_v25 }
 0x8a7   :  { %1787 = vmax.xlane.f32.xlu0 %v1786_v55  ;;  %2612 = vmax.xlane.f32.xlu1 %v2611_v23  ;;  %v2949_v5 = vsel %vm243_vm2, %v5140_v44, -inf  ;;  %v5152_v20 = vadd.f32 %v5754_v49, %v1928_v34  ;;  %v2434_v13 = vsel %vm2426_vm3, %v2422_v59, %v2430_v30  ;;  %v2087_v19 = vadd.f32 %v5042_v52, %v5007_v60 }
 0x8a8   :  { %v1777_v11 = vmul.f32 0.2, %v1769_v26  ;;  %vm1773_vm4 = vcmp.gt.f32.partialorder %v1769_v26, 0.0  ;;  %v2273_v29 = vsel %vm243_vm2, %v5149_v48, -inf  ;;  %v5159_v37 = vadd.f32 %v5753_v58, %v2434_v13 }
 0x8a9   :  { %v1942_v17 = vsel %vm243_vm2, %v5152_v20, -inf  ;;  %v2095_v35 = vmul.f32 0.2, %v2087_v19  ;;  %v2256_v55 = vadd.f32 %v5050_v42, %v2247_v51  ;;  %vm2091_vm5 = vcmp.gt.f32.partialorder %v2087_v19, 0.0  ;;  %v2585_v32 = vpop.permute.xlu0 %2584 }
 0x8aa   :  { %v1781_v7 = vsel %vm1773_vm4, %v1769_v26, %v1777_v11  ;;  %v2442_v38 = vsel %vm243_vm2, %v5159_v37, -inf  ;;  %v2425_v63 = vadd.f32 %v5023_v56, %v5009_v6  ;;  %v2763_v26 = vadd.f32 %v5038_v54, %v5011_v12 }
 0x8ab   :  { %1934 = vmax.xlane.f32.xlu0 %v1933_v4  ;;  %2781 = vmax.xlane.f32.xlu1 %v2780_v22  ;;  %v5164_v61 = vadd.f32 %v5754_v49, %v1781_v7  ;;  %v2099_v23 = vsel %vm2091_vm5, %v2087_v19, %v2095_v35  ;;  %v2264_v40 = vmul.f32 0.2, %v2256_v55  ;;  %vm2260_vm6 = vcmp.gt.f32.partialorder %v2256_v55, 0.0 }
 0x8ac   :  { %v5192_v45 = vadd.f32 %v5754_v49, %v2099_v23  ;;  %v2433_v4 = vmul.f32 0.2, %v2425_v63  ;;  %v2594_v22 = vadd.f32 %v5030_v24, %v2585_v32  ;;  %vm2429_vm15 = vcmp.gt.f32.partialorder %v2425_v63, 0.0 }
 0x8ad   :  { %v1795_v62 = vsel %vm243_vm2, %v5164_v61, -inf  ;;  %v2268_v59 = vsel %vm2260_vm6, %v2256_v55, %v2264_v40  ;;  %v2923_v34 = vpop.permute.xlu0 %2922  ;;  %v2771_v11 = vmul.f32 0.2, %v2763_v26  ;;  %vm2767_vm3 = vcmp.gt.f32.partialorder %v2763_v26, 0.0 }
 0x8ae   :  { %v2113_v60 = vsel %vm243_vm2, %v5192_v45, -inf  ;;  %v5198_v25 = vadd.f32 %v5754_v49, %v2268_v59  ;;  %v2437_v30 = vsel %vm2429_vm15, %v2425_v63, %v2433_v4  ;;  %v2602_v6 = vmul.f32 0.2, %v2594_v22 }
 0x8af   :  { %2105 = vmax.xlane.f32.xlu0 %v2104_v10  ;;  %2950 = vmax.xlane.f32.xlu1 %v2949_v5  ;;  %vm2598_vm0 = vcmp.gt.f32.partialorder %v2594_v22, 0.0  ;;  %v5205_v5 = vadd.f32 %v5754_v49, %v2437_v30  ;;  %v2775_v12 = vsel %vm2767_vm3, %v2763_v26, %v2771_v11  ;;  %v1914_v63 = vadd.f32 %v5034_v36, %v5013_v46  ;;  %v5755_v30 = vld [vmem:[#allocation11_spill] sm:$0xff] }
 0x8b0   :  { %v2282_v10 = vsel %vm243_vm2, %v5198_v25, -inf  ;;  %v2606_v13 = vsel %vm2598_vm0, %v2594_v22, %v2602_v6  ;;  %v5217_v35 = vadd.f32 %v5754_v49, %v2775_v12  ;;  %v2254_v26 = vadd.f32 %v5050_v42, %v5015_v21 }
 0x8b1   :  { %v2451_v7 = vsel %vm243_vm2, %v5205_v5, -inf  ;;  %v1922_v4 = vmul.f32 0.2, %v1914_v63  ;;  %vm1918_vm6 = vcmp.gt.f32.partialorder %v1914_v63, 0.0 }
 0x8b2   :  { %v2789_v32 = vsel %vm243_vm2, %v5217_v35, -inf  ;;  %vm2258_vm0 = vcmp.gt.f32.partialorder %v2254_v26, 0.0 }
 0x8b3   :  { %2274 = vmax.xlane.f32.xlu0 %v2273_v29  ;;  %1943 = vmax.xlane.f32.xlu1 %v1942_v17  ;;  %v2932_v29 = vadd.f32 %v5046_v57, %v2923_v34  ;;  %v1750_v17 = vpop.permute.xlu0 %1749  ;;  %v1926_v46 = vsel %vm1918_vm6, %v1914_v63, %v1922_v4 }
 0x8b4   :  { %v1767_v19 = vadd.f32 %v5026_v8, %v1750_v17 }
 0x8b5   :  { %vm2936_vm4 = vcmp.gt.f32.partialorder %v2932_v29, 0.0 }
 0x8b6   :  { %v1775_v40 = vmul.f32 0.2, %v1767_v19  ;;  %vm1771_vm5 = vcmp.gt.f32.partialorder %v1767_v19, 0.0 }
 0x8b7   :  { %2443 = vmax.xlane.f32.xlu0 %v2442_v38  ;;  %v5211_v38 = vadd.f32 %v5754_v49, %v2606_v13  ;;  %v2070_v55 = vpop.permute.xlu0 %2069 }
 0x8b8   :  { %v1779_v59 = vsel %vm1771_vm5, %v1767_v19, %v1775_v40  ;;  %v2085_v22 = vadd.f32 %v5042_v52, %v2070_v55  ;;  %v5237_v52 = vadd.f32 %v5755_v30, %v1926_v46  ;;  %v2930_v46 = vadd.f32 %v5046_v57, %v5019_v0 }
 0x8b9   :  { %v2620_v51 = vsel %vm243_vm2, %v5211_v38, -inf  ;;  %v5230_v6 = vadd.f32 %v5755_v30, %v1779_v59 }
 0x8ba   :  { %v2093_v36 = vmul.f32 0.2, %v2085_v22  ;;  %vm2089_vm15 = vcmp.gt.f32.partialorder %v2085_v22, 0.0  ;;  %vm2934_vm6 = vcmp.gt.f32.partialorder %v2930_v46, 0.0 }
 0x8bb   :  { %1796 = vmax.xlane.f32.xlu0 %v1795_v62  ;;  %v2940_v62 = vmul.f32 0.2, %v2932_v29 }
 0x8bc   :  { %v2097_v11 = vsel %vm2089_vm15, %v2085_v22, %v2093_v36 }
 0x8bd   :  { %v2944_v23 = vsel %vm2936_vm4, %v2932_v29, %v2940_v62  ;;  %v2262_v29 = vmul.f32 0.2, %v2254_v26  ;;  %v5243_v12 = vadd.f32 %v5755_v30, %v2097_v11  ;;  %v2938_v11 = vmul.f32 0.2, %v2930_v46 }
 0x8be   :  { %v5224_v8 = vadd.f32 %v5754_v49, %v2944_v23 }
 0x8bf   :  { %v2266_v62 = vsel %vm2258_vm0, %v2254_v26, %v2262_v29 }
 0x8c0   :  { %v2958_v34 = vsel %vm243_vm2, %v5224_v8, -inf  ;;  %v5252_v55 = vadd.f32 %v5755_v30, %v2266_v62 }
 0x8c2   :  { %v2276_v4 = vsel %vm243_vm2, %v5252_v55, -inf }
 0x8c4   :  { %2154 = vrot.lane.b32.xlu1 %v4929_v28, %s4093_s26 }
 0x8c8   :  { %2490 = vrot.lane.b32.xlu1 %v4931_v15, %s4095_s28 }
 0x8cc   :  { %2830 = vrot.lane.b32.xlu1 %v4929_v28, %s4097_s30 }
 0x8d1   :  { %2323 = vrot.lane.b32.xlu0 %v4929_v28, %s4094_s27 }
 0x8d5   :  { %2152 = vrot.lane.b32.xlu0 %v4931_v15, %s4093_s26 }
 0x8d9   :  { %2321 = vrot.lane.b32.xlu0 %v4931_v15, %s4094_s27 }
 0x8dd   :  { %2492 = vrot.lane.b32.xlu0 %v4929_v28, %s4095_s28 }
 0x8e1   :  { %2661 = vrot.lane.b32.xlu0 %v4929_v28, %s4096_s29 }
 0x8e5   :  { %2659 = vrot.lane.b32.xlu0 %v4931_v15, %s4096_s29 }
 0x904   :  { %2114 = vmax.xlane.f32.xlu0 %v2113_v60  ;;  %v2408_v60 = vpop.permute.xlu0 %2407 }
 0x905   :  { %v2423_v17 = vadd.f32 %v5023_v56, %v2408_v60  ;;  %v2107_v56 = vsel %vm243_vm2, %v5243_v12, -inf }
 0x907   :  { %v2431_v19 = vmul.f32 0.2, %v2423_v17  ;;  %vm2427_vm3 = vcmp.gt.f32.partialorder %v2423_v17, 0.0 }
 0x908   :  { %2283 = vmax.xlane.f32.xlu0 %v2282_v10  ;;  %v1789_v10 = vsel %vm243_vm2, %v5230_v6, -inf  ;;  %v2746_v13 = vpop.permute.xlu0 %2745 }
 0x909   :  { %v2435_v63 = vsel %vm2427_vm3, %v2423_v17, %v2431_v19  ;;  %v2761_v59 = vadd.f32 %v5038_v54, %v2746_v13 }
 0x90b   :  { %vm2765_vm5 = vcmp.gt.f32.partialorder %v2761_v59, 0.0 }
 0x90c   :  { %2452 = vmax.xlane.f32.xlu0 %v2451_v7  ;;  %v1936_v7 = vsel %vm243_vm2, %v5237_v52, -inf }
 0x910   :  { %2621 = vmax.xlane.f32.xlu0 %v2620_v51  ;;  %v2592_v51 = vadd.f32 %v5030_v24, %v5017_v33  ;;  %v5260_v33 = vadd.f32 %v5755_v30, %v2435_v63 }
 0x912   :  { %vm2596_vm4 = vcmp.gt.f32.partialorder %v2592_v51, 0.0  ;;  %v2445_v54 = vsel %vm243_vm2, %v5260_v33, -inf }
 0x914   :  { %2790 = vmax.xlane.f32.xlu0 %v2789_v32  ;;  %v2600_v32 = vmul.f32 0.2, %v2592_v51 }
 0x916   :  { %v2604_v60 = vsel %vm2596_vm4, %v2592_v51, %v2600_v32 }
 0x917   :  { %v5271_v36 = vadd.f32 %v5755_v30, %v2604_v60 }
 0x918   :  { %2959 = vmax.xlane.f32.xlu0 %v2958_v34  ;;  %v2769_v34 = vmul.f32 0.2, %v2761_v59 }
 0x919   :  { %v2614_v29 = vsel %vm243_vm2, %v5271_v36, -inf }
 0x91a   :  { %v2773_v13 = vsel %vm2765_vm5, %v2761_v59, %v2769_v34 }
 0x91b   :  { %v5280_v0 = vadd.f32 %v5755_v30, %v2773_v13 }
 0x91c   :  { %1790 = vmax.xlane.f32.xlu0 %v1789_v10 }
 0x91d   :  { %v2783_v62 = vsel %vm243_vm2, %v5280_v0, -inf }
 0x920   :  { %v5245_v21 = vpop.xlane.xlu1 %2449  ;;  %1937 = vmax.xlane.f32.xlu0 %v1936_v7  ;;  %v1794_v42 = vpop.xlane.xlu0 %1793  ;;  %v2942_v7 = vsel %vm2934_vm6, %v2930_v46, %v2938_v11 }
 0x921   :  { %v5289_v19 = vadd.f32 %v5755_v30, %v2942_v7  ;;  %v1800_v7 = vsub.f32 %v5066_v16, %v1794_v42  ;;  %v2456_v49 = vsub.f32 %v5063_v14, %v5245_v21 }
 0x923   :  { %v2952_v63 = vsel %vm243_vm2, %v5289_v19, -inf }
 0x924   :  { %v5254_v23 = vpop.xlane.xlu1 %2618  ;;  %2108 = vmax.xlane.f32.xlu0 %v2107_v56  ;;  %v1941_v40 = vpop.xlane.xlu0 %1940 }
 0x925   :  { %v1947_v46 = vsub.f32 %v5072_v18, %v1941_v40 }
 0x928   :  { %v5262_v24 = vpop.xlane.xlu1 %2787  ;;  %2277 = vmax.xlane.f32.xlu0 %v2276_v4  ;;  %v5264_v22 = vpop.xlane.xlu0 %2111 }
 0x92c   :  { %v5273_v26 = vpop.xlane.xlu1 %2956  ;;  %2446 = vmax.xlane.f32.xlu0 %v2445_v54  ;;  %v5275_v10 = vpop.xlane.xlu0 %2280 }
 0x930   :  { %v5282_v57 = vpop.xlane.xlu1 %2612  ;;  %2615 = vmax.xlane.f32.xlu0 %v2614_v29  ;;  %v5284_v17 = vpop.xlane.xlu0 %1787 }
 0x934   :  { %v5291_v51 = vpop.xlane.xlu1 %2781  ;;  %2784 = vmax.xlane.f32.xlu0 %v2783_v62  ;;  %v5293_v56 = vpop.xlane.xlu0 %1934 }
 0x938   :  { %v5297_v32 = vpop.xlane.xlu1 %2950  ;;  %2953 = vmax.xlane.f32.xlu0 %v2952_v63  ;;  %v5299_v59 = vpop.xlane.xlu0 %2105 }
 0x93c   :  { %v1944_v4 = vpop.xlane.xlu1 %1943  ;;  %v5301_v60 = vpop.xlane.xlu0 %2274 }
 0x93d   :  { %v1948_v34 = vsub.f32 %v5152_v20, %v1944_v4 }
 0x93f   :  { %v1950_v11 = vpack.c.bf16 %v1948_v34, %v1947_v46 }
 0x940   :  { %v5305_v54 = vpop.permute.xlu1 %2154  ;;  %v5307_v13 = vpop.xlane.xlu0 %2443 }
 0x941   :  { %3694 = vmatprep.subr.bf16.mxu1 %v5305_v54  ;;  %v1955_v63 = vmul.bf16 1069105081, %v1950_v11 }
 0x943   :  { %3960 = vpow.bf16 %v1955_v63  ;;  %v2118_v63 = vsub.f32 %v5086_v47, %v5264_v22  ;;  %v2625_v22 = vsub.f32 %v5069_v1, %v5254_v23  ;;  %v2963_v1 = vsub.f32 %v5099_v43, %v5273_v26 }
 0x944   :  { %v1797_v29 = vpop.xlane.xlu0 %1796 }
 0x945   :  { %v1801_v62 = vsub.f32 %v5164_v61, %v1797_v29 }
 0x947   :  { %v1803_v53 = vpack.c.bf16 %v1801_v62, %v1800_v7 }
 0x948   :  { %v5312_v30 = vpop.permute.xlu0 %2323 }
 0x949   :  { %v1808_v58 = vmul.bf16 1069105081, %v1803_v53  ;;  %3702 = vmatprep.subr.bf16.mxu0 %v5312_v30 }
 0x94b   :  { %3962 = vpow.bf16 %v1808_v58 }
 0x94c   :  { %v5329_v34 = vpop.permute.xlu0 %2152 }
 0x94e   :  { %2999 = vrot.lane.b32.xlu0 %v4929_v28, %s4098_s7 }
 0x950   :  { %v5331_v46 = vpop.permute.xlu0 %2321 }
 0x951   :  { %v5317_v18 = vpop.eup %3960 }
 0x952   :  { %v1959_v42 = vunpack.c.l.bf16 %v5317_v18  ;;  %v1960_v28 = vunpack.c.h.bf16 %v5317_v18 }
 0x954   :  { %v1967_v53 = vsel %vm243_vm2, %v1959_v42, 0.0  ;;  %v1970_v4 = vsel %vm243_vm2, %v1960_v28, 0.0  ;;  %v5333_v11 = vpop.permute.xlu0 %2492 }
 0x958   :  { %v5335_v29 = vpop.permute.xlu0 %2661 }
 0x959   :  { %v5319_v20 = vpop.eup %3962 }
 0x95a   :  { %v1812_v16 = vunpack.c.l.bf16 %v5319_v20  ;;  %v1813_v40 = vunpack.c.h.bf16 %v5319_v20 }
 0x95c   :  { %v1820_v61 = vsel %vm243_vm2, %v1812_v16, 0.0  ;;  %v1823_v58 = vsel %vm243_vm2, %v1813_v40, 0.0  ;;  %v5337_v7 = vpop.permute.xlu0 %2659 }
 0x95d   :  { %1821 = vadd.xlane.f32.xlu1 %v1820_v61  ;;  %5756 = vst [vmem:[#allocation13_spill] sm:$0xff] %v5337_v7 }
 0x961   :  { %1968 = vadd.xlane.f32.xlu1 %v1967_v53  ;;  %v2287_v53 = vsub.f32 %v5102_v2, %v5275_v10 }
 0x96d   :  { %1824 = vadd.xlane.f32.xlu0 %v1823_v58 }
 0x971   :  { %1971 = vadd.xlane.f32.xlu0 %v1970_v4 }
 0x98d   :  { %v2115_v62 = vpop.xlane.xlu0 %2114 }
 0x98e   :  { %v2119_v16 = vsub.f32 %v5192_v45, %v2115_v62 }
 0x990   :  { %v2121_v61 = vpack.c.bf16 %v2119_v16, %v2118_v63  ;;  %v2794_v63 = vsub.f32 %v5079_v50, %v5262_v24 }
 0x991   :  { %v2284_v42 = vpop.xlane.xlu0 %2283 }
 0x992   :  { %v2126_v40 = vmul.bf16 1069105081, %v2121_v61  ;;  %v2288_v58 = vsub.f32 %v5198_v25, %v2284_v42 }
 0x994   :  { %3964 = vpow.bf16 %v2126_v40  ;;  %v2290_v28 = vpack.c.bf16 %v2288_v58, %v2287_v53  ;;  %v1798_v53 = vsub.f32 %v5112_v39, %v5284_v17  ;;  %v1945_v39 = vsub.f32 %v5125_v3, %v5293_v56 }
 0x995   :  { %v2453_v4 = vpop.xlane.xlu0 %2452  ;;  %v2116_v3 = vsub.f32 %v5137_v31, %v5299_v59  ;;  %v2285_v31 = vsub.f32 %v5149_v48, %v5301_v60 }
 0x996   :  { %v2295_v41 = vmul.bf16 1069105081, %v2290_v28  ;;  %v2457_v7 = vsub.f32 %v5205_v5, %v2453_v4 }
 0x998   :  { %3966 = vpow.bf16 %v2295_v41  ;;  %v2459_v47 = vpack.c.bf16 %v2457_v7, %v2456_v49 }
 0x999   :  { %v2622_v45 = vpop.xlane.xlu0 %2621 }
 0x99a   :  { %v2464_v62 = vmul.bf16 1069105081, %v2459_v47  ;;  %v2626_v2 = vsub.f32 %v5211_v38, %v2622_v45 }
 0x99c   :  { %3968 = vpow.bf16 %v2464_v62  ;;  %v2628_v25 = vpack.c.bf16 %v2626_v2, %v2625_v22 }
 0x99d   :  { %v2791_v10 = vpop.xlane.xlu0 %2790 }
 0x99e   :  { %v2633_v16 = vmul.bf16 1069105081, %v2628_v25  ;;  %v2795_v14 = vsub.f32 %v5217_v35, %v2791_v10 }
 0x9a0   :  { %3970 = vpow.bf16 %v2633_v16  ;;  %v2797_v5 = vpack.c.bf16 %v2795_v14, %v2794_v63 }
 0x9a1   :  { %v2960_v41 = vpop.xlane.xlu0 %2959 }
 0x9a2   :  { %v5354_v49 = vpop.eup %3964  ;;  %v2802_v21 = vmul.bf16 1069105081, %v2797_v5  ;;  %v2964_v38 = vsub.f32 %v5224_v8, %v2960_v41 }
 0x9a3   :  { %v2131_v23 = vunpack.c.h.bf16 %v5354_v49  ;;  %v2130_v7 = vunpack.c.l.bf16 %v5354_v49 }
 0x9a4   :  { %3972 = vpow.bf16 %v2802_v21  ;;  %v2966_v50 = vpack.c.bf16 %v2964_v38, %v2963_v1 }
 0x9a5   :  { %v1791_v24 = vpop.xlane.xlu0 %1790  ;;  %v2141_v35 = vsel %vm243_vm2, %v2131_v23, 0.0  ;;  %v2138_v61 = vsel %vm243_vm2, %v2130_v7, 0.0 }
 0x9a6   :  { %v5363_v42 = vpop.eup %3966  ;;  %v2971_v43 = vmul.bf16 1069105081, %v2966_v50  ;;  %v1799_v26 = vsub.f32 %v5230_v6, %v1791_v24  ;;  %2142 = vadd.xlane.f32.xlu0 %v2141_v35  ;;  %2139 = vadd.xlane.f32.xlu1 %v2138_v61 }
 0x9a7   :  { %v2300_v8 = vunpack.c.h.bf16 %v5363_v42  ;;  %v2299_v40 = vunpack.c.l.bf16 %v5363_v42 }
 0x9a8   :  { %3974 = vpow.bf16 %v2971_v43  ;;  %v1802_v58 = vpack.c.bf16 %v1799_v26, %v1798_v53  ;;  %v2454_v43 = vsub.f32 %v5159_v37, %v5307_v13 }
 0x9a9   :  { %v1938_v28 = vpop.xlane.xlu0 %1937  ;;  %v2310_v4 = vsel %vm243_vm2, %v2300_v8, 0.0  ;;  %v2307_v47 = vsel %vm243_vm2, %v2299_v40, 0.0 }
 0x9aa   :  { %v5372_v45 = vpop.eup %3968  ;;  %v1805_v17 = vmul.bf16 1069105081, %v1802_v58  ;;  %v1946_v6 = vsub.f32 %v5237_v52, %v1938_v28  ;;  %2311 = vadd.xlane.f32.xlu0 %v2310_v4  ;;  %2308 = vadd.xlane.f32.xlu1 %v2307_v47  ;;  %v2623_v28 = vsub.f32 %v5115_v9, %v5282_v57  ;;  %v2792_v9 = vsub.f32 %v5128_v27, %v5291_v51 }
 0x9ab   :  { %v2469_v22 = vunpack.c.h.bf16 %v5372_v45  ;;  %v2468_v62 = vunpack.c.l.bf16 %v5372_v45  ;;  %v2961_v27 = vsub.f32 %v5140_v44, %v5297_v32 }
 0x9ac   :  { %3976 = vpow.bf16 %v1805_v17  ;;  %v1949_v2 = vpack.c.bf16 %v1946_v6, %v1945_v39 }
 0x9ad   :  { %v2109_v25 = vpop.xlane.xlu0 %2108  ;;  %v2479_v10 = vsel %vm243_vm2, %v2469_v22, 0.0  ;;  %v2476_v63 = vsel %vm243_vm2, %v2468_v62, 0.0 }
 0x9ae   :  { %v5381_v16 = vpop.eup %3970  ;;  %v1952_v56 = vmul.bf16 1069105081, %v1949_v2  ;;  %v2117_v52 = vsub.f32 %v5243_v12, %v2109_v25  ;;  %2480 = vadd.xlane.f32.xlu0 %v2479_v10  ;;  %2477 = vadd.xlane.f32.xlu1 %v2476_v63 }
 0x9af   :  { %v2638_v14 = vunpack.c.h.bf16 %v5381_v16  ;;  %v2637_v5 = vunpack.c.l.bf16 %v5381_v16 }
 0x9b0   :  { %3978 = vpow.bf16 %v1952_v56  ;;  %v2120_v41 = vpack.c.bf16 %v2117_v52, %v2116_v3 }
 0x9b1   :  { %v2278_v1 = vpop.xlane.xlu0 %2277  ;;  %v2648_v21 = vsel %vm243_vm2, %v2638_v14, 0.0  ;;  %v2645_v38 = vsel %vm243_vm2, %v2637_v5, 0.0 }
 0x9b2   :  { %v5390_v23 = vpop.eup %3972  ;;  %v2123_v59 = vmul.bf16 1069105081, %v2120_v41  ;;  %v2286_v12 = vsub.f32 %v5252_v55, %v2278_v1  ;;  %2649 = vadd.xlane.f32.xlu0 %v2648_v21  ;;  %2646 = vadd.xlane.f32.xlu1 %v2645_v38 }
 0x9b3   :  { %v2806_v7 = vunpack.c.l.bf16 %v5390_v23  ;;  %v2807_v61 = vunpack.c.h.bf16 %v5390_v23 }
 0x9b4   :  { %3980 = vpow.bf16 %v2123_v59  ;;  %v2289_v50 = vpack.c.bf16 %v2286_v12, %v2285_v31 }
 0x9b5   :  { %v2447_v24 = vpop.xlane.xlu0 %2446  ;;  %v2814_v35 = vsel %vm243_vm2, %v2806_v7, 0.0  ;;  %v2817_v8 = vsel %vm243_vm2, %v2807_v61, 0.0 }
 0x9b6   :  { %v5398_v53 = vpop.eup %3974  ;;  %v2292_v48 = vmul.bf16 1069105081, %v2289_v50  ;;  %v2455_v60 = vsub.f32 %v5260_v33, %v2447_v24  ;;  %2815 = vadd.xlane.f32.xlu0 %v2814_v35 }
 0x9b7   :  { %v2975_v40 = vunpack.c.l.bf16 %v5398_v53  ;;  %v2976_v6 = vunpack.c.h.bf16 %v5398_v53 }
 0x9b8   :  { %3982 = vpow.bf16 %v2292_v48  ;;  %v2458_v55 = vpack.c.bf16 %v2455_v60, %v2454_v43 }
 0x9b9   :  { %v2616_v26 = vpop.xlane.xlu0 %2615  ;;  %v2983_v39 = vsel %vm243_vm2, %v2975_v40, 0.0  ;;  %v2986_v10 = vsel %vm243_vm2, %v2976_v6, 0.0 }
 0x9ba   :  { %v5405_v58 = vpop.eup %3976  ;;  %v2461_v4 = vmul.bf16 1069105081, %v2458_v55  ;;  %v2624_v47 = vsub.f32 %v5271_v36, %v2616_v26  ;;  %2818 = vadd.xlane.f32.xlu0 %v2817_v8 }
 0x9bb   :  { %v1810_v37 = vunpack.c.l.bf16 %v5405_v58  ;;  %v1811_v3 = vunpack.c.h.bf16 %v5405_v58 }
 0x9bc   :  { %3984 = vpow.bf16 %v2461_v4  ;;  %v2627_v33 = vpack.c.bf16 %v2624_v47, %v2623_v28 }
 0x9bd   :  { %v2785_v13 = vpop.xlane.xlu0 %2784  ;;  %v1814_v17 = vsel %vm243_vm2, %v1810_v37, 0.0  ;;  %v1817_v5 = vsel %vm243_vm2, %v1811_v3, 0.0 }
 0x9be   :  { %v5414_v22 = vpop.eup %3978  ;;  %v2630_v57 = vmul.bf16 1069105081, %v2627_v33  ;;  %v2793_v36 = vsub.f32 %v5280_v0, %v2785_v13  ;;  %2984 = vadd.xlane.f32.xlu0 %v2983_v39  ;;  %1815 = vadd.xlane.f32.xlu1 %v1814_v17 }
 0x9bf   :  { %v1957_v62 = vunpack.c.l.bf16 %v5414_v22  ;;  %v1958_v1 = vunpack.c.h.bf16 %v5414_v22 }
 0x9c0   :  { %3986 = vpow.bf16 %v2630_v57  ;;  %v2796_v2 = vpack.c.bf16 %v2793_v36, %v2792_v9  ;;  %v5469_v9 = vpop.permute.xlu1 %2490 }
 0x9c1   :  { %v2954_v25 = vpop.xlane.xlu0 %2953  ;;  %v1961_v63 = vsel %vm243_vm2, %v1957_v62, 0.0 }
 0x9c2   :  { %v5423_v56 = vpop.eup %3980  ;;  %v2962_v0 = vsub.f32 %v5289_v19, %v2954_v25  ;;  %2987 = vadd.xlane.f32.xlu0 %v2986_v10  ;;  %1962 = vadd.xlane.f32.xlu1 %v1961_v63  ;;  %v2799_v51 = vmul.bf16 1069105081, %v2796_v2  ;;  %v1964_v19 = vsel %vm243_vm2, %v1958_v1, 0.0 }
 0x9c3   :  { %v2128_v52 = vunpack.c.l.bf16 %v5423_v56  ;;  %v2129_v31 = vunpack.c.h.bf16 %v5423_v56 }
 0x9c4   :  { %v2965_v14 = vpack.c.bf16 %v2962_v0, %v2961_v27  ;;  %3988 = vpow.bf16 %v2799_v51  ;;  %v5473_v36 = vpop.permute.xlu1 %2830 }
 0x9c5   :  { %v2132_v41 = vsel %vm243_vm2, %v2128_v52, 0.0  ;;  %v2135_v7 = vsel %vm243_vm2, %v2129_v31, 0.0  ;;  %v5471_v57 = vpop.permute.xlu0 %2999 }
 0x9c6   :  { %v5432_v21 = vpop.eup %3982  ;;  %v2968_v38 = vmul.bf16 1069105081, %v2965_v14  ;;  %1818 = vadd.xlane.f32.xlu0 %v1817_v5  ;;  %2133 = vadd.xlane.f32.xlu1 %v2132_v41 }
 0x9c7   :  { %v2297_v44 = vunpack.c.l.bf16 %v5432_v21  ;;  %v2298_v24 = vunpack.c.h.bf16 %v5432_v21 }
 0x9c8   :  { %3990 = vpow.bf16 %v2968_v38 }
 0x9c9   :  { %v2301_v32 = vsel %vm243_vm2, %v2297_v44, 0.0  ;;  %v2304_v43 = vsel %vm243_vm2, %v2298_v24, 0.0 }
 0x9ca   :  { %v5438_v59 = vpop.eup %3984  ;;  %1965 = vadd.xlane.f32.xlu0 %v1964_v19  ;;  %2302 = vadd.xlane.f32.xlu1 %v2301_v32 }
 0x9cb   :  { %v2466_v12 = vunpack.c.l.bf16 %v5438_v59  ;;  %v2467_v60 = vunpack.c.h.bf16 %v5438_v59 }
 0x9cd   :  { %v2470_v50 = vsel %vm243_vm2, %v2466_v12, 0.0  ;;  %v2473_v26 = vsel %vm243_vm2, %v2467_v60, 0.0 }
 0x9ce   :  { %v5444_v35 = vpop.eup %3986  ;;  %2136 = vadd.xlane.f32.xlu0 %v2135_v7  ;;  %2471 = vadd.xlane.f32.xlu1 %v2470_v50 }
 0x9cf   :  { %v2635_v61 = vunpack.c.l.bf16 %v5444_v35  ;;  %v2636_v8 = vunpack.c.h.bf16 %v5444_v35 }
 0x9d1   :  { %v2639_v48 = vsel %vm243_vm2, %v2635_v61, 0.0  ;;  %v2642_v4 = vsel %vm243_vm2, %v2636_v8, 0.0 }
 0x9d2   :  { %2305 = vadd.xlane.f32.xlu0 %v2304_v43  ;;  %2640 = vadd.xlane.f32.xlu1 %v2639_v48  ;;  %v5450_v55 = vpop.eup %3988 }
 0x9d3   :  { %v2804_v37 = vunpack.c.l.bf16 %v5450_v55  ;;  %v2805_v13 = vunpack.c.h.bf16 %v5450_v55 }
 0x9d5   :  { %v2808_v33 = vsel %vm243_vm2, %v2804_v37, 0.0  ;;  %v2811_v39 = vsel %vm243_vm2, %v2805_v13, 0.0 }
 0x9d6   :  { %v5454_v40 = vpop.eup %3990  ;;  %2474 = vadd.xlane.f32.xlu0 %v2473_v26 }
 0x9d7   :  { %v2973_v28 = vunpack.c.l.bf16 %v5454_v40  ;;  %v2974_v17 = vunpack.c.h.bf16 %v5454_v40 }
 0x9d9   :  { %v2977_v47 = vsel %vm243_vm2, %v2973_v28, 0.0  ;;  %v2980_v6 = vsel %vm243_vm2, %v2974_v17, 0.0 }
 0x9da   :  { %2643 = vadd.xlane.f32.xlu0 %v2642_v4  ;;  %2978 = vadd.xlane.f32.xlu1 %v2977_v47 }
 0x9de   :  { %2809 = vadd.xlane.f32.xlu0 %v2808_v33 }
 0x9e2   :  { %2812 = vadd.xlane.f32.xlu0 %v2811_v39 }
 0x9e6   :  { %2981 = vadd.xlane.f32.xlu0 %v2980_v6  ;;  %v1822_v2 = vpop.xlane.xlu1 %1821 }
 0x9e7   :  { %3992 = vrcp.f32 %v1822_v2 }
 0x9ea   :  { %v1969_v10 = vpop.xlane.xlu1 %1968 }
 0x9eb   :  { %2828 = vrot.lane.b32.xlu1 %v4931_v15, %s4097_s30 }
 0x9f4   :  { %v3993_v24 = vpop.eup %3992 }
 0x9f6   :  { %v1825_v62 = vpop.xlane.xlu0 %1824 }
 0x9f7   :  { %3994 = vrcp.f32 %v1825_v62 }
 0x9f8   :  { %3996 = vrcp.f32 %v1969_v10 }
 0x9fa   :  { %v1972_v25 = vpop.xlane.xlu0 %1971 }
 0x9fc   :  { %2997 = vrot.lane.b32.xlu0 %v4931_v15, %s4098_s7 }
 0xa04   :  { %v3995_v61 = vpop.eup %3994 }
 0xa05   :  { %v3997_v60 = vpop.eup %3996  ;;  %v1831_v28 = vpack.c.bf16 %v3995_v61, %v3993_v24 }
 0xa07   :  { %v1833_v62 = vmul.bf16 %v5319_v20, %v1831_v28 }
 0xa2f   :  { %v2143_v63 = vpop.xlane.xlu0 %2142  ;;  %v2140_v3 = vpop.xlane.xlu1 %2139 }
 0xa33   :  { %v2312_v27 = vpop.xlane.xlu0 %2311  ;;  %v2309_v0 = vpop.xlane.xlu1 %2308 }
 0xa37   :  { %v2481_v51 = vpop.xlane.xlu0 %2480  ;;  %v2478_v14 = vpop.xlane.xlu1 %2477 }
 0xa3b   :  { %v2650_v52 = vpop.xlane.xlu0 %2649  ;;  %v2647_v15 = vpop.xlane.xlu1 %2646 }
 0xa3f   :  { %v5475_v5 = vpop.xlane.xlu0 %2815 }
 0xa43   :  { %v5477_v41 = vpop.xlane.xlu0 %2818 }
 0xa47   :  { %v1816_v1 = vpop.xlane.xlu1 %1815  ;;  %v5479_v38 = vpop.xlane.xlu0 %2984 }
 0xa48   :  { %3998 = vrcp.f32 %v1816_v1 }
 0xa4b   :  { %v1963_v44 = vpop.xlane.xlu1 %1962  ;;  %v5481_v19 = vpop.xlane.xlu0 %2987 }
 0xa4f   :  { %v2134_v32 = vpop.xlane.xlu1 %2133  ;;  %v1819_v31 = vpop.xlane.xlu0 %1818 }
 0xa50   :  { %4000 = vrcp.f32 %v1819_v31 }
 0xa51   :  { %4002 = vrcp.f32 %v1972_v25 }
 0xa52   :  { %4004 = vrcp.f32 %v2140_v3 }
 0xa53   :  { %v1966_v12 = vpop.xlane.xlu0 %1965  ;;  %4006 = vrcp.f32 %v1963_v44  ;;  %v2303_v7 = vpop.xlane.xlu1 %2302 }
 0xa54   :  { %4008 = vrcp.f32 %v1966_v12 }
 0xa55   :  { %4010 = vrcp.f32 %v2143_v63  ;;  %v3999_v26 = vpop.eup %3998 }
 0xa56   :  { %4012 = vrcp.f32 %v2309_v0 }
 0xa57   :  { %v2137_v50 = vpop.xlane.xlu0 %2136  ;;  %4014 = vrcp.f32 %v2134_v32  ;;  %v2472_v43 = vpop.xlane.xlu1 %2471 }
 0xa58   :  { %4016 = vrcp.f32 %v2137_v50 }
 0xa59   :  { %4018 = vrcp.f32 %v2312_v27 }
 0xa5a   :  { %4020 = vrcp.f32 %v2478_v14 }
 0xa5b   :  { %v2306_v48 = vpop.xlane.xlu0 %2305  ;;  %4022 = vrcp.f32 %v2303_v7  ;;  %v2641_v39 = vpop.xlane.xlu1 %2640 }
 0xa5c   :  { %4024 = vrcp.f32 %v2306_v48 }
 0xa5d   :  { %v4001_v8 = vpop.eup %4000  ;;  %4026 = vrcp.f32 %v2481_v51 }
 0xa5e   :  { %v4003_v4 = vpop.eup %4002  ;;  %4028 = vrcp.f32 %v2472_v43  ;;  %v1830_v37 = vpack.c.bf16 %v4001_v8, %v3999_v26 }
 0xa5f   :  { %v2475_v47 = vpop.xlane.xlu0 %2474  ;;  %v4005_v33 = vpop.eup %4004  ;;  %v1978_v2 = vpack.c.bf16 %v4003_v4, %v3997_v60 }
 0xa60   :  { %4030 = vrcp.f32 %v2475_v47  ;;  %v4007_v13 = vpop.eup %4006  ;;  %v1832_v17 = vmul.bf16 %v5405_v58, %v1830_v37 }
 0xa61   :  { %4032 = vrcp.f32 %v2647_v15  ;;  %v4009_v6 = vpop.eup %4008  ;;  %v1980_v20 = vmul.bf16 %v5317_v18, %v1978_v2 }
 0xa62   :  { %4034 = vrcp.f32 %v2650_v52  ;;  %v4011_v25 = vpop.eup %4010  ;;  %3682 = vmatprep.mubr.msk.bf16.mxu1 %vm243_vm2, %v1832_v17  ;;  %v1977_v63 = vpack.c.bf16 %v4009_v6, %v4007_v13 }
 0xa63   :  { %v2644_v10 = vpop.xlane.xlu0 %2643  ;;  %v4013_v3 = vpop.eup %4012  ;;  %4036 = vrcp.f32 %v2641_v39  ;;  %3683 = vmatmul.mubr.msk.bf16.vlgmr.msra.gmra.mxu1 %vm243_vm2, %v1833_v62  ;;  %v2149_v51 = vpack.c.bf16 %v4011_v25, %v4005_v33 }
 0xa64   :  { %v4015_v27 = vpop.eup %4014  ;;  %3695 = vmatpush3.bf16.msra.mxu1 %v5305_v54  ;;  %4038 = vrcp.f32 %v2644_v10  ;;  %v1979_v58 = vmul.bf16 %v5414_v22, %v1977_v63 }
 0xa65   :  { %v4017_v0 = vpop.eup %4016  ;;  %3696 = vmatprep.subr.bf16.mxu1 %v5329_v34  ;;  %4040 = vrcp.f32 %v5477_v41  ;;  %v2151_v18 = vmul.bf16 %v5354_v49, %v2149_v51 }
 0xa66   :  { %v4019_v52 = vpop.eup %4018  ;;  %3690 = vmatprep.mubr.msk.bf16.mxu0 %vm243_vm2, %v1979_v58  ;;  %v2148_v15 = vpack.c.bf16 %v4017_v0, %v4015_v27  ;;  %4042 = vrcp.f32 %v5475_v5 }
 0xa67   :  { %v2810_v14 = vpop.xlane.xlu0 %2809  ;;  %v4021_v1 = vpop.eup %4020  ;;  %3691 = vmatmul.mubr.msk.bf16.vlgmr.msra.gmra.mxu0 %vm243_vm2, %v1980_v20  ;;  %v2318_v32 = vpack.c.bf16 %v4019_v52, %v4013_v3 }
 0xa68   :  { %v4023_v44 = vpop.eup %4022  ;;  %3697 = vmatpush3.bf16.msra.mxu1 %v5329_v34  ;;  %3703 = vmatpush3.bf16.msra.mxu0 %v5312_v30  ;;  %v2150_v54 = vmul.bf16 %v5423_v56, %v2148_v15  ;;  %4044 = vrcp.f32 %v2810_v14  ;;  %v2979_v30 = vpop.xlane.xlu1 %2978 }
 0xa69   :  { %v4025_v22 = vpop.eup %4024  ;;  %3704 = vmatprep.subr.bf16.mxu0 %v5331_v46  ;;  %3710 = vmatprep.subr.bf16.mxu1 %v5333_v11  ;;  %v2320_v7 = vmul.bf16 %v5363_v42, %v2318_v32 }
 0xa6a   :  { %v4027_v31 = vpop.eup %4026  ;;  %3698 = vmatprep.mubr.msk.bf16.mxu1 %vm243_vm2, %v2150_v54  ;;  %v2317_v34 = vpack.c.bf16 %v4025_v22, %v4023_v44 }
 0xa6b   :  { %v2813_v41 = vpop.xlane.xlu0 %2812  ;;  %v4029_v12 = vpop.eup %4028  ;;  %3699 = vmatmul.mubr.msk.bf16.vlgmr.msra.gmra.mxu1 %vm243_vm2, %v2151_v18  ;;  %v2487_v24 = vpack.c.bf16 %v4027_v31, %v4021_v1 }
 0xa6c   :  { %4046 = vrcp.f32 %v2813_v41  ;;  %3705 = vmatpush3.bf16.msra.mxu0 %v5331_v46  ;;  %3711 = vmatpush3.bf16.msra.mxu1 %v5333_v11  ;;  %v2319_v49 = vmul.bf16 %v5432_v21, %v2317_v34  ;;  %v2829_v60 = vpop.permute.xlu1 %2828 }
 0xa6d   :  { %v4031_v56 = vpop.eup %4030  ;;  %4048 = vrcp.f32 %v5481_v19  ;;  %3712 = vmatprep.subr.bf16.mxu1 %v5469_v9  ;;  %3718 = vmatprep.subr.bf16.mxu0 %v5335_v29  ;;  %v5757_v19 = vld [vmem:[#allocation13_spill] sm:$0xff]  ;;  %v2489_v42 = vmul.bf16 %v5372_v45, %v2487_v24 }
 0xa6e   :  { %v4033_v5 = vpop.eup %4032  ;;  %4050 = vrcp.f32 %v5479_v38  ;;  %v2486_v50 = vpack.c.bf16 %v4031_v56, %v4029_v12  ;;  %3706 = vmatprep.mubr.msk.bf16.mxu0 %vm243_vm2, %v2319_v49  ;;  %v3130_v56 = vld [vmem:[%s5655_s4 + $0x30] sm:$0xff]  ;;  %v3131_v49 = vld [vmem:[%s5655_s4 + $0x38] sm:$0xff] }
 0xa6f   :  { %v4035_v61 = vpop.eup %4034  ;;  %4052 = vrcp.f32 %v2979_v30  ;;  %v2982_v46 = vpop.xlane.xlu0 %2981  ;;  %3707 = vmatmul.mubr.msk.bf16.vlgmr.msra.gmra.mxu0 %vm243_vm2, %v2320_v7  ;;  %v3128_v7 = vld [vmem:[%s5655_s4 + $0x20] sm:$0xff] }
 0xa70   :  { %4054 = vrcp.f32 %v2982_v46  ;;  %v2488_v11 = vmul.bf16 %v5438_v59, %v2486_v50  ;;  %v4037_v21 = vpop.eup %4036  ;;  %3713 = vmatpush3.bf16.msra.mxu1 %v5469_v9  ;;  %3719 = vmatpush3.bf16.msra.mxu0 %v5335_v29  ;;  %v2656_v43 = vpack.c.bf16 %v4035_v61, %v4033_v5  ;;  %v3135_v5 = vpack.c.bf16 %v3131_v49, %v3130_v56  ;;  %v3129_v50 = vld [vmem:[%s5655_s4 + $0x28] sm:$0xff] }
 0xa71   :  { %v4039_v38 = vpop.eup %4038  ;;  %3720 = vmatprep.subr.bf16.mxu0 %v5757_v19  ;;  %3726 = vmatprep.subr.bf16.mxu1 %v5473_v36  ;;  %v3134_v24 = vpack.c.bf16 %v3129_v50, %v3128_v7 }
 0xa72   :  { %3714 = vmatprep.mubr.msk.bf16.mxu1 %vm243_vm2, %v2488_v11  ;;  %v2655_v48 = vpack.c.bf16 %v4039_v38, %v4037_v21  ;;  %v4041_v59 = vpop.eup %4040  ;;  %v2658_v9 = vmul.bf16 %v5381_v16, %v2656_v43  ;;  %v3126_v11 = vld [vmem:[%s5655_s4 + $0x10] sm:$0xff]  ;;  %v3127_v21 = vld [vmem:[%s5655_s4 + $0x18] sm:$0xff]  ;;  %v3125_v43 = vld [vmem:[%s5655_s4 + $0x8] sm:$0xff] }
 0xa73   :  { %3715 = vmatmul.mubr.msk.bf16.vlgmr.msra.gmra.mxu1 %vm243_vm2, %v2489_v42  ;;  %v4043_v45 = vpop.eup %4042  ;;  %v2998_v28 = vpop.permute.xlu0 %2997  ;;  %v3133_v38 = vpack.c.bf16 %v3127_v21, %v3126_v11  ;;  %v3124_v42 = vld [vmem:[%s5655_s4] sm:$0xff]  ;;  %s4107_s4 = smov 127  }
 0xa74   :  { %3721 = vmatpush3.bf16.msra.mxu0 %v5757_v19  ;;  %3727 = vmatpush3.bf16.msra.mxu1 %v5473_v36  ;;  %v2657_v29 = vmul.bf16 %v5444_v35, %v2655_v48  ;;  %v2825_v36 = vpack.c.bf16 %v4041_v59, %v4043_v45  ;;  %v3132_v48 = vpack.c.bf16 %v3125_v43, %v3124_v42 }
 0xa75   :  { %3728 = vmatprep.subr.bf16.mxu1 %v2829_v60  ;;  %3734 = vmatprep.subr.bf16.mxu0 %v5471_v57  ;;  %v4045_v26 = vpop.eup %4044 }
 0xa76   :  { %3722 = vmatprep.mubr.msk.bf16.mxu0 %vm243_vm2, %v2657_v29  ;;  %v2827_v13 = vmul.bf16 %v5390_v23, %v2825_v36 }
 0xa77   :  { %3723 = vmatmul.mubr.msk.bf16.vlgmr.msra.gmra.mxu0 %vm243_vm2, %v2658_v9 }
 0xa78   :  { %3729 = vmatpush3.bf16.msra.mxu1 %v2829_v60  ;;  %3735 = vmatpush3.bf16.msra.mxu0 %v5471_v57 }
 0xa79   :  { %v4047_v8 = vpop.eup %4046  ;;  %3736 = vmatprep.subr.bf16.mxu0 %v2998_v28  ;;  %3742 = vmatprep.subr.bf16.mxu1 %v3135_v5 }
 0xa7a   :  { %v4049_v4 = vpop.eup %4048  ;;  %v2824_v35 = vpack.c.bf16 %v4047_v8, %v4045_v26 }
 0xa7b   :  { %v4051_v47 = vpop.eup %4050 }
 0xa7c   :  { %v4053_v37 = vpop.eup %4052  ;;  %v2826_v33 = vmul.bf16 %v5450_v55, %v2824_v35  ;;  %3737 = vmatpush3.bf16.msra.mxu0 %v2998_v28  ;;  %v2994_v39 = vpack.c.bf16 %v4049_v4, %v4051_v47 }
 0xa7d   :  { %v4055_v16 = vpop.eup %4054 }
 0xa7e   :  { %3730 = vmatprep.mubr.msk.bf16.mxu1 %vm243_vm2, %v2826_v33  ;;  %v2993_v17 = vpack.c.bf16 %v4055_v16, %v4053_v37  ;;  %v2996_v6 = vmul.bf16 %v5398_v53, %v2994_v39 }
 0xa7f   :  { %3731 = vmatmul.mubr.msk.bf16.vlgmr.msra.gmra.mxu1 %vm243_vm2, %v2827_v13 }
 0xa80   :  { %v2995_v57 = vmul.bf16 %v5454_v40, %v2993_v17  ;;  %3743 = vmatpush3.bf16.msra.mxu1 %v3135_v5 }
 0xa81   :  { %3744 = vmatprep.subr.bf16.mxu1 %v3134_v24 }
 0xa82   :  { %3738 = vmatprep.mubr.msk.bf16.mxu0 %vm243_vm2, %v2995_v57 }
 0xa83   :  { %3739 = vmatmul.mubr.msk.bf16.vlgmr.msra.gmra.mxu0 %vm243_vm2, %v2996_v6 }
 0xa84   :  { %3745 = vmatpush3.bf16.msra.mxu1 %v3134_v24 }
 0xa85   :  { %3746 = vmatprep.subr.bf16.mxu1 %v3133_v38 }
 0xa88   :  { %3747 = vmatpush3.bf16.msra.mxu1 %v3133_v38 }
 0xa89   :  { %3748 = vmatprep.subr.bf16.mxu1 %v3132_v48 }
 0xa8c   :  { %3749 = vmatpush3.bf16.msra.mxu1 %v3132_v48 }
 0xb23   :  { %v3684_v62 = vpop.f32.mrf.mxu1 }
 0xb24   :  { %1891 = vst.msk [vmem:[#allocation2 + $0x10] sm:$0xff] %vm347_vm7, %v3684_v62 }
 0xb25   :  { %v1874_v55 = vpop.f32.mrf.mxu1 }
 0xb26   :  { %1889 = vst.msk [vmem:[#allocation2] sm:$0xff] %vm347_vm7, %v1874_v55 }
 0xb27   :  { %v3685_v23 = vpop.f32.mrf.mxu1  ;;  %v3692_v2 = vpop.f32.mrf.mxu0 }
 0xb28   :  { %1892 = vst.msk [vmem:[#allocation2 + $0x18] sm:$0xff] %vm347_vm7, %v3685_v23  ;;  %2052 = vrot.lane.b32.xlu1 %v3692_v2, %s4100_s2 }
 0xb29   :  { %v1877_v25 = vpop.f32.mrf.mxu1  ;;  %v2029_v40 = vpop.f32.mrf.mxu0 }
 0xb2a   :  { %1890 = vst.msk [vmem:[#allocation2 + $0x8] sm:$0xff] %vm347_vm7, %v1877_v25 }
 0xb2b   :  { %v3693_v53 = vpop.f32.mrf.mxu0  ;;  %v3700_v10 = vpop.f32.mrf.mxu1 }
 0xb2c   :  { %2048 = vrot.lane.b32.xlu1 %v2029_v40, %s4100_s2  ;;  %2054 = vrot.lane.b32.xlu0 %v3693_v53, %s4100_s2 }
 0xb2d   :  { %v2032_v63 = vpop.f32.mrf.mxu0  ;;  %v2198_v3 = vpop.f32.mrf.mxu1 }
 0xb2f   :  { %v3708_v27 = vpop.f32.mrf.mxu0  ;;  %v3701_v58 = vpop.f32.mrf.mxu1 }
 0xb30   :  { %2050 = vrot.lane.b32.xlu0 %v2032_v63, %s4100_s2  ;;  %2221 = vrot.lane.b32.xlu1 %v3700_v10, %s4099_s8 }
 0xb31   :  { %v2367_v0 = vpop.f32.mrf.mxu0  ;;  %v2201_v20 = vpop.f32.mrf.mxu1 }
 0xb33   :  { %v3709_v51 = vpop.f32.mrf.mxu0  ;;  %v3716_v52 = vpop.f32.mrf.mxu1 }
 0xb34   :  { %2223 = vrot.lane.b32.xlu0 %v3701_v58, %s4099_s8  ;;  %2390 = vrot.lane.b32.xlu1 %v3708_v27, %s4102_s10 }
 0xb35   :  { %v2370_v14 = vpop.f32.mrf.mxu0  ;;  %v2536_v15 = vpop.f32.mrf.mxu1 }
 0xb37   :  { %v3724_v1 = vpop.f32.mrf.mxu0  ;;  %v3717_v44 = vpop.f32.mrf.mxu1 }
 0xb38   :  { %2217 = vrot.lane.b32.xlu1 %v2198_v3, %s4099_s8  ;;  %2392 = vrot.lane.b32.xlu0 %v3709_v51, %s4102_s10 }
 0xb39   :  { %v2705_v54 = vpop.f32.mrf.mxu0  ;;  %v2539_v18 = vpop.f32.mrf.mxu1 }
 0xb3b   :  { %v3725_v22 = vpop.f32.mrf.mxu0 }
 0xb3c   :  { %2386 = vrot.lane.b32.xlu1 %v2367_v0, %s4102_s10  ;;  %2219 = vrot.lane.b32.xlu0 %v2201_v20, %s4099_s8 }
 0xb3d   :  { %v2708_v31 = vpop.f32.mrf.mxu0 }
 0xb3f   :  { %v3732_v32 = vpop.f32.mrf.mxu1 }
 0xb40   :  { %2388 = vrot.lane.b32.xlu0 %v2370_v14, %s4102_s10  ;;  %2559 = vrot.lane.b32.xlu1 %v3716_v52, %s4101_s9 }
 0xb41   :  { %v2874_v41 = vpop.f32.mrf.mxu1 }
 0xb43   :  { %v3740_v34 = vpop.f32.mrf.mxu0  ;;  %v3733_v12 = vpop.f32.mrf.mxu1 }
 0xb44   :  { %2561 = vrot.lane.b32.xlu0 %v3717_v44, %s4101_s9  ;;  %2728 = vrot.lane.b32.xlu1 %v3724_v1, %s4104_s12 }
 0xb45   :  { %v3043_v30 = vpop.f32.mrf.mxu0  ;;  %v2877_v61 = vpop.f32.mrf.mxu1 }
 0xb47   :  { %v3741_v46 = vpop.f32.mrf.mxu0 }
 0xb48   :  { %2555 = vrot.lane.b32.xlu1 %v2536_v15, %s4101_s9  ;;  %2730 = vrot.lane.b32.xlu0 %v3725_v22, %s4104_s12 }
 0xb49   :  { %v3046_v19 = vpop.f32.mrf.mxu0 }
 0xb4c   :  { %2724 = vrot.lane.b32.xlu1 %v2705_v54, %s4104_s12  ;;  %2557 = vrot.lane.b32.xlu0 %v2539_v18, %s4101_s9 }
 0xb50   :  { %2726 = vrot.lane.b32.xlu0 %v2708_v31, %s4104_s12  ;;  %2897 = vrot.lane.b32.xlu1 %v3732_v32, %s4103_s11 }
 0xb54   :  { %2893 = vrot.lane.b32.xlu1 %v2874_v41, %s4103_s11  ;;  %2899 = vrot.lane.b32.xlu0 %v3733_v12, %s4103_s11 }
 0xb58   :  { %2895 = vrot.lane.b32.xlu0 %v2877_v61, %s4103_s11  ;;  %3062 = vrot.lane.b32.xlu1 %v3043_v30, %s4105_s23 }
 0xb5c   :  { %3066 = vrot.lane.b32.xlu1 %v3740_v34, %s4105_s23  ;;  %3064 = vrot.lane.b32.xlu0 %v3046_v19, %s4105_s23 }
 0xb60   :  { %3068 = vrot.lane.b32.xlu0 %v3741_v46, %s4105_s23 }
 0xb9a   :  { %v2053_v60 = vpop.permute.xlu1 %2052 }
 0xb9b   :  { %2062 = vst.msk [vmem:[#allocation2 + $0x10] sm:$0xff] %vm519_vm8, %v2053_v60 }
 0xb9e   :  { %v2049_v29 = vpop.permute.xlu1 %2048  ;;  %v2055_v59 = vpop.permute.xlu0 %2054 }
 0xb9f   :  { %2060 = vst.msk [vmem:[#allocation2] sm:$0xff] %vm519_vm8, %v2049_v29  ;;  %2063 = vst.msk [vmem:[#allocation2 + $0x18] sm:$0xff] %vm519_vm8, %v2055_v59  ;;  %v4106_v59 = vmov 2  }
 0xba0   :  { %3852 = vset.pattern.permute.xlu1 %v4106_v59  ;;  %3853 = vset.pattern.permute.xlu0 %v4106_v59  ;;  %v4108_v59 = vmov 0  }
 0xba2   :  { %v2222_v9 = vpop.permute.xlu1 %2221  ;;  %v2051_v45 = vpop.permute.xlu0 %2050 }
 0xba3   :  { %2231 = vst.msk [vmem:[#allocation2 + $0x10] sm:$0xff] %vm689_vm9, %v2222_v9 }
 0xba4   :  { %2061 = vst.msk [vmem:[#allocation2 + $0x8] sm:$0xff] %vm519_vm8, %v2051_v45 }
 0xba6   :  { %v2391_v26 = vpop.permute.xlu1 %2390  ;;  %v2224_v8 = vpop.permute.xlu0 %2223 }
 0xba7   :  { %2400 = vst.msk [vmem:[#allocation2 + $0x10] sm:$0xff] %vm859_vm10, %v2391_v26 }
 0xba8   :  { %2232 = vst.msk [vmem:[#allocation2 + $0x18] sm:$0xff] %vm689_vm9, %v2224_v8 }
 0xbaa   :  { %v2218_v28 = vpop.permute.xlu1 %2217  ;;  %v2393_v36 = vpop.permute.xlu0 %2392 }
 0xbab   :  { %2229 = vst.msk [vmem:[#allocation2] sm:$0xff] %vm689_vm9, %v2218_v28 }
 0xbac   :  { %2401 = vst.msk [vmem:[#allocation2 + $0x18] sm:$0xff] %vm859_vm10, %v2393_v36 }
 0xbae   :  { %v2387_v4 = vpop.permute.xlu1 %2386  ;;  %v2220_v35 = vpop.permute.xlu0 %2219 }
 0xbaf   :  { %2398 = vst.msk [vmem:[#allocation2] sm:$0xff] %vm859_vm10, %v2387_v4 }
 0xbb0   :  { %2230 = vst.msk [vmem:[#allocation2 + $0x8] sm:$0xff] %vm689_vm9, %v2220_v35 }
 0xbb2   :  { %v2560_v47 = vpop.permute.xlu1 %2559  ;;  %v2389_v37 = vpop.permute.xlu0 %2388 }
 0xbb3   :  { %2569 = vst.msk [vmem:[#allocation2 + $0x10] sm:$0xff] %vm1029_vm11, %v2560_v47 }
 0xbb4   :  { %2399 = vst.msk [vmem:[#allocation2 + $0x8] sm:$0xff] %vm859_vm10, %v2389_v37 }
 0xbb6   :  { %v2729_v33 = vpop.permute.xlu1 %2728  ;;  %v2562_v16 = vpop.permute.xlu0 %2561 }
 0xbb7   :  { %2738 = vst.msk [vmem:[#allocation2 + $0x10] sm:$0xff] %vm1199_vm12, %v2729_v33 }
 0xbb8   :  { %2570 = vst.msk [vmem:[#allocation2 + $0x18] sm:$0xff] %vm1029_vm11, %v2562_v16 }
 0xbba   :  { %v2556_v13 = vpop.permute.xlu1 %2555  ;;  %v2731_v39 = vpop.permute.xlu0 %2730 }
 0xbbb   :  { %2567 = vst.msk [vmem:[#allocation2] sm:$0xff] %vm1029_vm11, %v2556_v13 }
 0xbbc   :  { %2739 = vst.msk [vmem:[#allocation2 + $0x18] sm:$0xff] %vm1199_vm12, %v2731_v39 }
 0xbbe   :  { %v2725_v17 = vpop.permute.xlu1 %2724  ;;  %v2558_v57 = vpop.permute.xlu0 %2557 }
 0xbbf   :  { %2736 = vst.msk [vmem:[#allocation2] sm:$0xff] %vm1199_vm12, %v2725_v17  ;;  %v5758_v17 = vld [vmem:[#allocation8_spill] sm:$0xff] }
 0xbc0   :  { %2568 = vst.msk [vmem:[#allocation2 + $0x8] sm:$0xff] %vm1029_vm11, %v2558_v57 }
 0xbc2   :  { %v2898_v6 = vpop.permute.xlu1 %2897  ;;  %v2727_v62 = vpop.permute.xlu0 %2726 }
 0xbc3   :  { %2907 = vst.msk [vmem:[#allocation2 + $0x10] sm:$0xff] %vm1369_vm13, %v2898_v6 }
 0xbc4   :  { %2737 = vst.msk [vmem:[#allocation2 + $0x8] sm:$0xff] %vm1199_vm12, %v2727_v62 }
 0xbc6   :  { %v2894_v55 = vpop.permute.xlu1 %2893  ;;  %v2900_v23 = vpop.permute.xlu0 %2899 }
 0xbc7   :  { %2905 = vst.msk [vmem:[#allocation2] sm:$0xff] %vm1369_vm13, %v2894_v55  ;;  %2908 = vst.msk [vmem:[#allocation2 + $0x18] sm:$0xff] %vm1369_vm13, %v2900_v23 }
 0xbca   :  { %v3063_v2 = vpop.permute.xlu1 %3062  ;;  %v2896_v25 = vpop.permute.xlu0 %2895 }
 0xbcb   :  { %3074 = vst.msk [vmem:[#allocation2] sm:$0xff] %vm1539_vm14, %v3063_v2 }
 0xbcc   :  { %2906 = vst.msk [vmem:[#allocation2 + $0x8] sm:$0xff] %vm1369_vm13, %v2896_v25 }
 0xbce   :  { %v3067_v40 = vpop.permute.xlu1 %3066  ;;  %v3065_v53 = vpop.permute.xlu0 %3064 }
 0xbcf   :  { %3076 = vst.msk [vmem:[#allocation2 + $0x10] sm:$0xff] %vm1539_vm14, %v3067_v40  ;;  %3075 = vst.msk [vmem:[#allocation2 + $0x8] sm:$0xff] %vm1539_vm14, %v3065_v53 }
 0xbd2   :  { %v3069_v10 = vpop.permute.xlu0 %3068  ;;  %v3078_v63 = vld [vmem:[#allocation2] sm:$0xff] }
 0xbd3   :  { %3077 = vst.msk [vmem:[#allocation2 + $0x18] sm:$0xff] %vm1539_vm14, %v3069_v10  ;;  %v3086_v3 = vmul.f32 1.442695, %v3078_v63  ;;  %vm3082_vm7 = vcmp.gt.f32.partialorder %v3078_v63, 0.0 }
 0xbd5   :  { %4056 = vpow2.f32 %v3086_v3 }
 0xbd6   :  { %v3079_v27 = vld [vmem:[#allocation2 + $0x8] sm:$0xff]  ;;  %v3080_v58 = vld [vmem:[#allocation2 + $0x10] sm:$0xff] }
 0xbd7   :  { %v3088_v0 = vmul.f32 1.442695, %v3079_v27  ;;  %v3090_v20 = vmul.f32 1.442695, %v3080_v58  ;;  %vm3083_vm8 = vcmp.gt.f32.partialorder %v3079_v27, 0.0  ;;  %vm3084_vm9 = vcmp.gt.f32.partialorder %v3080_v58, 0.0 }
 0xbd9   :  { %4058 = vpow2.f32 %v3088_v0  ;;  %v5760_v0 = vld [vmem:[#allocation12_spill] sm:$0xff] }
 0xbda   :  { %v3081_v51 = vld [vmem:[#allocation2 + $0x18] sm:$0xff]  ;;  %4060 = vpow2.f32 %v3090_v20 }
 0xbdb   :  { %v3092_v52 = vmul.f32 1.442695, %v3081_v51  ;;  %vm3085_vm10 = vcmp.gt.f32.partialorder %v3081_v51, 0.0 }
 0xbdd   :  { %4062 = vpow2.f32 %v3092_v52 }
 0xbe2   :  { %v4057_v14 = vpop.eup %4056 }
 0xbe3   :  { %v3456_v15 = vadd.f32 -1.0, %v4057_v14 }
 0xbe5   :  { %v3098_v1 = vsel %vm3082_vm7, %v3078_v63, %v3456_v15  ;;  %v5761_v15 = vld [vmem:[#allocation11_spill] sm:$0xff] }
 0xbe6   :  { %v4059_v44 = vpop.eup %4058  ;;  %v3106_v54 = vmul.f32 1.442695, %v3098_v1  ;;  %vm3102_vm11 = vcmp.gt.f32.partialorder %v3098_v1, 0.0 }
 0xbe7   :  { %v4061_v22 = vpop.eup %4060  ;;  %v3457_v18 = vadd.f32 -1.0, %v4059_v44 }
 0xbe8   :  { %4064 = vpow2.f32 %v3106_v54  ;;  %v3458_v32 = vadd.f32 -1.0, %v4061_v22  ;;  %v5762_v22 = vld [vmem:[#allocation10_spill] sm:$0xff] }
 0xbe9   :  { %v3099_v31 = vsel %vm3083_vm8, %v3079_v27, %v3457_v18  ;;  %v5759_v27 = vld [vmem:[#allocation9_spill] sm:$0xff] }
 0xbea   :  { %v4063_v41 = vpop.eup %4062  ;;  %v3108_v34 = vmul.f32 1.442695, %v3099_v31  ;;  %v3100_v12 = vsel %vm3084_vm9, %v3080_v58, %v3458_v32  ;;  %vm3103_vm12 = vcmp.gt.f32.partialorder %v3099_v31, 0.0 }
 0xbeb   :  { %v3459_v30 = vadd.f32 -1.0, %v4063_v41  ;;  %v3110_v56 = vmul.f32 1.442695, %v3100_v12  ;;  %vm3104_vm13 = vcmp.gt.f32.partialorder %v3100_v12, 0.0 }
 0xbec   :  { %4066 = vpow2.f32 %v3108_v34 }
 0xbed   :  { %v3101_v49 = vsel %vm3085_vm10, %v3081_v51, %v3459_v30  ;;  %4068 = vpow2.f32 %v3110_v56 }
 0xbee   :  { %v3112_v5 = vmul.f32 1.442695, %v3101_v49  ;;  %vm3105_vm14 = vcmp.gt.f32.partialorder %v3101_v49, 0.0 }
 0xbf0   :  { %4070 = vpow2.f32 %v3112_v5 }
 0xbf5   :  { %v4065_v7 = vpop.eup %4064 }
 0xbf6   :  { %v3460_v50 = vadd.f32 -1.0, %v4065_v7 }
 0xbf8   :  { %v3118_v11 = vsel %vm3102_vm11, %v3098_v1, %v3460_v50 }
 0xbf9   :  { %v4067_v24 = vpop.eup %4066 }
 0xbfa   :  { %v4069_v61 = vpop.eup %4068  ;;  %v3461_v46 = vadd.f32 -1.0, %v4067_v24 }
 0xbfb   :  { %v3462_v38 = vadd.f32 -1.0, %v4069_v61 }
 0xbfc   :  { %v3119_v21 = vsel %vm3103_vm12, %v3099_v31, %v3461_v46 }
 0xbfd   :  { %v4071_v19 = vpop.eup %4070  ;;  %v3122_v42 = vpack.c.bf16 %v3119_v21, %v3118_v11  ;;  %v3120_v48 = vsel %vm3104_vm13, %v3100_v12, %v3462_v38 }
 0xbfe   :  { %v3463_v43 = vadd.f32 -1.0, %v4071_v19 }
 0xbff   :  { %3750 = vmatprep.mubr.msk.bf16.mxu1 %vm111_vm1, %v3122_v42 }
 0xc00   :  { %v3121_v60 = vsel %vm3105_vm14, %v3101_v49, %v3463_v43 }
 0xc01   :  { %v3123_v29 = vpack.c.bf16 %v3121_v60, %v3120_v48 }
 0xc03   :  { %3751 = vmatmul.mubr.msk.bf16.vlgmr.msra.gmra.mxu1 %vm111_vm1, %v3123_v29 }
 0xcc3   :  { %v3752_v9 = vpop.f32.mrf.mxu1 }
 0xcc5   :  { %v3176_v45 = vpop.f32.mrf.mxu1 }
 0xcc6   :  { %3195 = vrot.lane.b32.xlu1 %v3176_v45, %s4107_s4 }
 0xcc7   :  { %v3753_v26 = vpop.f32.mrf.mxu1 }
 0xcc8   :  { %v3328_v8 = vpack.c.bf16 %v3753_v26, %v3752_v9 }
 0xcc9   :  { %v3179_v28 = vpop.f32.mrf.mxu1 }
 0xcca   :  { %v3327_v36 = vpack.c.bf16 %v3179_v28, %v3176_v45  ;;  %3199 = vrot.lane.b32.xlu1 %v3752_v9, %s4107_s4  ;;  %3754 = vmatprep.subr.bf16.mxu0 %v3328_v8 }
 0xccb   :  { %3197 = vrot.lane.b32.xlu0 %v3179_v28, %s4107_s4  ;;  %3755 = vmatpush3.bf16.msra.mxu0 %v3328_v8 }
 0xccc   :  { %3756 = vmatprep.subr.bf16.mxu0 %v3327_v36 }
 0xcce   :  { %3240 = vperm.xlu1 %3852, %v3176_v45  }
 0xccf   :  { %3201 = vrot.lane.b32.xlu0 %v3753_v26, %s4107_s4  ;;  %3757 = vmatpush3.bf16.msra.mxu0 %v3327_v36 }
 0xcd2   :  { %3248 = vperm.xlu1 %3852, %v3752_v9  }
 0xcd3   :  { %3244 = vperm.xlu0 %3853, %v3179_v28  }
 0xcd6   :  { %3252 = vperm.xlu1 %3852, %v3753_v26  }
 0xcda   :  { %3854 = vset.pattern.permute.xlu1 %v4108_v59 }
 0xd38   :  { %v3196_v4 = vpop.permute.xlu1 %3195 }
 0xd39   :  { %3207 = vxpose.xlu0.b32.start [1/4] (short) (narrow) %v3196_v4, 8 }
 0xd3c   :  { %v3200_v47 = vpop.permute.xlu1 %3199 }
 0xd3d   :  { %v3198_v35 = vpop.permute.xlu0 %3197 }
 0xd3e   :  { %3208 = vxpose.xlu0.b32.cont [2/4] (short) (narrow) %v3198_v35, 8 }
 0xd41   :  { %v3202_v37 = vpop.permute.xlu0 %3201 }
 0xd42   :  { %3209 = vxpose.xlu0.b32.cont [3/4] (short) (narrow) %v3200_v47, 8 }
 0xd46   :  { %3210 = vxpose.xlu0.b32.end [4/4] (short) (narrow) %v3202_v37, 8 }
 0xd49   :  { %v3241_v33 = vpop.permute.xlu1 %3240 }
 0xd4d   :  { %v3249_v16 = vpop.permute.xlu1 %3248 }
 0xd4e   :  { %v3245_v13 = vpop.permute.xlu0 %3244 }
 0xd51   :  { %v3253_v6 = vpop.permute.xlu1 %3252 }
 0xd6f   :  { %3855 = vset.pattern.permute.xlu0 %v4108_v59 }
 0xdb6   :  { %v3223_v39 = vpop.trf.xlu0 }
 0xdb7   :  { %v3258_v57 = vrot.slane %v3223_v39, %v5758_v17 }
 0xdb9   :  { %v3259_v62 = vadd.f32 %v3258_v57, %v3241_v33  ;;  %v3260_v55 = vadd.f32 %v3258_v57, %v3245_v13  ;;  %v3261_v23 = vadd.f32 %v3258_v57, %v3249_v16  ;;  %v3262_v2 = vadd.f32 %v3258_v57, %v3253_v6 }
 0xdbb   :  { %vm3266_vm1 = vcmp.gt.f32.partialorder %v3262_v2, 0.0  ;;  %v3270_v25 = vmul.f32 0.2, %v3262_v2  ;;  %vm3263_vm15 = vcmp.gt.f32.partialorder %v3259_v62, 0.0  ;;  %v3267_v40 = vmul.f32 0.2, %v3259_v62 }
 0xdbc   :  { %vm3264_vm0 = vcmp.gt.f32.partialorder %v3260_v55, 0.0  ;;  %v3268_v53 = vmul.f32 0.2, %v3260_v55  ;;  %v3269_v3 = vmul.f32 0.2, %v3261_v23  ;;  %vm3265_vm3 = vcmp.gt.f32.partialorder %v3261_v23, 0.0 }
 0xdbd   :  { %v3274_v10 = vsel %vm3266_vm1, %v3262_v2, %v3270_v25  ;;  %v3271_v63 = vsel %vm3263_vm15, %v3259_v62, %v3267_v40 }
 0xdbe   :  { %v3278_v58 = vadd.f32 %v5759_v27, %v3274_v10  ;;  %v3275_v20 = vadd.f32 %v5760_v0, %v3271_v63  ;;  %v3272_v51 = vsel %vm3264_vm0, %v3260_v55, %v3268_v53  ;;  %v3273_v44 = vsel %vm3265_vm3, %v3261_v23, %v3269_v3 }
 0xdbf   :  { %v3276_v1 = vadd.f32 %v5761_v15, %v3272_v51  ;;  %v3277_v18 = vadd.f32 %v5762_v22, %v3273_v44 }
 0xdc0   :  { %v3288_v52 = vsel %vm243_vm2, %v3278_v58, -inf  ;;  %v3279_v14 = vsel %vm243_vm2, %v3275_v20, -inf }
 0xdc1   :  { %3289 = vmax.xlane.f32.xlu0 %v3288_v52  ;;  %3280 = vmax.xlane.f32.xlu1 %v3279_v14  ;;  %v3282_v54 = vsel %vm243_vm2, %v3276_v1, -inf  ;;  %v3285_v32 = vsel %vm243_vm2, %v3277_v18, -inf }
 0xdc5   :  { %3283 = vmax.xlane.f32.xlu1 %v3282_v54 }
 0xdc9   :  { %3286 = vmax.xlane.f32.xlu1 %v3285_v32 }
 0xe4a   :  { %v3281_v31 = vpop.xlane.xlu1 %3280  ;;  %v3290_v30 = vpop.xlane.xlu0 %3289 }
 0xe4b   :  { %v3291_v34 = vsub.f32 %v3275_v20, %v3281_v31  ;;  %v3294_v5 = vsub.f32 %v3278_v58, %v3290_v30 }
 0xe4e   :  { %v3284_v41 = vpop.xlane.xlu1 %3283 }
 0xe4f   :  { %v3292_v12 = vsub.f32 %v3276_v1, %v3284_v41 }
 0xe51   :  { %v3295_v56 = vpack.c.bf16 %v3292_v12, %v3291_v34 }
 0xe52   :  { %v3287_v49 = vpop.xlane.xlu1 %3286 }
 0xe53   :  { %v3298_v7 = vmul.bf16 1069105081, %v3295_v56  ;;  %v3293_v50 = vsub.f32 %v3277_v18, %v3287_v49 }
 0xe55   :  { %4072 = vpow.bf16 %v3298_v7  ;;  %v3296_v24 = vpack.c.bf16 %v3294_v5, %v3293_v50 }
 0xe57   :  { %v3301_v61 = vmul.bf16 1069105081, %v3296_v24 }
 0xe59   :  { %4074 = vpow.bf16 %v3301_v61 }
 0xe63   :  { %v4073_v46 = vpop.eup %4072 }
 0xe64   :  { %v3303_v11 = vunpack.c.l.bf16 %v4073_v46  ;;  %v3304_v38 = vunpack.c.h.bf16 %v4073_v46 }
 0xe66   :  { %v3307_v21 = vsel %vm243_vm2, %v3303_v11, 0.0  ;;  %v3310_v42 = vsel %vm243_vm2, %v3304_v38, 0.0 }
 0xe67   :  { %v4075_v19 = vpop.eup %4074  ;;  %3308 = vadd.xlane.f32.xlu1 %v3307_v21 }
 0xe68   :  { %v3305_v43 = vunpack.c.l.bf16 %v4075_v19  ;;  %v3306_v60 = vunpack.c.h.bf16 %v4075_v19 }
 0xe6a   :  { %v3313_v48 = vsel %vm243_vm2, %v3305_v43, 0.0  ;;  %v3316_v29 = vsel %vm243_vm2, %v3306_v60, 0.0 }
 0xe6b   :  { %3311 = vadd.xlane.f32.xlu1 %v3310_v42 }
 0xe6f   :  { %3314 = vadd.xlane.f32.xlu1 %v3313_v48 }
 0xe73   :  { %3317 = vadd.xlane.f32.xlu1 %v3316_v29 }
 0xef0   :  { %v3309_v9 = vpop.xlane.xlu1 %3308 }
 0xef1   :  { %4076 = vrcp.f32 %v3309_v9 }
 0xef4   :  { %v3312_v45 = vpop.xlane.xlu1 %3311 }
 0xef5   :  { %4078 = vrcp.f32 %v3312_v45 }
 0xef8   :  { %v3315_v26 = vpop.xlane.xlu1 %3314 }
 0xef9   :  { %4080 = vrcp.f32 %v3315_v26 }
 0xefc   :  { %v3318_v8 = vpop.xlane.xlu1 %3317 }
 0xefd   :  { %4082 = vrcp.f32 %v3318_v8 }
 0xefe   :  { %v4077_v28 = vpop.eup %4076 }
 0xf02   :  { %v4079_v36 = vpop.eup %4078 }
 0xf03   :  { %v3323_v4 = vpack.c.bf16 %v4079_v36, %v4077_v28 }
 0xf05   :  { %v3325_v35 = vmul.bf16 %v4073_v46, %v3323_v4 }
 0xf06   :  { %v4081_v47 = vpop.eup %4080 }
 0xf07   :  { %3758 = vmatprep.mubr.msk.bf16.mxu0 %vm243_vm2, %v3325_v35 }
 0xf0a   :  { %v4083_v37 = vpop.eup %4082 }
 0xf0b   :  { %v3324_v33 = vpack.c.bf16 %v4083_v37, %v4081_v47 }
 0xf0d   :  { %v3326_v16 = vmul.bf16 %v4075_v19, %v3324_v33 }
 0xf0f   :  { %3759 = vmatmul.mubr.msk.bf16.vlgmr.msra.gmra.mxu0 %vm243_vm2, %v3326_v16 }
 0xfcf   :  { %v3760_v13 = vpop.f32.mrf.mxu0 }
 0xfd0   :  { %3396 = vperm.xlu1 %3854, %v3760_v13  }
 0xfd1   :  { %v3369_v39 = vpop.f32.mrf.mxu0 }
 0xfd3   :  { %v3761_v17 = vpop.f32.mrf.mxu0 }
 0xfd4   :  { %3386 = vperm.xlu1 %3854, %v3369_v39  }
 0xfd5   :  { %v3372_v57 = vpop.f32.mrf.mxu0 }
 0xfd8   :  { %3391 = vperm.xlu1 %3854, %v3372_v57  }
 0xfdc   :  { %3401 = vperm.xlu1 %3854, %v3761_v17  }
0x104b   :  { %v3397_v6 = vpop.permute.xlu1 %3396 }
0x104c   :  { %3406 = vst [vmem:[%s5656_s6 + $0x10] sm:$0xff] %v3397_v6 }
0x104f   :  { %v3387_v62 = vpop.permute.xlu1 %3386 }
0x1050   :  { %3404 = vst [vmem:[%s5656_s6] sm:$0xff] %v3387_v62 }
0x1053   :  { %v3392_v55 = vpop.permute.xlu1 %3391 }
0x1054   :  { %3405 = vst [vmem:[%s5656_s6 + $0x8] sm:$0xff] %v3392_v55 }
0x1057   :  { %v3402_v23 = vpop.permute.xlu1 %3401 }
0x1058   :  { %3407 = vst [vmem:[%s5656_s6 + $0x18] sm:$0xff] %v3402_v23 }

</bundles_post_ra>
